<compile_context>
chip_gen: v6e
topology: v6e:2x2x1
jax: 0.10.0
libtpu: 0.0.40
codegen_flags: <defaults>
</compile_context>

<pallas_src>
import functools

import jax
import jax.numpy as jnp
import numpy as np
from jax.experimental import pallas as pl
from jax.experimental.pallas import tpu as pltpu

EPS = 1e-5                      # nn.LayerNorm default eps
_INV_SQRT2 = 0.7071067811865476


def _round_up(x, m):
    return (x + m - 1) // m * m


# ---------------------------------------------------------------------------
# Static shifted-window attention mask (mirrors the PyTorch module exactly).
# ---------------------------------------------------------------------------
def _build_attn_mask(H, W, ws, shift):
    Hp = _round_up(H, ws)
    Wp = _round_up(W, ws)
    nW = (Hp // ws) * (Wp // ws)
    P = ws * ws
    if shift <= 0:
        return np.zeros((nW, P, P + 1), np.float32)
    img_mask = np.zeros((Hp, Wp), np.float32)
    slices = (slice(0, -ws), slice(-ws, -shift), slice(-shift, None))
    cnt = 0
    for hs in slices:
        for wsl in slices:
            img_mask[hs, wsl] = cnt
            cnt += 1
    mw = img_mask.reshape(Hp // ws, ws, Wp // ws, ws).transpose(0, 2, 1, 3).reshape(nW, P)
    diff = mw[:, None, :] - mw[:, :, None]
    attn_mask = np.where(diff != 0, -100.0, 0.0).astype(np.float32)
    cls_col = np.zeros((nW, P, 1), np.float32)
    return np.concatenate([cls_col, attn_mask], axis=2)          # (nW, P, P+1)


# ---------------------------------------------------------------------------
# Pallas kernels
# ---------------------------------------------------------------------------
def _ln_qkv_kernel(x_ref, g_ref, b_ref, w_ref, bias_ref, o_ref):
    """LayerNorm over C followed by fused qkv linear. Block = TILE token rows."""
    x = x_ref[...]                                               # (TILE, C)
    mu = jnp.mean(x, axis=-1, keepdims=True)
    var = jnp.mean((x - mu) ** 2, axis=-1, keepdims=True)
    xn = (x - mu) * jax.lax.rsqrt(var + EPS)
    xn = xn * g_ref[...] + b_ref[...]
    o_ref[...] = (jnp.dot(xn, w_ref[...], preferred_element_type=jnp.float32)
                  + bias_ref[...])


def _attn_kernel(scale, nh, hd, has_mask, full_ref, win_ref, mask_ref,
                 ow_ref, oc_ref):
    """Per-image attention: all windows batched + cls-token attention.

    full_ref: (1, L, 3C)   raw per-image qkv (unpadded / unshifted token order)
    win_ref : (1, nW, P, 3C) window-partitioned patch qkv
    mask_ref: (nW, P, P+1)   shifted-window mask (only read when has_mask)
    ow_ref  : (1, nW, P, C)  window-attention output (lane-dense, row = C)
    oc_ref  : (1, 1, C)      cls-token attention output
    """
    C = nh * hd
    full = full_ref[0]                                           # (L, 3C)
    win = win_ref[0]                                             # (nW, P, 3C)
    nW, P, _ = win.shape
    cls_row = full[0:1, :]                                       # (1, 3C)

    if has_mask:
        mask = mask_ref[...]                                     # (nW, P, P+1)
        mask_pat = mask[:, :, 1:]
        mask_cls = mask[:, :, 0:1]

    # ---- window attention: heads sliced from the lane-dense 3C axis ----
    win_heads = []
    for h in range(nh):
        lo = h * hd
        q_h = win[:, :, lo:lo + hd] * scale                      # (nW, P, hd)
        k_pat = win[:, :, C + lo:C + lo + hd]                    # (nW, P, hd)
        v_pat = win[:, :, 2 * C + lo:2 * C + lo + hd]            # (nW, P, hd)
        k_cls = jnp.broadcast_to(cls_row[None, :, C + lo:C + lo + hd], (nW, 1, hd))
        v_cls = jnp.broadcast_to(cls_row[None, :, 2 * C + lo:2 * C + lo + hd], (nW, 1, hd))

        s_pat = jnp.einsum('wpd,wkd->wpk', q_h, k_pat,
                           preferred_element_type=jnp.float32)   # (nW, P, P)
        s_cls = jnp.sum(q_h * k_cls, axis=-1, keepdims=True)     # (nW, P, 1)
        if has_mask:
            s_pat = s_pat + mask_pat
            s_cls = s_cls + mask_cls

        m = jnp.maximum(jnp.max(s_pat, axis=-1, keepdims=True), s_cls)
        e_pat = jnp.exp(s_pat - m)
        e_cls = jnp.exp(s_cls - m)
        inv = pl.reciprocal(jnp.sum(e_pat, axis=-1, keepdims=True) + e_cls,
                            approx=True)
        a_pat = e_pat * inv                                      # (nW, P, P)
        a_cls = e_cls * inv                                      # (nW, P, 1)
        o_h = (jnp.einsum('wpk,wkd->wpd', a_pat, v_pat,
                          preferred_element_type=jnp.float32)
               + a_cls * v_cls)                                  # (nW, P, hd)
        win_heads.append(o_h)
    ow_ref[0] = jnp.concatenate(win_heads, axis=-1)              # (nW, P, C)

    # ---- cls-token attention over the full (unpadded) sequence ----
    cls_heads = []
    for h in range(nh):
        lo = h * hd
        q0 = full[0:1, lo:lo + hd] * scale                       # (1, hd)
        k_h = full[:, C + lo:C + lo + hd]                        # (L, hd)
        v_h = full[:, 2 * C + lo:2 * C + lo + hd]                # (L, hd)
        s = jnp.sum(k_h * q0, axis=-1, keepdims=True)            # (L, 1)
        m = jnp.max(s, axis=0, keepdims=True)
        e = jnp.exp(s - m)
        a = e * pl.reciprocal(jnp.sum(e, axis=0, keepdims=True), approx=True)
        cls_heads.append(jnp.sum(a * v_h, axis=0, keepdims=True))  # (1, hd)
    oc_ref[0] = jnp.concatenate(cls_heads, axis=-1)              # (1, C)


def _tail_kernel(zc_ref, sc_ref, wp_ref, bp_ref, g2_ref, b2_ref,
                 w1_ref, b1_ref, w2_ref, b2f_ref, o_ref):
    """proj + residual, then LayerNorm2 + MLP(GELU) + residual. Block = TILE rows."""
    z = (sc_ref[...]
         + jnp.dot(zc_ref[...], wp_ref[...], preferred_element_type=jnp.float32)
         + bp_ref[...])
    mu = jnp.mean(z, axis=-1, keepdims=True)
    var = jnp.mean((z - mu) ** 2, axis=-1, keepdims=True)
    zn = (z - mu) * jax.lax.rsqrt(var + EPS) * g2_ref[...] + b2_ref[...]
    h = jnp.dot(zn, w1_ref[...], preferred_element_type=jnp.float32) + b1_ref[...]
    h = 0.5 * h * (1.0 + jax.lax.erf(h * _INV_SQRT2))            # exact GELU
    o_ref[...] = (z
                  + jnp.dot(h, w2_ref[...], preferred_element_type=jnp.float32)
                  + b2f_ref[...])


# ---------------------------------------------------------------------------
# Wrapper (JAX glue + pallas_call plumbing)
# ---------------------------------------------------------------------------
def swin_block_forward(x, params, *, input_resolution, num_heads, window_size,
                       shift_size=0, row_tile=256):
    B, L, C = x.shape
    H, W = input_resolution
    assert L == H * W + 1
    assert C % num_heads == 0
    if min(input_resolution) <= window_size:
        shift_size = 0
        window_size = min(input_resolution)
    ws = window_size
    nh = num_heads
    hd = C // nh
    scale = hd ** -0.5
    HID = params['w_fc1_t'].shape[1]
    f32 = jnp.float32

    parallel1 = pltpu.CompilerParams(dimension_semantics=("parallel",))

    # ---- kernel 1: LayerNorm1 + fused QKV, row-tiled over all B*L tokens ----
    R = B * L
    tile = min(row_tile, _round_up(R, 8))
    R_pad = _round_up(R, tile)
    x_flat = x.reshape(R, C)
    if R_pad != R:
        x_flat = jnp.pad(x_flat, ((0, R_pad - R), (0, 0)))

    qkv_flat = pl.pallas_call(
        _ln_qkv_kernel,
        grid=(R_pad // tile,),
        in_specs=[
            pl.BlockSpec((tile, C), lambda i: (i, 0)),
            pl.BlockSpec((1, C), lambda i: (0, 0)),
            pl.BlockSpec((1, C), lambda i: (0, 0)),
            pl.BlockSpec((C, 3 * C), lambda i: (0, 0)),
            pl.BlockSpec((1, 3 * C), lambda i: (0, 0)),
        ],
        out_specs=pl.BlockSpec((tile, 3 * C), lambda i: (i, 0)),
        out_shape=jax.ShapeDtypeStruct((R_pad, 3 * C), f32),
        compiler_params=parallel1,
    )(x_flat, params['g1'], params['b1'], params['w_qkv_t'], params['b_qkv'])
    qkv = qkv_flat[:R].reshape(B, L, 3 * C)

    # ---- window partition glue (no head-split transpose; heads sliced in-kernel) ----
    pad_r = (ws - W % ws) % ws
    pad_b = (ws - H % ws) % ws
    Hp, Wp = H + pad_b, W + pad_r
    nW = (Hp // ws) * (Wp // ws)
    P = ws * ws

    qkv_patch = qkv[:, 1:, :].reshape(B, H, W, 3 * C)
    if pad_r or pad_b:
        # TODO(synk): padded tokens are unmasked keys/values, matching the PyTorch module.
        qkv_patch = jnp.pad(qkv_patch, ((0, 0), (0, pad_b), (0, pad_r), (0, 0)))
    if shift_size > 0:
        qkv_patch = jnp.roll(qkv_patch, shift=(-shift_size, -shift_size), axis=(1, 2))
    qkv_win = qkv_patch.reshape(B, Hp // ws, ws, Wp // ws, ws, 3 * C)
    qkv_win = qkv_win.transpose(0, 1, 3, 2, 4, 5).reshape(B, nW, P, 3 * C)

    has_mask = shift_size > 0
    mask = jnp.asarray(_build_attn_mask(H, W, ws, shift_size))   # (nW, P, P+1)

    # ---- kernel 2: window attention (all windows of one image / step) + cls attention ----
    attn_kernel = functools.partial(_attn_kernel, scale, nh, hd, has_mask)
    o_win, o_cls = pl.pallas_call(
        attn_kernel,
        grid=(B,),
        in_specs=[
            pl.BlockSpec((1, L, 3 * C), lambda b: (b, 0, 0)),
            pl.BlockSpec((1, nW, P, 3 * C), lambda b: (b, 0, 0, 0)),
            pl.BlockSpec((nW, P, P + 1), lambda b: (0, 0, 0)),
        ],
        out_specs=(
            pl.BlockSpec((1, nW, P, C), lambda b: (b, 0, 0, 0)),
            pl.BlockSpec((1, 1, C), lambda b: (b, 0, 0)),
        ),
        out_shape=(
            jax.ShapeDtypeStruct((B, nW, P, C), f32),
            jax.ShapeDtypeStruct((B, 1, C), f32),
        ),
        compiler_params=parallel1,
    )(qkv, qkv_win, mask)

    # ---- window reverse glue ----
    aw = o_win.reshape(B, Hp // ws, Wp // ws, ws, ws, C)
    aw = aw.transpose(0, 1, 3, 2, 4, 5).reshape(B, Hp, Wp, C)
    if shift_size > 0:
        aw = jnp.roll(aw, shift=(shift_size, shift_size), axis=(1, 2))
    aw = aw[:, :H, :W, :].reshape(B, H * W, C)
    z_cat = jnp.concatenate([o_cls, aw], axis=1)                 # (B, L, C)

    # ---- kernel 3: proj + residual + LN2 + MLP + residual, row-tiled ----
    z_flat = z_cat.reshape(R, C)
    sc_flat = x.reshape(R, C)
    if R_pad != R:
        z_flat = jnp.pad(z_flat, ((0, R_pad - R), (0, 0)))
        sc_flat = jnp.pad(sc_flat, ((0, R_pad - R), (0, 0)))
    # TODO(synk): for production sizes (C~768, HID~3072) tile the HID axis with an
    # extra grid dim + VMEM accumulator (and/or bf16 weights) to fit v7x VMEM.
    z_out = pl.pallas_call(
        _tail_kernel,
        grid=(R_pad // tile,),
        in_specs=[
            pl.BlockSpec((tile, C), lambda i: (i, 0)),
            pl.BlockSpec((tile, C), lambda i: (i, 0)),
            pl.BlockSpec((C, C), lambda i: (0, 0)),
            pl.BlockSpec((1, C), lambda i: (0, 0)),
            pl.BlockSpec((1, C), lambda i: (0, 0)),
            pl.BlockSpec((1, C), lambda i: (0, 0)),
            pl.BlockSpec((C, HID), lambda i: (0, 0)),
            pl.BlockSpec((1, HID), lambda i: (0, 0)),
            pl.BlockSpec((HID, C), lambda i: (0, 0)),
            pl.BlockSpec((1, C), lambda i: (0, 0)),
        ],
        out_specs=pl.BlockSpec((tile, C), lambda i: (i, 0)),
        out_shape=jax.ShapeDtypeStruct((R_pad, C), f32),
        compiler_params=parallel1,
    )(z_flat, sc_flat, params['w_proj_t'], params['b_proj'],
      params['g2'], params['b2'], params['w_fc1_t'], params['b_fc1'],
      params['w_fc2_t'], params['b_fc2'])

    z = z_out[:R].reshape(B, L, C)
    return z, qkv


# ---------------------------------------------------------------------------
# Pure-JAX reference (mirrors the PyTorch forward, incl. shifted-window mask)
# ---------------------------------------------------------------------------
def reference_forward(x, params, *, input_resolution, num_heads, window_size,
                      shift_size=0):
    B, L, C = x.shape
    H, W = input_resolution
    if min(input_resolution) <= window_size:
        shift_size = 0
        window_size = min(input_resolution)
    ws = window_size
    nh = num_heads
    hd = C // nh
    scale = hd ** -0.5

    def ln(v, g, b):
        mu = v.mean(-1, keepdims=True)
        var = ((v - mu) ** 2).mean(-1, keepdims=True)
        return (v - mu) / jnp.sqrt(var + EPS) * g + b

    shortcut = x
    xn = ln(x, params['g1'][0], params['b1'][0])
    qkv = xn @ params['w_qkv_t'] + params['b_qkv'][0]

    # cls attention
    qkv_h = qkv.reshape(B, L, 3, nh, hd).transpose(2, 0, 3, 1, 4)
    q0 = qkv_h[0][:, :, 0:1, :] * scale
    k, v = qkv_h[1], qkv_h[2]
    attn = jax.nn.softmax(q0 @ k.transpose(0, 1, 3, 2), axis=-1)
    out_cls = (attn @ v).transpose(0, 2, 1, 3).reshape(B, 1, C)

    # window attention
    qkv_patch = qkv[:, 1:, :].reshape(B, H, W, 3 * C)
    pad_r = (ws - W % ws) % ws
    pad_b = (ws - H % ws) % ws
    if pad_r or pad_b:
        qkv_patch = jnp.pad(qkv_patch, ((0, 0), (0, pad_b), (0, pad_r), (0, 0)))
    Hp, Wp = H + pad_b, W + pad_r
    if shift_size > 0:
        qkv_patch = jnp.roll(qkv_patch, (-shift_size, -shift_size), axis=(1, 2))
    nW = (Hp // ws) * (Wp // ws)
    qw = qkv_patch.reshape(B, Hp // ws, ws, Wp // ws, ws, 3 * C)
    qw = qw.transpose(0, 1, 3, 2, 4, 5).reshape(B * nW, ws * ws, 3 * C)
    qc = jnp.broadcast_to(qkv[:, 0:1, :], (B, nW, 3 * C)).reshape(B * nW, 1, 3 * C)
    qkvw = jnp.concatenate([qc, qw], axis=1)
    B_, M, _ = qkvw.shape
    qkvwh = qkvw.reshape(B_, M, 3, nh, hd).transpose(2, 0, 3, 1, 4)
    qq = qkvwh[0][:, :, 1:, :] * scale
    kk, vv = qkvwh[1], qkvwh[2]
    scores = qq @ kk.transpose(0, 1, 3, 2)                       # (B_, nh, M-1, M)
    if shift_size > 0:
        msk = jnp.asarray(_build_attn_mask(H, W, ws, shift_size))
        scores = scores.reshape(B, nW, nh, M - 1, M) + msk[None, :, None, :, :]
        scores = scores.reshape(B_, nh, M - 1, M)
    a = jax.nn.softmax(scores, axis=-1)
    aw = (a @ vv).transpose(0, 2, 1, 3).reshape(B_, M - 1, C)
    aw = aw.reshape(B, Hp // ws, Wp // ws, ws, ws, C)
    aw = aw.transpose(0, 1, 3, 2, 4, 5).reshape(B, Hp, Wp, C)
    if shift_size > 0:
        aw = jnp.roll(aw, (shift_size, shift_size), axis=(1, 2))
    aw = aw[:, :H, :W, :].reshape(B, -1, C)

    z = jnp.concatenate([out_cls, aw], axis=1)
    z = z @ params['w_proj_t'] + params['b_proj'][0]
    z = shortcut + z
    zn = ln(z, params['g2'][0], params['b2'][0])
    h = jax.nn.gelu(zn @ params['w_fc1_t'] + params['b_fc1'][0], approximate=False)
    z = z + h @ params['w_fc2_t'] + params['b_fc2'][0]
    return z, qkv


# ---------------------------------------------------------------------------
if __name__ == "__main__":
    # Small configuration: dim=32, heads=4, 8x8 patch grid, window 4.
    B, C, H, W = 2, 32, 8, 8
    num_heads = 4
    window_size = 4
    mlp_ratio = 4.0
    L = H * W + 1
    HID = int(C * mlp_ratio)

    key = jax.random.PRNGKey(0)
    keys = jax.random.split(key, 10)
    params = {
        'g1': jnp.ones((1, C), jnp.float32),
        'b1': jnp.zeros((1, C), jnp.float32),
        'w_qkv_t': jax.random.normal(keys[0], (C, 3 * C), jnp.float32) * 0.05,
        'b_qkv': jax.random.normal(keys[1], (1, 3 * C), jnp.float32) * 0.02,
        'w_proj_t': jax.random.normal(keys[2], (C, C), jnp.float32) * 0.05,
        'b_proj': jax.random.normal(keys[3], (1, C), jnp.float32) * 0.02,
        'g2': jnp.ones((1, C), jnp.float32),
        'b2': jnp.zeros((1, C), jnp.float32),
        'w_fc1_t': jax.random.normal(keys[4], (C, HID), jnp.float32) * 0.05,
        'b_fc1': jax.random.normal(keys[5], (1, HID), jnp.float32) * 0.02,
        'w_fc2_t': jax.random.normal(keys[6], (HID, C), jnp.float32) * 0.05,
        'b_fc2': jax.random.normal(keys[7], (1, C), jnp.float32) * 0.02,
    }
    x = jax.random.normal(keys[8], (B, L, C), jnp.float32)

    # Regular windows (shift=0) and shifted windows (shift=2, with attention mask).
    for shift_size in (0, 2):
        fwd = jax.jit(functools.partial(
            swin_block_forward, input_resolution=(H, W), num_heads=num_heads,
            window_size=window_size, shift_size=shift_size))
        z, qkv = fwd(x, params)
        jax.block_until_ready((z, qkv))

        z_ref, qkv_ref = reference_forward(
            x, params, input_resolution=(H, W), num_heads=num_heads,
            window_size=window_size, shift_size=shift_size)
        np.testing.assert_allclose(np.asarray(qkv), np.asarray(qkv_ref),
                                   rtol=5e-3, atol=1e-3)
        np.testing.assert_allclose(np.asarray(z), np.asarray(z_ref),
                                   rtol=5e-3, atol=1e-3)

    print("KERNEL_OK")
</pallas_src>

<mosaic_0001>
module attributes {stable_mosaic.version = 11 : i64} {
  func.func @_ln_qkv_kernel(%arg0: i32, %arg1: memref<136x32xf32, #tpu.memory_space<vmem>>, %arg2: memref<1x32xf32, #tpu.memory_space<vmem>>, %arg3: memref<1x32xf32, #tpu.memory_space<vmem>>, %arg4: memref<32x96xf32, #tpu.memory_space<vmem>>, %arg5: memref<1x96xf32, #tpu.memory_space<vmem>>, %arg6: memref<136x96xf32, #tpu.memory_space<vmem>>) attributes {dimension_semantics = [#tpu.dimension_semantics<parallel>], iteration_bounds = array<i64: 1>, scalar_prefetch = 0 : i64, scratch_operands = 0 : i64, tpu.core_type = #tpu.core_type<tc>, window_params = [{transform_indices = @transform_0, window_bounds = array<i64: 136, 32>}, {pipeline_mode = #tpu.pipeline_mode<synchronous>, transform_indices = @transform_1, window_bounds = array<i64: 1, 32>}, {pipeline_mode = #tpu.pipeline_mode<synchronous>, transform_indices = @transform_2, window_bounds = array<i64: 1, 32>}, {pipeline_mode = #tpu.pipeline_mode<synchronous>, transform_indices = @transform_3, window_bounds = array<i64: 32, 96>}, {pipeline_mode = #tpu.pipeline_mode<synchronous>, transform_indices = @transform_4, window_bounds = array<i64: 1, 96>}, {transform_indices = @transform_5, window_bounds = array<i64: 136, 96>}]} {
    %c0 = arith.constant 0 : index
    %c0_0 = arith.constant 0 : index
    %0 = vector.load %arg1[%c0, %c0_0] : memref<136x32xf32, #tpu.memory_space<vmem>>, vector<136x32xf32>
    %cst = arith.constant dense<0.000000e+00> : vector<136xf32>
    %1 = vector.multi_reduction <add>, %0, %cst [1] : vector<136x32xf32> to vector<136xf32>
    %2 = vector.shape_cast %1 : vector<136xf32> to vector<136x1xf32>
    %cst_1 = arith.constant 3.200000e+01 : f32
    %3 = vector.broadcast %cst_1 : f32 to vector<136x1xf32>
    %4 = arith.divf %2, %3 : vector<136x1xf32>
    %5 = vector.broadcast %4 : vector<136x1xf32> to vector<136x32xf32>
    %6 = arith.subf %0, %5 : vector<136x32xf32>
    %7 = arith.mulf %6, %6 : vector<136x32xf32>
    %cst_2 = arith.constant dense<0.000000e+00> : vector<136xf32>
    %8 = vector.multi_reduction <add>, %7, %cst_2 [1] : vector<136x32xf32> to vector<136xf32>
    %9 = vector.shape_cast %8 : vector<136xf32> to vector<136x1xf32>
    %cst_3 = arith.constant 3.200000e+01 : f32
    %10 = vector.broadcast %cst_3 : f32 to vector<136x1xf32>
    %11 = arith.divf %9, %10 : vector<136x1xf32>
    %12 = vector.broadcast %4 : vector<136x1xf32> to vector<136x32xf32>
    %13 = arith.subf %0, %12 : vector<136x32xf32>
    %cst_4 = arith.constant 9.99999974E-6 : f32
    %14 = vector.broadcast %cst_4 : f32 to vector<136x1xf32>
    %15 = arith.addf %11, %14 : vector<136x1xf32>
    %16 = math.rsqrt %15 : vector<136x1xf32>
    %17 = vector.broadcast %16 : vector<136x1xf32> to vector<136x32xf32>
    %18 = arith.mulf %13, %17 : vector<136x32xf32>
    %c0_5 = arith.constant 0 : index
    %c0_6 = arith.constant 0 : index
    %19 = vector.load %arg2[%c0_5, %c0_6] : memref<1x32xf32, #tpu.memory_space<vmem>>, vector<1x32xf32>
    %20 = vector.broadcast %19 : vector<1x32xf32> to vector<136x32xf32>
    %21 = arith.mulf %18, %20 : vector<136x32xf32>
    %c0_7 = arith.constant 0 : index
    %c0_8 = arith.constant 0 : index
    %22 = vector.load %arg3[%c0_7, %c0_8] : memref<1x32xf32, #tpu.memory_space<vmem>>, vector<1x32xf32>
    %23 = vector.broadcast %22 : vector<1x32xf32> to vector<136x32xf32>
    %24 = arith.addf %21, %23 : vector<136x32xf32>
    %c0_9 = arith.constant 0 : index
    %c0_10 = arith.constant 0 : index
    %25 = vector.load %arg4[%c0_9, %c0_10] : memref<32x96xf32, #tpu.memory_space<vmem>>, vector<32x96xf32>
    %cst_11 = arith.constant dense<0.000000e+00> : vector<136x96xf32>
    %26 = tpu.matmul %24, %25, %cst_11 {dimension_numbers = #tpu.dot_dimension_numbers<[1], [0], [0], [1], [0, 0, 1, 1], [], []>} : vector<136x32xf32>, vector<32x96xf32>, vector<136x96xf32> -> vector<136x96xf32>
    %c0_12 = arith.constant 0 : index
    %c0_13 = arith.constant 0 : index
    %27 = vector.load %arg5[%c0_12, %c0_13] : memref<1x96xf32, #tpu.memory_space<vmem>>, vector<1x96xf32>
    %28 = vector.broadcast %27 : vector<1x96xf32> to vector<136x96xf32>
    %29 = arith.addf %26, %28 : vector<136x96xf32>
    %c0_14 = arith.constant 0 : index
    %c0_15 = arith.constant 0 : index
    %30 = vector.load %arg6[%c0_14, %c0_15] : memref<136x96xf32, #tpu.memory_space<vmem>>, vector<136x96xf32>
    tpu.vector_store %arg6[%c0_14, %c0_15], %29 {strides = array<i32>} : memref<136x96xf32, #tpu.memory_space<vmem>>, vector<136x96xf32>,
    return
  }
  func.func @transform_0(%arg0: i32) -> (i32, i32) {
    %c0_i32 = arith.constant 0 : i32
    %c0_i32_0 = arith.constant 0 : i32
    return %arg0, %c0_i32 : i32, i32
  }
  func.func @transform_1(%arg0: i32) -> (i32, i32) {
    %c0_i32 = arith.constant 0 : i32
    %c0_i32_0 = arith.constant 0 : i32
    %c0_i32_1 = arith.constant 0 : i32
    return %c0_i32, %c0_i32_0 : i32, i32
  }
  func.func @transform_2(%arg0: i32) -> (i32, i32) {
    %c0_i32 = arith.constant 0 : i32
    %c0_i32_0 = arith.constant 0 : i32
    %c0_i32_1 = arith.constant 0 : i32
    return %c0_i32, %c0_i32_0 : i32, i32
  }
  func.func @transform_3(%arg0: i32) -> (i32, i32) {
    %c0_i32 = arith.constant 0 : i32
    %c0_i32_0 = arith.constant 0 : i32
    %c0_i32_1 = arith.constant 0 : i32
    return %c0_i32, %c0_i32_0 : i32, i32
  }
  func.func @transform_4(%arg0: i32) -> (i32, i32) {
    %c0_i32 = arith.constant 0 : i32
    %c0_i32_0 = arith.constant 0 : i32
    %c0_i32_1 = arith.constant 0 : i32
    return %c0_i32, %c0_i32_0 : i32, i32
  }
  func.func @transform_5(%arg0: i32) -> (i32, i32) {
    %c0_i32 = arith.constant 0 : i32
    %c0_i32_0 = arith.constant 0 : i32
    return %arg0, %c0_i32 : i32, i32
  }
}

module attributes {stable_mosaic.version = 11 : i64} {
  func.func @_attn_kernel(%arg0: i32, %arg1: memref<1x65x96xf32, #tpu.memory_space<vmem>>, %arg2: memref<1x4x16x96xf32, #tpu.memory_space<vmem>>, %arg3: memref<4x16x17xf32, #tpu.memory_space<vmem>>, %arg4: memref<1x4x16x32xf32, #tpu.memory_space<vmem>>, %arg5: memref<1x1x32xf32, #tpu.memory_space<vmem>>) attributes {dimension_semantics = [#tpu.dimension_semantics<parallel>], iteration_bounds = array<i64: 2>, scalar_prefetch = 0 : i64, scratch_operands = 0 : i64, tpu.core_type = #tpu.core_type<tc>, window_params = [{transform_indices = @transform_0, window_bounds = array<i64: 1, 65, 96>}, {transform_indices = @transform_1, window_bounds = array<i64: 1, 4, 16, 96>}, {pipeline_mode = #tpu.pipeline_mode<synchronous>, transform_indices = @transform_2, window_bounds = array<i64: 4, 16, 17>}, {transform_indices = @transform_3, window_bounds = array<i64: 1, 4, 16, 32>}, {transform_indices = @transform_4, window_bounds = array<i64: 1, 1, 32>}]} {
    %c0 = arith.constant 0 : index
    %c0_0 = arith.constant 0 : index
    %c0_1 = arith.constant 0 : index
    %0 = vector.load %arg1[%c0, %c0_0, %c0_1] : memref<1x65x96xf32, #tpu.memory_space<vmem>>, vector<1x65x96xf32>
    %1 = vector.shape_cast %0 : vector<1x65x96xf32> to vector<65x96xf32>
    %c0_2 = arith.constant 0 : index
    %c0_3 = arith.constant 0 : index
    %c0_4 = arith.constant 0 : index
    %c0_5 = arith.constant 0 : index
    %2 = vector.load %arg2[%c0_2, %c0_3, %c0_4, %c0_5] : memref<1x4x16x96xf32, #tpu.memory_space<vmem>>, vector<1x4x16x96xf32>
    %3 = vector.shape_cast %2 : vector<1x4x16x96xf32> to vector<4x16x96xf32>
    %4 = vector.extract_strided_slice %1 {offsets = [0, 0], sizes = [1, 96], strides = [1, 1]} : vector<65x96xf32> to vector<1x96xf32>
    %5 = vector.extract_strided_slice %3 {offsets = [0, 0, 0], sizes = [4, 16, 8], strides = [1, 1, 1]} : vector<4x16x96xf32> to vector<4x16x8xf32>
    %cst = arith.constant 0.353553385 : f32
    %6 = vector.broadcast %cst : f32 to vector<4x16x8xf32>
    %7 = arith.mulf %5, %6 : vector<4x16x8xf32>
    %8 = vector.extract_strided_slice %3 {offsets = [0, 0, 32], sizes = [4, 16, 8], strides = [1, 1, 1]} : vector<4x16x96xf32> to vector<4x16x8xf32>
    %9 = vector.extract_strided_slice %3 {offsets = [0, 0, 64], sizes = [4, 16, 8], strides = [1, 1, 1]} : vector<4x16x96xf32> to vector<4x16x8xf32>
    %10 = vector.extract_strided_slice %4 {offsets = [0, 32], sizes = [1, 8], strides = [1, 1]} : vector<1x96xf32> to vector<1x8xf32>
    %11 = vector.shape_cast %10 : vector<1x8xf32> to vector<1x1x8xf32>
    %12 = vector.shape_cast %11 : vector<1x1x8xf32> to vector<1x1x8xf32>
    %13 = vector.broadcast %12 : vector<1x1x8xf32> to vector<4x1x8xf32>
    %14 = vector.extract_strided_slice %4 {offsets = [0, 64], sizes = [1, 8], strides = [1, 1]} : vector<1x96xf32> to vector<1x8xf32>
    %15 = vector.shape_cast %14 : vector<1x8xf32> to vector<1x1x8xf32>
    %16 = vector.shape_cast %15 : vector<1x1x8xf32> to vector<1x1x8xf32>
    %17 = vector.broadcast %16 : vector<1x1x8xf32> to vector<4x1x8xf32>
    "tpu.trace_start"() <{level = 10 : i32, message = "wpd,wkd->wpk"}> : () -> ()
    %cst_6 = arith.constant dense<0.000000e+00> : vector<4x16x16xf32>
    %18 = tpu.matmul %7, %8, %cst_6 {dimension_numbers = #tpu.dot_dimension_numbers<[2], [2], [1], [1], [0, 0, 0, 1, 1, 1], [0], [0]>} : vector<4x16x8xf32>, vector<4x16x8xf32>, vector<4x16x16xf32> -> vector<4x16x16xf32>
    "tpu.trace_stop"() : () -> ()
    %19 = vector.broadcast %13 : vector<4x1x8xf32> to vector<4x16x8xf32>
    %20 = arith.mulf %7, %19 : vector<4x16x8xf32>
    %cst_7 = arith.constant dense<0.000000e+00> : vector<4x16xf32>
    %21 = vector.multi_reduction <add>, %20, %cst_7 [2] : vector<4x16x8xf32> to vector<4x16xf32>
    %22 = vector.shape_cast %21 : vector<4x16xf32> to vector<4x16x1xf32>
    %cst_8 = arith.constant dense<0xFF800000> : vector<4x16xf32>
    %23 = vector.multi_reduction <maximumf>, %18, %cst_8 [2] : vector<4x16x16xf32> to vector<4x16xf32>
    %24 = vector.shape_cast %23 : vector<4x16xf32> to vector<4x16x1xf32>
    %25 = arith.maximumf %24, %22 : vector<4x16x1xf32>
    %26 = vector.broadcast %25 : vector<4x16x1xf32> to vector<4x16x16xf32>
    %27 = arith.subf %18, %26 : vector<4x16x16xf32>
    %28 = math.exp %27 : vector<4x16x16xf32>
    %29 = arith.subf %22, %25 : vector<4x16x1xf32>
    %30 = math.exp %29 : vector<4x16x1xf32>
    %cst_9 = arith.constant dense<0.000000e+00> : vector<4x16xf32>
    %31 = vector.multi_reduction <add>, %28, %cst_9 [2] : vector<4x16x16xf32> to vector<4x16xf32>
    %32 = vector.shape_cast %31 : vector<4x16xf32> to vector<4x16x1xf32>
    %33 = arith.addf %32, %30 : vector<4x16x1xf32>
    %34 = tpu.reciprocal %33 {approx = true} : vector<4x16x1xf32> -> vector<4x16x1xf32>
    %35 = vector.broadcast %34 : vector<4x16x1xf32> to vector<4x16x16xf32>
    %36 = arith.mulf %28, %35 : vector<4x16x16xf32>
    %37 = arith.mulf %30, %34 : vector<4x16x1xf32>
    "tpu.trace_start"() <{level = 10 : i32, message = "wpk,wkd->wpd"}> : () -> ()
    %cst_10 = arith.constant dense<0.000000e+00> : vector<4x16x8xf32>
    %38 = tpu.matmul %36, %9, %cst_10 {dimension_numbers = #tpu.dot_dimension_numbers<[2], [1], [1], [2], [0, 0, 0, 1, 1, 2], [0], [0]>} : vector<4x16x16xf32>, vector<4x16x8xf32>, vector<4x16x8xf32> -> vector<4x16x8xf32>
    "tpu.trace_stop"() : () -> ()
    %39 = vector.broadcast %37 : vector<4x16x1xf32> to vector<4x16x8xf32>
    %40 = vector.broadcast %17 : vector<4x1x8xf32> to vector<4x16x8xf32>
    %41 = arith.mulf %39, %40 : vector<4x16x8xf32>
    %42 = arith.addf %38, %41 : vector<4x16x8xf32>
    %43 = vector.extract_strided_slice %3 {offsets = [0, 0, 8], sizes = [4, 16, 8], strides = [1, 1, 1]} : vector<4x16x96xf32> to vector<4x16x8xf32>
    %cst_11 = arith.constant 0.353553385 : f32
    %44 = vector.broadcast %cst_11 : f32 to vector<4x16x8xf32>
    %45 = arith.mulf %43, %44 : vector<4x16x8xf32>
    %46 = vector.extract_strided_slice %3 {offsets = [0, 0, 40], sizes = [4, 16, 8], strides = [1, 1, 1]} : vector<4x16x96xf32> to vector<4x16x8xf32>
    %47 = vector.extract_strided_slice %3 {offsets = [0, 0, 72], sizes = [4, 16, 8], strides = [1, 1, 1]} : vector<4x16x96xf32> to vector<4x16x8xf32>
    %48 = vector.extract_strided_slice %4 {offsets = [0, 40], sizes = [1, 8], strides = [1, 1]} : vector<1x96xf32> to vector<1x8xf32>
    %49 = vector.shape_cast %48 : vector<1x8xf32> to vector<1x1x8xf32>
    %50 = vector.shape_cast %49 : vector<1x1x8xf32> to vector<1x1x8xf32>
    %51 = vector.broadcast %50 : vector<1x1x8xf32> to vector<4x1x8xf32>
    %52 = vector.extract_strided_slice %4 {offsets = [0, 72], sizes = [1, 8], strides = [1, 1]} : vector<1x96xf32> to vector<1x8xf32>
    %53 = vector.shape_cast %52 : vector<1x8xf32> to vector<1x1x8xf32>
    %54 = vector.shape_cast %53 : vector<1x1x8xf32> to vector<1x1x8xf32>
    %55 = vector.broadcast %54 : vector<1x1x8xf32> to vector<4x1x8xf32>
    "tpu.trace_start"() <{level = 10 : i32, message = "wpd,wkd->wpk"}> : () -> ()
    %cst_12 = arith.constant dense<0.000000e+00> : vector<4x16x16xf32>
    %56 = tpu.matmul %45, %46, %cst_12 {dimension_numbers = #tpu.dot_dimension_numbers<[2], [2], [1], [1], [0, 0, 0, 1, 1, 1], [0], [0]>} : vector<4x16x8xf32>, vector<4x16x8xf32>, vector<4x16x16xf32> -> vector<4x16x16xf32>
    "tpu.trace_stop"() : () -> ()
    %57 = vector.broadcast %51 : vector<4x1x8xf32> to vector<4x16x8xf32>
    %58 = arith.mulf %45, %57 : vector<4x16x8xf32>
    %cst_13 = arith.constant dense<0.000000e+00> : vector<4x16xf32>
    %59 = vector.multi_reduction <add>, %58, %cst_13 [2] : vector<4x16x8xf32> to vector<4x16xf32>
    %60 = vector.shape_cast %59 : vector<4x16xf32> to vector<4x16x1xf32>
    %cst_14 = arith.constant dense<0xFF800000> : vector<4x16xf32>
    %61 = vector.multi_reduction <maximumf>, %56, %cst_14 [2] : vector<4x16x16xf32> to vector<4x16xf32>
    %62 = vector.shape_cast %61 : vector<4x16xf32> to vector<4x16x1xf32>
    %63 = arith.maximumf %62, %60 : vector<4x16x1xf32>
    %64 = vector.broadcast %63 : vector<4x16x1xf32> to vector<4x16x16xf32>
    %65 = arith.subf %56, %64 : vector<4x16x16xf32>
    %66 = math.exp %65 : vector<4x16x16xf32>
    %67 = arith.subf %60, %63 : vector<4x16x1xf32>
    %68 = math.exp %67 : vector<4x16x1xf32>
    %cst_15 = arith.constant dense<0.000000e+00> : vector<4x16xf32>
    %69 = vector.multi_reduction <add>, %66, %cst_15 [2] : vector<4x16x16xf32> to vector<4x16xf32>
    %70 = vector.shape_cast %69 : vector<4x16xf32> to vector<4x16x1xf32>
    %71 = arith.addf %70, %68 : vector<4x16x1xf32>
    %72 = tpu.reciprocal %71 {approx = true} : vector<4x16x1xf32> -> vector<4x16x1xf32>
    %73 = vector.broadcast %72 : vector<4x16x1xf32> to vector<4x16x16xf32>
    %74 = arith.mulf %66, %73 : vector<4x16x16xf32>
    %75 = arith.mulf %68, %72 : vector<4x16x1xf32>
    "tpu.trace_start"() <{level = 10 : i32, message = "wpk,wkd->wpd"}> : () -> ()
    %cst_16 = arith.constant dense<0.000000e+00> : vector<4x16x8xf32>
    %76 = tpu.matmul %74, %47, %cst_16 {dimension_numbers = #tpu.dot_dimension_numbers<[2], [1], [1], [2], [0, 0, 0, 1, 1, 2], [0], [0]>} : vector<4x16x16xf32>, vector<4x16x8xf32>, vector<4x16x8xf32> -> vector<4x16x8xf32>
    "tpu.trace_stop"() : () -> ()
    %77 = vector.broadcast %75 : vector<4x16x1xf32> to vector<4x16x8xf32>
    %78 = vector.broadcast %55 : vector<4x1x8xf32> to vector<4x16x8xf32>
    %79 = arith.mulf %77, %78 : vector<4x16x8xf32>
    %80 = arith.addf %76, %79 : vector<4x16x8xf32>
    %81 = vector.extract_strided_slice %3 {offsets = [0, 0, 16], sizes = [4, 16, 8], strides = [1, 1, 1]} : vector<4x16x96xf32> to vector<4x16x8xf32>
    %cst_17 = arith.constant 0.353553385 : f32
    %82 = vector.broadcast %cst_17 : f32 to vector<4x16x8xf32>
    %83 = arith.mulf %81, %82 : vector<4x16x8xf32>
    %84 = vector.extract_strided_slice %3 {offsets = [0, 0, 48], sizes = [4, 16, 8], strides = [1, 1, 1]} : vector<4x16x96xf32> to vector<4x16x8xf32>
    %85 = vector.extract_strided_slice %3 {offsets = [0, 0, 80], sizes = [4, 16, 8], strides = [1, 1, 1]} : vector<4x16x96xf32> to vector<4x16x8xf32>
    %86 = vector.extract_strided_slice %4 {offsets = [0, 48], sizes = [1, 8], strides = [1, 1]} : vector<1x96xf32> to vector<1x8xf32>
    %87 = vector.shape_cast %86 : vector<1x8xf32> to vector<1x1x8xf32>
    %88 = vector.shape_cast %87 : vector<1x1x8xf32> to vector<1x1x8xf32>
    %89 = vector.broadcast %88 : vector<1x1x8xf32> to vector<4x1x8xf32>
    %90 = vector.extract_strided_slice %4 {offsets = [0, 80], sizes = [1, 8], strides = [1, 1]} : vector<1x96xf32> to vector<1x8xf32>
    %91 = vector.shape_cast %90 : vector<1x8xf32> to vector<1x1x8xf32>
    %92 = vector.shape_cast %91 : vector<1x1x8xf32> to vector<1x1x8xf32>
    %93 = vector.broadcast %92 : vector<1x1x8xf32> to vector<4x1x8xf32>
    "tpu.trace_start"() <{level = 10 : i32, message = "wpd,wkd->wpk"}> : () -> ()
    %cst_18 = arith.constant dense<0.000000e+00> : vector<4x16x16xf32>
    %94 = tpu.matmul %83, %84, %cst_18 {dimension_numbers = #tpu.dot_dimension_numbers<[2], [2], [1], [1], [0, 0, 0, 1, 1, 1], [0], [0]>} : vector<4x16x8xf32>, vector<4x16x8xf32>, vector<4x16x16xf32> -> vector<4x16x16xf32>
    "tpu.trace_stop"() : () -> ()
    %95 = vector.broadcast %89 : vector<4x1x8xf32> to vector<4x16x8xf32>
    %96 = arith.mulf %83, %95 : vector<4x16x8xf32>
    %cst_19 = arith.constant dense<0.000000e+00> : vector<4x16xf32>
    %97 = vector.multi_reduction <add>, %96, %cst_19 [2] : vector<4x16x8xf32> to vector<4x16xf32>
    %98 = vector.shape_cast %97 : vector<4x16xf32> to vector<4x16x1xf32>
    %cst_20 = arith.constant dense<0xFF800000> : vector<4x16xf32>
    %99 = vector.multi_reduction <maximumf>, %94, %cst_20 [2] : vector<4x16x16xf32> to vector<4x16xf32>
    %100 = vector.shape_cast %99 : vector<4x16xf32> to vector<4x16x1xf32>
    %101 = arith.maximumf %100, %98 : vector<4x16x1xf32>
    %102 = vector.broadcast %101 : vector<4x16x1xf32> to vector<4x16x16xf32>
    %103 = arith.subf %94, %102 : vector<4x16x16xf32>
    %104 = math.exp %103 : vector<4x16x16xf32>
    %105 = arith.subf %98, %101 : vector<4x16x1xf32>
    %106 = math.exp %105 : vector<4x16x1xf32>
    %cst_21 = arith.constant dense<0.000000e+00> : vector<4x16xf32>
    %107 = vector.multi_reduction <add>, %104, %cst_21 [2] : vector<4x16x16xf32> to vector<4x16xf32>
    %108 = vector.shape_cast %107 : vector<4x16xf32> to vector<4x16x1xf32>
    %109 = arith.addf %108, %106 : vector<4x16x1xf32>
    %110 = tpu.reciprocal %109 {approx = true} : vector<4x16x1xf32> -> vector<4x16x1xf32>
    %111 = vector.broadcast %110 : vector<4x16x1xf32> to vector<4x16x16xf32>
    %112 = arith.mulf %104, %111 : vector<4x16x16xf32>
    %113 = arith.mulf %106, %110 : vector<4x16x1xf32>
    "tpu.trace_start"() <{level = 10 : i32, message = "wpk,wkd->wpd"}> : () -> ()
    %cst_22 = arith.constant dense<0.000000e+00> : vector<4x16x8xf32>
    %114 = tpu.matmul %112, %85, %cst_22 {dimension_numbers = #tpu.dot_dimension_numbers<[2], [1], [1], [2], [0, 0, 0, 1, 1, 2], [0], [0]>} : vector<4x16x16xf32>, vector<4x16x8xf32>, vector<4x16x8xf32> -> vector<4x16x8xf32>
    "tpu.trace_stop"() : () -> ()
    %115 = vector.broadcast %113 : vector<4x16x1xf32> to vector<4x16x8xf32>
    %116 = vector.broadcast %93 : vector<4x1x8xf32> to vector<4x16x8xf32>
    %117 = arith.mulf %115, %116 : vector<4x16x8xf32>
    %118 = arith.addf %114, %117 : vector<4x16x8xf32>
    %119 = vector.extract_strided_slice %3 {offsets = [0, 0, 24], sizes = [4, 16, 8], strides = [1, 1, 1]} : vector<4x16x96xf32> to vector<4x16x8xf32>
    %cst_23 = arith.constant 0.353553385 : f32
    %120 = vector.broadcast %cst_23 : f32 to vector<4x16x8xf32>
    %121 = arith.mulf %119, %120 : vector<4x16x8xf32>
    %122 = vector.extract_strided_slice %3 {offsets = [0, 0, 56], sizes = [4, 16, 8], strides = [1, 1, 1]} : vector<4x16x96xf32> to vector<4x16x8xf32>
    %123 = vector.extract_strided_slice %3 {offsets = [0, 0, 88], sizes = [4, 16, 8], strides = [1, 1, 1]} : vector<4x16x96xf32> to vector<4x16x8xf32>
    %124 = vector.extract_strided_slice %4 {offsets = [0, 56], sizes = [1, 8], strides = [1, 1]} : vector<1x96xf32> to vector<1x8xf32>
    %125 = vector.shape_cast %124 : vector<1x8xf32> to vector<1x1x8xf32>
    %126 = vector.shape_cast %125 : vector<1x1x8xf32> to vector<1x1x8xf32>
    %127 = vector.broadcast %126 : vector<1x1x8xf32> to vector<4x1x8xf32>
    %128 = vector.extract_strided_slice %4 {offsets = [0, 88], sizes = [1, 8], strides = [1, 1]} : vector<1x96xf32> to vector<1x8xf32>
    %129 = vector.shape_cast %128 : vector<1x8xf32> to vector<1x1x8xf32>
    %130 = vector.shape_cast %129 : vector<1x1x8xf32> to vector<1x1x8xf32>
    %131 = vector.broadcast %130 : vector<1x1x8xf32> to vector<4x1x8xf32>
    "tpu.trace_start"() <{level = 10 : i32, message = "wpd,wkd->wpk"}> : () -> ()
    %cst_24 = arith.constant dense<0.000000e+00> : vector<4x16x16xf32>
    %132 = tpu.matmul %121, %122, %cst_24 {dimension_numbers = #tpu.dot_dimension_numbers<[2], [2], [1], [1], [0, 0, 0, 1, 1, 1], [0], [0]>} : vector<4x16x8xf32>, vector<4x16x8xf32>, vector<4x16x16xf32> -> vector<4x16x16xf32>
    "tpu.trace_stop"() : () -> ()
    %133 = vector.broadcast %127 : vector<4x1x8xf32> to vector<4x16x8xf32>
    %134 = arith.mulf %121, %133 : vector<4x16x8xf32>
    %cst_25 = arith.constant dense<0.000000e+00> : vector<4x16xf32>
    %135 = vector.multi_reduction <add>, %134, %cst_25 [2] : vector<4x16x8xf32> to vector<4x16xf32>
    %136 = vector.shape_cast %135 : vector<4x16xf32> to vector<4x16x1xf32>
    %cst_26 = arith.constant dense<0xFF800000> : vector<4x16xf32>
    %137 = vector.multi_reduction <maximumf>, %132, %cst_26 [2] : vector<4x16x16xf32> to vector<4x16xf32>
    %138 = vector.shape_cast %137 : vector<4x16xf32> to vector<4x16x1xf32>
    %139 = arith.maximumf %138, %136 : vector<4x16x1xf32>
    %140 = vector.broadcast %139 : vector<4x16x1xf32> to vector<4x16x16xf32>
    %141 = arith.subf %132, %140 : vector<4x16x16xf32>
    %142 = math.exp %141 : vector<4x16x16xf32>
    %143 = arith.subf %136, %139 : vector<4x16x1xf32>
    %144 = math.exp %143 : vector<4x16x1xf32>
    %cst_27 = arith.constant dense<0.000000e+00> : vector<4x16xf32>
    %145 = vector.multi_reduction <add>, %142, %cst_27 [2] : vector<4x16x16xf32> to vector<4x16xf32>
    %146 = vector.shape_cast %145 : vector<4x16xf32> to vector<4x16x1xf32>
    %147 = arith.addf %146, %144 : vector<4x16x1xf32>
    %148 = tpu.reciprocal %147 {approx = true} : vector<4x16x1xf32> -> vector<4x16x1xf32>
    %149 = vector.broadcast %148 : vector<4x16x1xf32> to vector<4x16x16xf32>
    %150 = arith.mulf %142, %149 : vector<4x16x16xf32>
    %151 = arith.mulf %144, %148 : vector<4x16x1xf32>
    "tpu.trace_start"() <{level = 10 : i32, message = "wpk,wkd->wpd"}> : () -> ()
    %cst_28 = arith.constant dense<0.000000e+00> : vector<4x16x8xf32>
    %152 = tpu.matmul %150, %123, %cst_28 {dimension_numbers = #tpu.dot_dimension_numbers<[2], [1], [1], [2], [0, 0, 0, 1, 1, 2], [0], [0]>} : vector<4x16x16xf32>, vector<4x16x8xf32>, vector<4x16x8xf32> -> vector<4x16x8xf32>
    "tpu.trace_stop"() : () -> ()
    %153 = vector.broadcast %151 : vector<4x16x1xf32> to vector<4x16x8xf32>
    %154 = vector.broadcast %131 : vector<4x1x8xf32> to vector<4x16x8xf32>
    %155 = arith.mulf %153, %154 : vector<4x16x8xf32>
    %156 = arith.addf %152, %155 : vector<4x16x8xf32>
    %157 = tpu.concatenate %42, %80, %118, %156 in 2 : vector<4x16x8xf32>, vector<4x16x8xf32>, vector<4x16x8xf32>, vector<4x16x8xf32> -> vector<4x16x32xf32>
    %c0_29 = arith.constant 0 : index
    %c0_30 = arith.constant 0 : index
    %c0_31 = arith.constant 0 : index
    %c0_32 = arith.constant 0 : index
    %158 = vector.load %arg4[%c0_29, %c0_30, %c0_31, %c0_32] : memref<1x4x16x32xf32, #tpu.memory_space<vmem>>, vector<1x4x16x32xf32>
    %159 = vector.shape_cast %158 : vector<1x4x16x32xf32> to vector<4x16x32xf32>
    %160 = vector.shape_cast %157 : vector<4x16x32xf32> to vector<1x4x16x32xf32>
    tpu.vector_store %arg4[%c0_29, %c0_30, %c0_31, %c0_32], %160 {strides = array<i32>} : memref<1x4x16x32xf32, #tpu.memory_space<vmem>>, vector<1x4x16x32xf32>,
    %161 = vector.extract_strided_slice %1 {offsets = [0, 0], sizes = [1, 8], strides = [1, 1]} : vector<65x96xf32> to vector<1x8xf32>
    %cst_33 = arith.constant 0.353553385 : f32
    %162 = vector.broadcast %cst_33 : f32 to vector<1x8xf32>
    %163 = arith.mulf %161, %162 : vector<1x8xf32>
    %164 = vector.extract_strided_slice %1 {offsets = [0, 32], sizes = [65, 8], strides = [1, 1]} : vector<65x96xf32> to vector<65x8xf32>
    %165 = vector.extract_strided_slice %1 {offsets = [0, 64], sizes = [65, 8], strides = [1, 1]} : vector<65x96xf32> to vector<65x8xf32>
    %166 = vector.broadcast %163 : vector<1x8xf32> to vector<65x8xf32>
    %167 = arith.mulf %164, %166 : vector<65x8xf32>
    %cst_34 = arith.constant dense<0.000000e+00> : vector<65xf32>
    %168 = vector.multi_reduction <add>, %167, %cst_34 [1] : vector<65x8xf32> to vector<65xf32>
    %169 = vector.shape_cast %168 : vector<65xf32> to vector<65x1xf32>
    %cst_35 = arith.constant dense<0xFF800000> : vector<1xf32>
    %170 = vector.multi_reduction <maximumf>, %169, %cst_35 [0] : vector<65x1xf32> to vector<1xf32>
    %171 = vector.shape_cast %170 : vector<1xf32> to vector<1x1xf32>
    %172 = vector.broadcast %171 : vector<1x1xf32> to vector<65x1xf32>
    %173 = arith.subf %169, %172 : vector<65x1xf32>
    %174 = math.exp %173 : vector<65x1xf32>
    %cst_36 = arith.constant dense<0.000000e+00> : vector<1xf32>
    %175 = vector.multi_reduction <add>, %174, %cst_36 [0] : vector<65x1xf32> to vector<1xf32>
    %176 = vector.shape_cast %175 : vector<1xf32> to vector<1x1xf32>
    %177 = tpu.reciprocal %176 {approx = true} : vector<1x1xf32> -> vector<1x1xf32>
    %178 = vector.broadcast %177 : vector<1x1xf32> to vector<65x1xf32>
    %179 = arith.mulf %174, %178 : vector<65x1xf32>
    %180 = vector.broadcast %179 : vector<65x1xf32> to vector<65x8xf32>
    %181 = arith.mulf %180, %165 : vector<65x8xf32>
    %cst_37 = arith.constant dense<0.000000e+00> : vector<8xf32>
    %182 = vector.multi_reduction <add>, %181, %cst_37 [0] : vector<65x8xf32> to vector<8xf32>
    %183 = vector.shape_cast %182 : vector<8xf32> to vector<1x8xf32>
    %184 = vector.extract_strided_slice %1 {offsets = [0, 8], sizes = [1, 8], strides = [1, 1]} : vector<65x96xf32> to vector<1x8xf32>
    %cst_38 = arith.constant 0.353553385 : f32
    %185 = vector.broadcast %cst_38 : f32 to vector<1x8xf32>
    %186 = arith.mulf %184, %185 : vector<1x8xf32>
    %187 = vector.extract_strided_slice %1 {offsets = [0, 40], sizes = [65, 8], strides = [1, 1]} : vector<65x96xf32> to vector<65x8xf32>
    %188 = vector.extract_strided_slice %1 {offsets = [0, 72], sizes = [65, 8], strides = [1, 1]} : vector<65x96xf32> to vector<65x8xf32>
    %189 = vector.broadcast %186 : vector<1x8xf32> to vector<65x8xf32>
    %190 = arith.mulf %187, %189 : vector<65x8xf32>
    %cst_39 = arith.constant dense<0.000000e+00> : vector<65xf32>
    %191 = vector.multi_reduction <add>, %190, %cst_39 [1] : vector<65x8xf32> to vector<65xf32>
    %192 = vector.shape_cast %191 : vector<65xf32> to vector<65x1xf32>
    %cst_40 = arith.constant dense<0xFF800000> : vector<1xf32>
    %193 = vector.multi_reduction <maximumf>, %192, %cst_40 [0] : vector<65x1xf32> to vector<1xf32>
    %194 = vector.shape_cast %193 : vector<1xf32> to vector<1x1xf32>
    %195 = vector.broadcast %194 : vector<1x1xf32> to vector<65x1xf32>
    %196 = arith.subf %192, %195 : vector<65x1xf32>
    %197 = math.exp %196 : vector<65x1xf32>
    %cst_41 = arith.constant dense<0.000000e+00> : vector<1xf32>
    %198 = vector.multi_reduction <add>, %197, %cst_41 [0] : vector<65x1xf32> to vector<1xf32>
    %199 = vector.shape_cast %198 : vector<1xf32> to vector<1x1xf32>
    %200 = tpu.reciprocal %199 {approx = true} : vector<1x1xf32> -> vector<1x1xf32>
    %201 = vector.broadcast %200 : vector<1x1xf32> to vector<65x1xf32>
    %202 = arith.mulf %197, %201 : vector<65x1xf32>
    %203 = vector.broadcast %202 : vector<65x1xf32> to vector<65x8xf32>
    %204 = arith.mulf %203, %188 : vector<65x8xf32>
    %cst_42 = arith.constant dense<0.000000e+00> : vector<8xf32>
    %205 = vector.multi_reduction <add>, %204, %cst_42 [0] : vector<65x8xf32> to vector<8xf32>
    %206 = vector.shape_cast %205 : vector<8xf32> to vector<1x8xf32>
    %207 = vector.extract_strided_slice %1 {offsets = [0, 16], sizes = [1, 8], strides = [1, 1]} : vector<65x96xf32> to vector<1x8xf32>
    %cst_43 = arith.constant 0.353553385 : f32
    %208 = vector.broadcast %cst_43 : f32 to vector<1x8xf32>
    %209 = arith.mulf %207, %208 : vector<1x8xf32>
    %210 = vector.extract_strided_slice %1 {offsets = [0, 48], sizes = [65, 8], strides = [1, 1]} : vector<65x96xf32> to vector<65x8xf32>
    %211 = vector.extract_strided_slice %1 {offsets = [0, 80], sizes = [65, 8], strides = [1, 1]} : vector<65x96xf32> to vector<65x8xf32>
    %212 = vector.broadcast %209 : vector<1x8xf32> to vector<65x8xf32>
    %213 = arith.mulf %210, %212 : vector<65x8xf32>
    %cst_44 = arith.constant dense<0.000000e+00> : vector<65xf32>
    %214 = vector.multi_reduction <add>, %213, %cst_44 [1] : vector<65x8xf32> to vector<65xf32>
    %215 = vector.shape_cast %214 : vector<65xf32> to vector<65x1xf32>
    %cst_45 = arith.constant dense<0xFF800000> : vector<1xf32>
    %216 = vector.multi_reduction <maximumf>, %215, %cst_45 [0] : vector<65x1xf32> to vector<1xf32>
    %217 = vector.shape_cast %216 : vector<1xf32> to vector<1x1xf32>
    %218 = vector.broadcast %217 : vector<1x1xf32> to vector<65x1xf32>
    %219 = arith.subf %215, %218 : vector<65x1xf32>
    %220 = math.exp %219 : vector<65x1xf32>
    %cst_46 = arith.constant dense<0.000000e+00> : vector<1xf32>
    %221 = vector.multi_reduction <add>, %220, %cst_46 [0] : vector<65x1xf32> to vector<1xf32>
    %222 = vector.shape_cast %221 : vector<1xf32> to vector<1x1xf32>
    %223 = tpu.reciprocal %222 {approx = true} : vector<1x1xf32> -> vector<1x1xf32>
    %224 = vector.broadcast %223 : vector<1x1xf32> to vector<65x1xf32>
    %225 = arith.mulf %220, %224 : vector<65x1xf32>
    %226 = vector.broadcast %225 : vector<65x1xf32> to vector<65x8xf32>
    %227 = arith.mulf %226, %211 : vector<65x8xf32>
    %cst_47 = arith.constant dense<0.000000e+00> : vector<8xf32>
    %228 = vector.multi_reduction <add>, %227, %cst_47 [0] : vector<65x8xf32> to vector<8xf32>
    %229 = vector.shape_cast %228 : vector<8xf32> to vector<1x8xf32>
    %230 = vector.extract_strided_slice %1 {offsets = [0, 24], sizes = [1, 8], strides = [1, 1]} : vector<65x96xf32> to vector<1x8xf32>
    %cst_48 = arith.constant 0.353553385 : f32
    %231 = vector.broadcast %cst_48 : f32 to vector<1x8xf32>
    %232 = arith.mulf %230, %231 : vector<1x8xf32>
    %233 = vector.extract_strided_slice %1 {offsets = [0, 56], sizes = [65, 8], strides = [1, 1]} : vector<65x96xf32> to vector<65x8xf32>
    %234 = vector.extract_strided_slice %1 {offsets = [0, 88], sizes = [65, 8], strides = [1, 1]} : vector<65x96xf32> to vector<65x8xf32>
    %235 = vector.broadcast %232 : vector<1x8xf32> to vector<65x8xf32>
    %236 = arith.mulf %233, %235 : vector<65x8xf32>
    %cst_49 = arith.constant dense<0.000000e+00> : vector<65xf32>
    %237 = vector.multi_reduction <add>, %236, %cst_49 [1] : vector<65x8xf32> to vector<65xf32>
    %238 = vector.shape_cast %237 : vector<65xf32> to vector<65x1xf32>
    %cst_50 = arith.constant dense<0xFF800000> : vector<1xf32>
    %239 = vector.multi_reduction <maximumf>, %238, %cst_50 [0] : vector<65x1xf32> to vector<1xf32>
    %240 = vector.shape_cast %239 : vector<1xf32> to vector<1x1xf32>
    %241 = vector.broadcast %240 : vector<1x1xf32> to vector<65x1xf32>
    %242 = arith.subf %238, %241 : vector<65x1xf32>
    %243 = math.exp %242 : vector<65x1xf32>
    %cst_51 = arith.constant dense<0.000000e+00> : vector<1xf32>
    %244 = vector.multi_reduction <add>, %243, %cst_51 [0] : vector<65x1xf32> to vector<1xf32>
    %245 = vector.shape_cast %244 : vector<1xf32> to vector<1x1xf32>
    %246 = tpu.reciprocal %245 {approx = true} : vector<1x1xf32> -> vector<1x1xf32>
    %247 = vector.broadcast %246 : vector<1x1xf32> to vector<65x1xf32>
    %248 = arith.mulf %243, %247 : vector<65x1xf32>
    %249 = vector.broadcast %248 : vector<65x1xf32> to vector<65x8xf32>
    %250 = arith.mulf %249, %234 : vector<65x8xf32>
    %cst_52 = arith.constant dense<0.000000e+00> : vector<8xf32>
    %251 = vector.multi_reduction <add>, %250, %cst_52 [0] : vector<65x8xf32> to vector<8xf32>
    %252 = vector.shape_cast %251 : vector<8xf32> to vector<1x8xf32>
    %253 = tpu.concatenate %183, %206, %229, %252 in 1 : vector<1x8xf32>, vector<1x8xf32>, vector<1x8xf32>, vector<1x8xf32> -> vector<1x32xf32>
    %c0_53 = arith.constant 0 : index
    %c0_54 = arith.constant 0 : index
    %c0_55 = arith.constant 0 : index
    %254 = vector.load %arg5[%c0_53, %c0_54, %c0_55] : memref<1x1x32xf32, #tpu.memory_space<vmem>>, vector<1x1x32xf32>
    %255 = vector.shape_cast %254 : vector<1x1x32xf32> to vector<1x32xf32>
    %256 = vector.shape_cast %253 : vector<1x32xf32> to vector<1x1x32xf32>
    tpu.vector_store %arg5[%c0_53, %c0_54, %c0_55], %256 {strides = array<i32>} : memref<1x1x32xf32, #tpu.memory_space<vmem>>, vector<1x1x32xf32>,
    return
  }
  func.func @transform_0(%arg0: i32) -> (i32, i32, i32) {
    %c0_i32 = arith.constant 0 : i32
    %c0_i32_0 = arith.constant 0 : i32
    %c0_i32_1 = arith.constant 0 : i32
    return %arg0, %c0_i32, %c0_i32_0 : i32, i32, i32
  }
  func.func @transform_1(%arg0: i32) -> (i32, i32, i32, i32) {
    %c0_i32 = arith.constant 0 : i32
    %c0_i32_0 = arith.constant 0 : i32
    %c0_i32_1 = arith.constant 0 : i32
    %c0_i32_2 = arith.constant 0 : i32
    return %arg0, %c0_i32, %c0_i32_0, %c0_i32_1 : i32, i32, i32, i32
  }
  func.func @transform_2(%arg0: i32) -> (i32, i32, i32) {
    %c0_i32 = arith.constant 0 : i32
    %c0_i32_0 = arith.constant 0 : i32
    %c0_i32_1 = arith.constant 0 : i32
    %c0_i32_2 = arith.constant 0 : i32
    return %c0_i32, %c0_i32_0, %c0_i32_1 : i32, i32, i32
  }
  func.func @transform_3(%arg0: i32) -> (i32, i32, i32, i32) {
    %c0_i32 = arith.constant 0 : i32
    %c0_i32_0 = arith.constant 0 : i32
    %c0_i32_1 = arith.constant 0 : i32
    %c0_i32_2 = arith.constant 0 : i32
    return %arg0, %c0_i32, %c0_i32_0, %c0_i32_1 : i32, i32, i32, i32
  }
  func.func @transform_4(%arg0: i32) -> (i32, i32, i32) {
    %c0_i32 = arith.constant 0 : i32
    %c0_i32_0 = arith.constant 0 : i32
    %c0_i32_1 = arith.constant 0 : i32
    return %arg0, %c0_i32, %c0_i32_0 : i32, i32, i32
  }
}

module attributes {stable_mosaic.version = 11 : i64} {
  func.func @_tail_kernel(%arg0: i32, %arg1: memref<136x32xf32, #tpu.memory_space<vmem>>, %arg2: memref<136x32xf32, #tpu.memory_space<vmem>>, %arg3: memref<32x32xf32, #tpu.memory_space<vmem>>, %arg4: memref<1x32xf32, #tpu.memory_space<vmem>>, %arg5: memref<1x32xf32, #tpu.memory_space<vmem>>, %arg6: memref<1x32xf32, #tpu.memory_space<vmem>>, %arg7: memref<32x128xf32, #tpu.memory_space<vmem>>, %arg8: memref<1x128xf32, #tpu.memory_space<vmem>>, %arg9: memref<128x32xf32, #tpu.memory_space<vmem>>, %arg10: memref<1x32xf32, #tpu.memory_space<vmem>>, %arg11: memref<136x32xf32, #tpu.memory_space<vmem>>) attributes {dimension_semantics = [#tpu.dimension_semantics<parallel>], iteration_bounds = array<i64: 1>, scalar_prefetch = 0 : i64, scratch_operands = 0 : i64, tpu.core_type = #tpu.core_type<tc>, window_params = [{transform_indices = @transform_0, window_bounds = array<i64: 136, 32>}, {transform_indices = @transform_1, window_bounds = array<i64: 136, 32>}, {pipeline_mode = #tpu.pipeline_mode<synchronous>, transform_indices = @transform_2, window_bounds = array<i64: 32, 32>}, {pipeline_mode = #tpu.pipeline_mode<synchronous>, transform_indices = @transform_3, window_bounds = array<i64: 1, 32>}, {pipeline_mode = #tpu.pipeline_mode<synchronous>, transform_indices = @transform_4, window_bounds = array<i64: 1, 32>}, {pipeline_mode = #tpu.pipeline_mode<synchronous>, transform_indices = @transform_5, window_bounds = array<i64: 1, 32>}, {pipeline_mode = #tpu.pipeline_mode<synchronous>, transform_indices = @transform_6, window_bounds = array<i64: 32, 128>}, {pipeline_mode = #tpu.pipeline_mode<synchronous>, transform_indices = @transform_7, window_bounds = array<i64: 1, 128>}, {pipeline_mode = #tpu.pipeline_mode<synchronous>, transform_indices = @transform_8, window_bounds = array<i64: 128, 32>}, {pipeline_mode = #tpu.pipeline_mode<synchronous>, transform_indices = @transform_9, window_bounds = array<i64: 1, 32>}, {transform_indices = @transform_10, window_bounds = array<i64: 136, 32>}]} {
    %c0 = arith.constant 0 : index
    %c0_0 = arith.constant 0 : index
    %0 = vector.load %arg2[%c0, %c0_0] : memref<136x32xf32, #tpu.memory_space<vmem>>, vector<136x32xf32>
    %c0_1 = arith.constant 0 : index
    %c0_2 = arith.constant 0 : index
    %1 = vector.load %arg1[%c0_1, %c0_2] : memref<136x32xf32, #tpu.memory_space<vmem>>, vector<136x32xf32>
    %c0_3 = arith.constant 0 : index
    %c0_4 = arith.constant 0 : index
    %2 = vector.load %arg3[%c0_3, %c0_4] : memref<32x32xf32, #tpu.memory_space<vmem>>, vector<32x32xf32>
    %cst = arith.constant dense<0.000000e+00> : vector<136x32xf32>
    %3 = tpu.matmul %1, %2, %cst {dimension_numbers = #tpu.dot_dimension_numbers<[1], [0], [0], [1], [0, 0, 1, 1], [], []>} : vector<136x32xf32>, vector<32x32xf32>, vector<136x32xf32> -> vector<136x32xf32>
    %4 = arith.addf %0, %3 : vector<136x32xf32>
    %c0_5 = arith.constant 0 : index
    %c0_6 = arith.constant 0 : index
    %5 = vector.load %arg4[%c0_5, %c0_6] : memref<1x32xf32, #tpu.memory_space<vmem>>, vector<1x32xf32>
    %6 = vector.broadcast %5 : vector<1x32xf32> to vector<136x32xf32>
    %7 = arith.addf %4, %6 : vector<136x32xf32>
    %cst_7 = arith.constant dense<0.000000e+00> : vector<136xf32>
    %8 = vector.multi_reduction <add>, %7, %cst_7 [1] : vector<136x32xf32> to vector<136xf32>
    %9 = vector.shape_cast %8 : vector<136xf32> to vector<136x1xf32>
    %cst_8 = arith.constant 3.200000e+01 : f32
    %10 = vector.broadcast %cst_8 : f32 to vector<136x1xf32>
    %11 = arith.divf %9, %10 : vector<136x1xf32>
    %12 = vector.broadcast %11 : vector<136x1xf32> to vector<136x32xf32>
    %13 = arith.subf %7, %12 : vector<136x32xf32>
    %14 = arith.mulf %13, %13 : vector<136x32xf32>
    %cst_9 = arith.constant dense<0.000000e+00> : vector<136xf32>
    %15 = vector.multi_reduction <add>, %14, %cst_9 [1] : vector<136x32xf32> to vector<136xf32>
    %16 = vector.shape_cast %15 : vector<136xf32> to vector<136x1xf32>
    %cst_10 = arith.constant 3.200000e+01 : f32
    %17 = vector.broadcast %cst_10 : f32 to vector<136x1xf32>
    %18 = arith.divf %16, %17 : vector<136x1xf32>
    %19 = vector.broadcast %11 : vector<136x1xf32> to vector<136x32xf32>
    %20 = arith.subf %7, %19 : vector<136x32xf32>
    %cst_11 = arith.constant 9.99999974E-6 : f32
    %21 = vector.broadcast %cst_11 : f32 to vector<136x1xf32>
    %22 = arith.addf %18, %21 : vector<136x1xf32>
    %23 = math.rsqrt %22 : vector<136x1xf32>
    %24 = vector.broadcast %23 : vector<136x1xf32> to vector<136x32xf32>
    %25 = arith.mulf %20, %24 : vector<136x32xf32>
    %c0_12 = arith.constant 0 : index
    %c0_13 = arith.constant 0 : index
    %26 = vector.load %arg5[%c0_12, %c0_13] : memref<1x32xf32, #tpu.memory_space<vmem>>, vector<1x32xf32>
    %27 = vector.broadcast %26 : vector<1x32xf32> to vector<136x32xf32>
    %28 = arith.mulf %25, %27 : vector<136x32xf32>
    %c0_14 = arith.constant 0 : index
    %c0_15 = arith.constant 0 : index
    %29 = vector.load %arg6[%c0_14, %c0_15] : memref<1x32xf32, #tpu.memory_space<vmem>>, vector<1x32xf32>
    %30 = vector.broadcast %29 : vector<1x32xf32> to vector<136x32xf32>
    %31 = arith.addf %28, %30 : vector<136x32xf32>
    %c0_16 = arith.constant 0 : index
    %c0_17 = arith.constant 0 : index
    %32 = vector.load %arg7[%c0_16, %c0_17] : memref<32x128xf32, #tpu.memory_space<vmem>>, vector<32x128xf32>
    %cst_18 = arith.constant dense<0.000000e+00> : vector<136x128xf32>
    %33 = tpu.matmul %31, %32, %cst_18 {dimension_numbers = #tpu.dot_dimension_numbers<[1], [0], [0], [1], [0, 0, 1, 1], [], []>} : vector<136x32xf32>, vector<32x128xf32>, vector<136x128xf32> -> vector<136x128xf32>
    %c0_19 = arith.constant 0 : index
    %c0_20 = arith.constant 0 : index
    %34 = vector.load %arg8[%c0_19, %c0_20] : memref<1x128xf32, #tpu.memory_space<vmem>>, vector<1x128xf32>
    %35 = vector.broadcast %34 : vector<1x128xf32> to vector<136x128xf32>
    %36 = arith.addf %33, %35 : vector<136x128xf32>
    %cst_21 = arith.constant 5.000000e-01 : f32
    %37 = vector.broadcast %cst_21 : f32 to vector<136x128xf32>
    %38 = arith.mulf %37, %36 : vector<136x128xf32>
    %cst_22 = arith.constant 0.707106769 : f32
    %39 = vector.broadcast %cst_22 : f32 to vector<136x128xf32>
    %40 = arith.mulf %36, %39 : vector<136x128xf32>
    %41 = math.erf %40 : vector<136x128xf32>
    %cst_23 = arith.constant 1.000000e+00 : f32
    %42 = vector.broadcast %cst_23 : f32 to vector<136x128xf32>
    %43 = arith.addf %42, %41 : vector<136x128xf32>
    %44 = arith.mulf %38, %43 : vector<136x128xf32>
    %c0_24 = arith.constant 0 : index
    %c0_25 = arith.constant 0 : index
    %45 = vector.load %arg9[%c0_24, %c0_25] : memref<128x32xf32, #tpu.memory_space<vmem>>, vector<128x32xf32>
    %cst_26 = arith.constant dense<0.000000e+00> : vector<136x32xf32>
    %46 = tpu.matmul %44, %45, %cst_26 {dimension_numbers = #tpu.dot_dimension_numbers<[1], [0], [0], [1], [0, 0, 1, 1], [], []>} : vector<136x128xf32>, vector<128x32xf32>, vector<136x32xf32> -> vector<136x32xf32>
    %47 = arith.addf %7, %46 : vector<136x32xf32>
    %c0_27 = arith.constant 0 : index
    %c0_28 = arith.constant 0 : index
    %48 = vector.load %arg10[%c0_27, %c0_28] : memref<1x32xf32, #tpu.memory_space<vmem>>, vector<1x32xf32>
    %49 = vector.broadcast %48 : vector<1x32xf32> to vector<136x32xf32>
    %50 = arith.addf %47, %49 : vector<136x32xf32>
    %c0_29 = arith.constant 0 : index
    %c0_30 = arith.constant 0 : index
    %51 = vector.load %arg11[%c0_29, %c0_30] : memref<136x32xf32, #tpu.memory_space<vmem>>, vector<136x32xf32>
    tpu.vector_store %arg11[%c0_29, %c0_30], %50 {strides = array<i32>} : memref<136x32xf32, #tpu.memory_space<vmem>>, vector<136x32xf32>,
    return
  }
  func.func @transform_0(%arg0: i32) -> (i32, i32) {
    %c0_i32 = arith.constant 0 : i32
    %c0_i32_0 = arith.constant 0 : i32
    return %arg0, %c0_i32 : i32, i32
  }
  func.func @transform_1(%arg0: i32) -> (i32, i32) {
    %c0_i32 = arith.constant 0 : i32
    %c0_i32_0 = arith.constant 0 : i32
    return %arg0, %c0_i32 : i32, i32
  }
  func.func @transform_2(%arg0: i32) -> (i32, i32) {
    %c0_i32 = arith.constant 0 : i32
    %c0_i32_0 = arith.constant 0 : i32
    %c0_i32_1 = arith.constant 0 : i32
    return %c0_i32, %c0_i32_0 : i32, i32
  }
  func.func @transform_3(%arg0: i32) -> (i32, i32) {
    %c0_i32 = arith.constant 0 : i32
    %c0_i32_0 = arith.constant 0 : i32
    %c0_i32_1 = arith.constant 0 : i32
    return %c0_i32, %c0_i32_0 : i32, i32
  }
  func.func @transform_4(%arg0: i32) -> (i32, i32) {
    %c0_i32 = arith.constant 0 : i32
    %c0_i32_0 = arith.constant 0 : i32
    %c0_i32_1 = arith.constant 0 : i32
    return %c0_i32, %c0_i32_0 : i32, i32
  }
  func.func @transform_5(%arg0: i32) -> (i32, i32) {
    %c0_i32 = arith.constant 0 : i32
    %c0_i32_0 = arith.constant 0 : i32
    %c0_i32_1 = arith.constant 0 : i32
    return %c0_i32, %c0_i32_0 : i32, i32
  }
  func.func @transform_6(%arg0: i32) -> (i32, i32) {
    %c0_i32 = arith.constant 0 : i32
    %c0_i32_0 = arith.constant 0 : i32
    %c0_i32_1 = arith.constant 0 : i32
    return %c0_i32, %c0_i32_0 : i32, i32
  }
  func.func @transform_7(%arg0: i32) -> (i32, i32) {
    %c0_i32 = arith.constant 0 : i32
    %c0_i32_0 = arith.constant 0 : i32
    %c0_i32_1 = arith.constant 0 : i32
    return %c0_i32, %c0_i32_0 : i32, i32
  }
  func.func @transform_8(%arg0: i32) -> (i32, i32) {
    %c0_i32 = arith.constant 0 : i32
    %c0_i32_0 = arith.constant 0 : i32
    %c0_i32_1 = arith.constant 0 : i32
    return %c0_i32, %c0_i32_0 : i32, i32
  }
  func.func @transform_9(%arg0: i32) -> (i32, i32) {
    %c0_i32 = arith.constant 0 : i32
    %c0_i32_0 = arith.constant 0 : i32
    %c0_i32_1 = arith.constant 0 : i32
    return %c0_i32, %c0_i32_0 : i32, i32
  }
  func.func @transform_10(%arg0: i32) -> (i32, i32) {
    %c0_i32 = arith.constant 0 : i32
    %c0_i32_0 = arith.constant 0 : i32
    return %arg0, %c0_i32 : i32, i32
  }
}

</mosaic_0001>

<bundles_post_ra>
// kernel: swin_block_forward.3
= control target key start
LH: loop header
LB: loop body
LE: loop exit
PB: predicated region body
PF: predicated region fallthrough
CT: control target
= control target key end

     0   :  { %vm37_vm0 = vcmask 261120   ;;  %vm687_vm1 = vmmov 0   ;;  %vm520_vm2 = vcmask 785408   ;;  %s1145_s0 = inlined_call_operand.vmem [shape: f32[136,32], index: 0, kind: input, shape index: {}]   ;;  %s1146_s3 = inlined_call_operand.vmem [shape: f32[32,96], index: 3, kind: input, shape index: {}]   ;;  %s1147_s1 = inlined_call_operand.vmem [shape: f32[1,32], index: 1, kind: input, shape index: {}]   ;;  %s1148_s2 = inlined_call_operand.vmem [shape: f32[1,32], index: 2, kind: input, shape index: {}]   ;;  %s1149_s4 = inlined_call_operand.vmem [shape: f32[1,96], index: 4, kind: input, shape index: {}]   ;;  %s1150_s5 = inlined_call_operand.vmem [shape: f32[136,96], index: 5, kind: output, shape index: {}]  }
   0x1   :  { %v20_v0 = vld [vmem:[%s1145_s0] sm:$0xff]  ;;  %v29_v1 = vld [vmem:[%s1145_s0 + $0x48] sm:$0xff]  ;;  %v22_v5 = vld [vmem:[%s1145_s0 + $0x10] sm:$0xff] }
   0x2   :  { %v21_v2 = vld [vmem:[%s1145_s0 + $0x8] sm:$0xff]  ;;  %v38_v3 = vsel %vm37_vm0, %v20_v0, 0.0  ;;  %v65_v4 = vsel %vm37_vm0, %v29_v1, 0.0  ;;  %v44_v7 = vsel %vm37_vm0, %v22_v5, 0.0  ;;  %v737_v8 = vld [vmem:[%s1145_s0 + $0x50] sm:$0xff]  ;;  %v742_v9 = vld [vmem:[%s1145_s0 + $0x18] sm:$0xff] }
   0x3   :  { %39 = vadd.xlane.f32.xlu0 %v38_v3  ;;  %66 = vadd.xlane.f32.xlu1 %v65_v4  ;;  %v41_v6 = vsel %vm37_vm0, %v21_v2, 0.0  ;;  %v68_v10 = vsel %vm37_vm0, %v737_v8, 0.0  ;;  %v47_v11 = vsel %vm37_vm0, %v742_v9, 0.0  ;;  %v751_v12 = vld [vmem:[%s1145_s0 + $0x58] sm:$0xff]  ;;  %v756_v13 = vld [vmem:[%s1145_s0 + $0x20] sm:$0xff]  ;;  %v770_v17 = vld [vmem:[%s1145_s0 + $0x28] sm:$0xff] }
   0x4   :  { %v71_v14 = vsel %vm37_vm0, %v751_v12, 0.0  ;;  %v50_v15 = vsel %vm37_vm0, %v756_v13, 0.0  ;;  %v765_v16 = vld [vmem:[%s1145_s0 + $0x60] sm:$0xff]  ;;  %v53_v19 = vsel %vm37_vm0, %v770_v17, 0.0  ;;  %v779_v20 = vld [vmem:[%s1145_s0 + $0x68] sm:$0xff]  ;;  %v784_v21 = vld [vmem:[%s1145_s0 + $0x30] sm:$0xff] }
   0x5   :  { %v74_v18 = vsel %vm37_vm0, %v765_v16, 0.0  ;;  %v77_v22 = vsel %vm37_vm0, %v779_v20, 0.0  ;;  %v56_v23 = vsel %vm37_vm0, %v784_v21, 0.0  ;;  %v793_v24 = vld [vmem:[%s1145_s0 + $0x70] sm:$0xff]  ;;  %v798_v25 = vld [vmem:[%s1145_s0 + $0x38] sm:$0xff]  ;;  %v812_v29 = vld [vmem:[%s1145_s0 + $0x40] sm:$0xff] }
   0x6   :  { %v80_v26 = vsel %vm37_vm0, %v793_v24, 0.0  ;;  %v59_v27 = vsel %vm37_vm0, %v798_v25, 0.0  ;;  %v807_v28 = vld [vmem:[%s1145_s0 + $0x78] sm:$0xff]  ;;  %v62_v31 = vsel %vm37_vm0, %v812_v29, 0.0  ;;  %v821_v32 = vld [vmem:[%s1145_s0 + $0x80] sm:$0xff] }
   0x7   :  { %42 = vadd.xlane.f32.xlu0 %v41_v6  ;;  %45 = vadd.xlane.f32.xlu1 %v44_v7  ;;  %v83_v30 = vsel %vm37_vm0, %v807_v28, 0.0  ;;  %v86_v33 = vsel %vm37_vm0, %v821_v32, 0.0 }
   0xb   :  { %69 = vadd.xlane.f32.xlu0 %v68_v10  ;;  %48 = vadd.xlane.f32.xlu1 %v47_v11 }
   0xf   :  { %72 = vadd.xlane.f32.xlu0 %v71_v14  ;;  %51 = vadd.xlane.f32.xlu1 %v50_v15 }
  0x13   :  { %75 = vadd.xlane.f32.xlu0 %v74_v18  ;;  %54 = vadd.xlane.f32.xlu1 %v53_v19 }
  0x17   :  { %78 = vadd.xlane.f32.xlu0 %v77_v22  ;;  %57 = vadd.xlane.f32.xlu1 %v56_v23 }
  0x1b   :  { %81 = vadd.xlane.f32.xlu0 %v80_v26  ;;  %60 = vadd.xlane.f32.xlu1 %v59_v27 }
  0x1f   :  { %84 = vadd.xlane.f32.xlu0 %v83_v30  ;;  %63 = vadd.xlane.f32.xlu1 %v62_v31 }
  0x23   :  { %87 = vadd.xlane.f32.xlu0 %v86_v33 }
  0x8c   :  { %v40_v34 = vpop.xlane.xlu0 %39  ;;  %v67_v35 = vpop.xlane.xlu1 %66 }
  0x8d   :  { %v90_v36 = vmul.f32 0.03125, %v40_v34  ;;  %v99_v37 = vmul.f32 0.03125, %v67_v35 }
  0x8f   :  { %v825_v38 = vsub.f32 %v20_v0, %v90_v36  ;;  %v827_v39 = vsub.f32 %v29_v1, %v99_v37 }
  0x90   :  { %v43_v40 = vpop.xlane.xlu0 %42  ;;  %v46_v41 = vpop.xlane.xlu1 %45 }
  0x91   :  { %v91_v42 = vmul.f32 0.03125, %v43_v40  ;;  %v92_v43 = vmul.f32 0.03125, %v46_v41  ;;  %v124_v44 = vmul.f32 %v825_v38, %v825_v38  ;;  %v133_v45 = vmul.f32 %v827_v39, %v827_v39 }
  0x93   :  { %v833_v46 = vsub.f32 %v21_v2, %v91_v42  ;;  %v835_v47 = vsub.f32 %v22_v5, %v92_v43  ;;  %v141_v48 = vsel %vm37_vm0, %v124_v44, 0.0  ;;  %v168_v51 = vsel %vm37_vm0, %v133_v45, 0.0 }
  0x94   :  { %142 = vadd.xlane.f32.xlu1 %v141_v48  ;;  %v70_v49 = vpop.xlane.xlu0 %69  ;;  %v49_v50 = vpop.xlane.xlu1 %48 }
  0x95   :  { %v100_v52 = vmul.f32 0.03125, %v70_v49  ;;  %v93_v53 = vmul.f32 0.03125, %v49_v50  ;;  %v125_v54 = vmul.f32 %v833_v46, %v833_v46  ;;  %v126_v55 = vmul.f32 %v835_v47, %v835_v47 }
  0x97   :  { %v844_v56 = vsub.f32 %v737_v8, %v100_v52  ;;  %v847_v57 = vsub.f32 %v742_v9, %v93_v53  ;;  %v144_v58 = vsel %vm37_vm0, %v125_v54, 0.0  ;;  %v147_v61 = vsel %vm37_vm0, %v126_v55, 0.0 }
  0x98   :  { %169 = vadd.xlane.f32.xlu1 %v168_v51  ;;  %145 = vadd.xlane.f32.xlu0 %v144_v58  ;;  %v73_v59 = vpop.xlane.xlu0 %72  ;;  %v52_v60 = vpop.xlane.xlu1 %51 }
  0x99   :  { %v101_v62 = vmul.f32 0.03125, %v73_v59  ;;  %v94_v63 = vmul.f32 0.03125, %v52_v60  ;;  %v134_v0 = vmul.f32 %v844_v56, %v844_v56  ;;  %v127_v1 = vmul.f32 %v847_v57, %v847_v57  ;;  %v311_v60 = vld [vmem:[%s1146_s3 + $0x18] sm:$0xff] }
  0x9a   :  { %v686_v59 = vmov 0.0  }
  0x9b   :  { %v856_v2 = vsub.f32 %v751_v12, %v101_v62  ;;  %v859_v3 = vsub.f32 %v756_v13, %v94_v63  ;;  %v171_v4 = vsel %vm37_vm0, %v134_v0, 0.0  ;;  %v150_v7 = vsel %vm37_vm0, %v127_v1, 0.0  ;;  %583 = vmatprep.subr.mxu0 %v686_v59  ;;  %642 = vmatprep.subr.mxu1 %v686_v59  ;;  %v309_v0 = vld [vmem:[%s1146_s3 + $0x8] sm:$0xff]  ;;  %v308_v1 = vld [vmem:[%s1146_s3] sm:$0xff] }
  0x9c   :  { %148 = vadd.xlane.f32.xlu0 %v147_v61  ;;  %172 = vadd.xlane.f32.xlu1 %v171_v4  ;;  %v76_v5 = vpop.xlane.xlu0 %75  ;;  %v55_v6 = vpop.xlane.xlu1 %54 }
  0x9d   :  { %v102_v8 = vmul.f32 0.03125, %v76_v5  ;;  %v95_v9 = vmul.f32 0.03125, %v55_v6  ;;  %v135_v10 = vmul.f32 %v856_v2, %v856_v2  ;;  %v128_v11 = vmul.f32 %v859_v3, %v859_v3  ;;  %584 = vmatpush3.msra.mxu0 %v311_v60  ;;  %646 = vmatpush3.msra.mxu1 %v311_v60 }
  0x9e   :  { %585 = vmatprep.subr.mxu0 %v686_v59  ;;  %643 = vmatprep.subr.mxu1 %v686_v59 }
  0x9f   :  { %v868_v12 = vsub.f32 %v765_v16, %v102_v8  ;;  %v871_v13 = vsub.f32 %v770_v17, %v95_v9  ;;  %v174_v14 = vsel %vm37_vm0, %v135_v10, 0.0  ;;  %v153_v19 = vsel %vm37_vm0, %v128_v11, 0.0  ;;  %591 = vmatprep.mubr.msk.f32.mxu0 %vm687_vm1, %v686_v59  ;;  %618 = vmatprep.mubr.msk.f32.mxu1 %vm687_vm1, %v686_v59 }
  0xa0   :  { %151 = vadd.xlane.f32.xlu0 %v150_v7  ;;  %175 = vadd.xlane.f32.xlu1 %v174_v14  ;;  %v79_v15 = vpop.xlane.xlu0 %78  ;;  %v58_v18 = vpop.xlane.xlu1 %57 }
  0xa1   :  { %v103_v22 = vmul.f32 0.03125, %v79_v15  ;;  %v96_v23 = vmul.f32 0.03125, %v58_v18  ;;  %v136_v26 = vmul.f32 %v868_v12, %v868_v12  ;;  %v129_v16 = vmul.f32 %v871_v13, %v871_v13 }
  0xa3   :  { %v880_v27 = vsub.f32 %v779_v20, %v103_v22  ;;  %v883_v17 = vsub.f32 %v784_v21, %v96_v23  ;;  %v177_v30 = vsel %vm37_vm0, %v136_v26, 0.0  ;;  %v156_v34 = vsel %vm37_vm0, %v129_v16, 0.0 }
  0xa4   :  { %154 = vadd.xlane.f32.xlu0 %v153_v19  ;;  %178 = vadd.xlane.f32.xlu1 %v177_v30  ;;  %v82_v31 = vpop.xlane.xlu0 %81  ;;  %v61_v33 = vpop.xlane.xlu1 %60 }
  0xa5   :  { %v104_v35 = vmul.f32 0.03125, %v82_v31  ;;  %v97_v36 = vmul.f32 0.03125, %v61_v33  ;;  %v137_v37 = vmul.f32 %v880_v27, %v880_v27  ;;  %v130_v20 = vmul.f32 %v883_v17, %v883_v17 }
  0xa7   :  { %v892_v40 = vsub.f32 %v793_v24, %v104_v35  ;;  %v895_v21 = vsub.f32 %v798_v25, %v97_v36  ;;  %v180_v41 = vsel %vm37_vm0, %v137_v37, 0.0  ;;  %v159_v44 = vsel %vm37_vm0, %v130_v20, 0.0 }
  0xa8   :  { %157 = vadd.xlane.f32.xlu0 %v156_v34  ;;  %181 = vadd.xlane.f32.xlu1 %v180_v41  ;;  %v85_v42 = vpop.xlane.xlu0 %84  ;;  %v64_v43 = vpop.xlane.xlu1 %63 }
  0xa9   :  { %v105_v45 = vmul.f32 0.03125, %v85_v42  ;;  %v98_v48 = vmul.f32 0.03125, %v64_v43  ;;  %v138_v49 = vmul.f32 %v892_v40, %v892_v40  ;;  %v131_v24 = vmul.f32 %v895_v21, %v895_v21  ;;  %v950_v43 = vld [vmem:[%s1147_s1] ss:$0 sm:$0xff] }
  0xab   :  { %v904_v50 = vsub.f32 %v807_v28, %v105_v45  ;;  %v907_v25 = vsub.f32 %v812_v29, %v98_v48  ;;  %v183_v51 = vsel %vm37_vm0, %v138_v49, 0.0  ;;  %v162_v54 = vsel %vm37_vm0, %v131_v24, 0.0 }
  0xac   :  { %160 = vadd.xlane.f32.xlu0 %v159_v44  ;;  %184 = vadd.xlane.f32.xlu1 %v183_v51  ;;  %v88_v52 = vpop.xlane.xlu0 %87  ;;  %v956_v51 = vld [vmem:[%s1148_s2] ss:$0 sm:$0xff] }
  0xad   :  { %v106_v53 = vmul.f32 0.03125, %v88_v52  ;;  %v139_v55 = vmul.f32 %v904_v50, %v904_v50  ;;  %v132_v58 = vmul.f32 %v907_v25, %v907_v25 }
  0xaf   :  { %v916_v28 = vsub.f32 %v821_v32, %v106_v53  ;;  %v186_v29 = vsel %vm37_vm0, %v139_v55, 0.0  ;;  %v165_v61 = vsel %vm37_vm0, %v132_v58, 0.0  ;;  %v310_v32 = vld [vmem:[%s1146_s3 + $0x10] sm:$0xff] }
  0xb0   :  { %163 = vadd.xlane.f32.xlu0 %v162_v54  ;;  %187 = vadd.xlane.f32.xlu1 %v186_v29 }
  0xb1   :  { %v140_v62 = vmul.f32 %v916_v28, %v916_v28  ;;  %586 = vmatpush3.msra.mxu0 %v310_v32  ;;  %647 = vmatpush3.msra.mxu1 %v310_v32 }
  0xb2   :  { %587 = vmatprep.subr.mxu0 %v686_v59  ;;  %644 = vmatprep.subr.mxu1 %v686_v59 }
  0xb3   :  { %v189_v63 = vsel %vm37_vm0, %v140_v62, 0.0  ;;  %588 = vmatpush3.msra.mxu0 %v309_v0  ;;  %648 = vmatpush3.msra.mxu1 %v309_v0 }
  0xb4   :  { %166 = vadd.xlane.f32.xlu0 %v165_v61  ;;  %190 = vadd.xlane.f32.xlu1 %v189_v63 }
  0xb5   :  { %589 = vmatprep.subr.mxu0 %v686_v59  ;;  %645 = vmatprep.subr.mxu1 %v686_v59 }
  0xb6   :  { %590 = vmatpush3.msra.mxu0 %v308_v1  ;;  %649 = vmatpush3.msra.mxu1 %v308_v1 }
 0x11d   :  { %v143_v4 = vpop.xlane.xlu1 %142 }
 0x11e   :  { %v192_v5 = vmul.f32 0.03125, %v143_v4 }
 0x120   :  { %v209_v6 = vadd.f32 1e-05, %v192_v5 }
 0x121   :  { %v170_v7 = vpop.xlane.xlu1 %169  ;;  %v146_v8 = vpop.xlane.xlu0 %145 }
 0x122   :  { %652 = vrsqrt.f32 %v209_v6  ;;  %v201_v9 = vmul.f32 0.03125, %v170_v7  ;;  %v193_v10 = vmul.f32 0.03125, %v146_v8 }
 0x124   :  { %v218_v11 = vadd.f32 1e-05, %v201_v9  ;;  %v210_v14 = vadd.f32 1e-05, %v193_v10 }
 0x125   :  { %v173_v15 = vpop.xlane.xlu1 %172  ;;  %v149_v18 = vpop.xlane.xlu0 %148 }
 0x126   :  { %654 = vrsqrt.f32 %v218_v11  ;;  %v202_v19 = vmul.f32 0.03125, %v173_v15  ;;  %v194_v22 = vmul.f32 0.03125, %v149_v18 }
 0x127   :  { %656 = vrsqrt.f32 %v210_v14 }
 0x128   :  { %v219_v23 = vadd.f32 1e-05, %v202_v19  ;;  %v211_v26 = vadd.f32 1e-05, %v194_v22 }
 0x129   :  { %v176_v16 = vpop.xlane.xlu1 %175  ;;  %v152_v30 = vpop.xlane.xlu0 %151 }
 0x12a   :  { %658 = vrsqrt.f32 %v219_v23  ;;  %v203_v31 = vmul.f32 0.03125, %v176_v16  ;;  %v195_v33 = vmul.f32 0.03125, %v152_v30 }
 0x12b   :  { %660 = vrsqrt.f32 %v211_v26 }
 0x12c   :  { %v220_v34 = vadd.f32 1e-05, %v203_v31  ;;  %v212_v35 = vadd.f32 1e-05, %v195_v33 }
 0x12d   :  { %v179_v36 = vpop.xlane.xlu1 %178  ;;  %v155_v37 = vpop.xlane.xlu0 %154 }
 0x12e   :  { %662 = vrsqrt.f32 %v220_v34  ;;  %v204_v20 = vmul.f32 0.03125, %v179_v36  ;;  %v196_v41 = vmul.f32 0.03125, %v155_v37 }
 0x12f   :  { %v653_v42 = vpop.eup %652  ;;  %664 = vrsqrt.f32 %v212_v35 }
 0x130   :  { %v221_v44 = vadd.f32 1e-05, %v204_v20  ;;  %v213_v45 = vadd.f32 1e-05, %v196_v41  ;;  %v243_v48 = vmul.f32 %v653_v42, %v825_v38 }
 0x131   :  { %v182_v49 = vpop.xlane.xlu1 %181  ;;  %v158_v24 = vpop.xlane.xlu0 %157 }
 0x132   :  { %666 = vrsqrt.f32 %v221_v44  ;;  %v205_v52 = vmul.f32 0.03125, %v182_v49  ;;  %v197_v53 = vmul.f32 0.03125, %v158_v24  ;;  %v267_v54 = vmul.f32 %v950_v43, %v243_v48 }
 0x133   :  { %v655_v55 = vpop.eup %654  ;;  %668 = vrsqrt.f32 %v213_v45 }
 0x134   :  { %v657_v58 = vpop.eup %656  ;;  %v222_v29 = vadd.f32 1e-05, %v205_v52  ;;  %v214_v60 = vadd.f32 1e-05, %v197_v53  ;;  %v291_v61 = vadd.f32 %v956_v51, %v267_v54  ;;  %v252_v38 = vmul.f32 %v655_v55, %v827_v39 }
 0x135   :  { %v185_v62 = vpop.xlane.xlu1 %184  ;;  %v161_v32 = vpop.xlane.xlu0 %160  ;;  %v244_v63 = vmul.f32 %v657_v58, %v833_v46 }
 0x136   :  { %670 = vrsqrt.f32 %v222_v29  ;;  %v206_v0 = vmul.f32 0.03125, %v185_v62  ;;  %v198_v1 = vmul.f32 0.03125, %v161_v32  ;;  %592 = vmatmul.mubr.msk.f32.vlgmr.msra.gmra.mxu0 %vm37_vm0, %v291_v61  ;;  %v276_v4 = vmul.f32 %v950_v43, %v252_v38 }
 0x137   :  { %v659_v5 = vpop.eup %658  ;;  %672 = vrsqrt.f32 %v214_v60  ;;  %594 = vmatprep.mubr.msk.f32.mxu0 %vm687_vm1, %v686_v59  ;;  %v268_v6 = vmul.f32 %v950_v43, %v244_v63 }
 0x138   :  { %v661_v7 = vpop.eup %660  ;;  %v223_v39 = vadd.f32 1e-05, %v206_v0  ;;  %v215_v8 = vadd.f32 1e-05, %v198_v1  ;;  %v300_v9 = vadd.f32 %v956_v51, %v276_v4  ;;  %v253_v46 = vmul.f32 %v659_v5, %v844_v56 }
 0x139   :  { %v188_v10 = vpop.xlane.xlu1 %187  ;;  %v164_v11 = vpop.xlane.xlu0 %163  ;;  %v292_v14 = vadd.f32 %v956_v51, %v268_v6  ;;  %v245_v15 = vmul.f32 %v661_v7, %v835_v47 }
 0x13a   :  { %674 = vrsqrt.f32 %v223_v39  ;;  %v207_v18 = vmul.f32 0.03125, %v188_v10  ;;  %v199_v19 = vmul.f32 0.03125, %v164_v11  ;;  %619 = vmatmul.mubr.msk.f32.vlgmr.msra.gmra.mxu1 %vm37_vm0, %v300_v9  ;;  %v277_v22 = vmul.f32 %v950_v43, %v253_v46 }
 0x13b   :  { %v663_v23 = vpop.eup %662  ;;  %676 = vrsqrt.f32 %v215_v8  ;;  %595 = vmatmul.mubr.msk.f32.gmra.mxu0 %vm37_vm0, %v292_v14  ;;  %621 = vmatprep.mubr.msk.f32.mxu1 %vm687_vm1, %v686_v59  ;;  %v269_v56 = vmul.f32 %v950_v43, %v245_v15 }
 0x13c   :  { %v665_v26 = vpop.eup %664  ;;  %v224_v16 = vadd.f32 1e-05, %v207_v18  ;;  %v216_v30 = vadd.f32 1e-05, %v199_v19  ;;  %597 = vmatprep.mubr.msk.f32.mxu0 %vm687_vm1, %v686_v59  ;;  %v301_v47 = vadd.f32 %v956_v51, %v277_v22  ;;  %v254_v31 = vmul.f32 %v663_v23, %v856_v2 }
 0x13d   :  { %v191_v33 = vpop.xlane.xlu1 %190  ;;  %v167_v34 = vpop.xlane.xlu0 %166  ;;  %v293_v35 = vadd.f32 %v956_v51, %v269_v56  ;;  %v246_v36 = vmul.f32 %v665_v26, %v847_v57 }
 0x13e   :  { %678 = vrsqrt.f32 %v224_v16  ;;  %v208_v37 = vmul.f32 0.03125, %v191_v33  ;;  %v200_v20 = vmul.f32 0.03125, %v167_v34  ;;  %622 = vmatmul.mubr.msk.f32.gmra.mxu1 %vm37_vm0, %v301_v47  ;;  %v278_v41 = vmul.f32 %v950_v43, %v254_v31 }
 0x13f   :  { %v667_v42 = vpop.eup %666  ;;  %680 = vrsqrt.f32 %v216_v30  ;;  %598 = vmatmul.mubr.msk.f32.gmra.mxu0 %vm37_vm0, %v293_v35  ;;  %624 = vmatprep.mubr.msk.f32.mxu1 %vm687_vm1, %v686_v59  ;;  %v270_v2 = vmul.f32 %v950_v43, %v246_v36 }
 0x140   :  { %v669_v44 = vpop.eup %668  ;;  %v225_v45 = vadd.f32 1e-05, %v208_v37  ;;  %v217_v48 = vadd.f32 1e-05, %v200_v20  ;;  %600 = vmatprep.mubr.msk.f32.mxu0 %vm687_vm1, %v686_v59  ;;  %v302_v57 = vadd.f32 %v956_v51, %v278_v41  ;;  %v255_v49 = vmul.f32 %v667_v42, %v868_v12 }
 0x141   :  { %v294_v24 = vadd.f32 %v956_v51, %v270_v2  ;;  %v247_v52 = vmul.f32 %v669_v44, %v859_v3 }
 0x142   :  { %682 = vrsqrt.f32 %v225_v45  ;;  %625 = vmatmul.mubr.msk.f32.gmra.mxu1 %vm37_vm0, %v302_v57  ;;  %v279_v53 = vmul.f32 %v950_v43, %v255_v49 }
 0x143   :  { %v671_v54 = vpop.eup %670  ;;  %684 = vrsqrt.f32 %v217_v48  ;;  %601 = vmatmul.mubr.msk.f32.gmra.mxu0 %vm37_vm0, %v294_v24  ;;  %627 = vmatprep.mubr.msk.f32.mxu1 %vm687_vm1, %v686_v59  ;;  %v271_v55 = vmul.f32 %v950_v43, %v247_v52 }
 0x144   :  { %v673_v58 = vpop.eup %672  ;;  %603 = vmatprep.mubr.msk.f32.mxu0 %vm687_vm1, %v686_v59  ;;  %v303_v3 = vadd.f32 %v956_v51, %v279_v53  ;;  %v256_v12 = vmul.f32 %v671_v54, %v880_v27 }
 0x145   :  { %v295_v29 = vadd.f32 %v956_v51, %v271_v55  ;;  %v248_v60 = vmul.f32 %v673_v58, %v871_v13 }
 0x146   :  { %628 = vmatmul.mubr.msk.f32.gmra.mxu1 %vm37_vm0, %v303_v3  ;;  %v280_v61 = vmul.f32 %v950_v43, %v256_v12 }
 0x147   :  { %v675_v38 = vpop.eup %674  ;;  %604 = vmatmul.mubr.msk.f32.gmra.mxu0 %vm37_vm0, %v295_v29  ;;  %630 = vmatprep.mubr.msk.f32.mxu1 %vm687_vm1, %v686_v59  ;;  %v272_v62 = vmul.f32 %v950_v43, %v248_v60 }
 0x148   :  { %v677_v32 = vpop.eup %676  ;;  %606 = vmatprep.mubr.msk.f32.mxu0 %vm687_vm1, %v686_v59  ;;  %v304_v27 = vadd.f32 %v956_v51, %v280_v61  ;;  %v257_v13 = vmul.f32 %v675_v38, %v892_v40 }
 0x149   :  { %v296_v63 = vadd.f32 %v956_v51, %v272_v62  ;;  %v249_v0 = vmul.f32 %v677_v32, %v883_v17 }
 0x14a   :  { %631 = vmatmul.mubr.msk.f32.gmra.mxu1 %vm37_vm0, %v304_v27  ;;  %v281_v1 = vmul.f32 %v950_v43, %v257_v13 }
 0x14b   :  { %v679_v4 = vpop.eup %678  ;;  %607 = vmatmul.mubr.msk.f32.gmra.mxu0 %vm37_vm0, %v296_v63  ;;  %633 = vmatprep.mubr.msk.f32.mxu1 %vm687_vm1, %v686_v59  ;;  %v273_v5 = vmul.f32 %v950_v43, %v249_v0 }
 0x14c   :  { %v681_v6 = vpop.eup %680  ;;  %609 = vmatprep.mubr.msk.f32.mxu0 %vm687_vm1, %v686_v59  ;;  %v305_v40 = vadd.f32 %v956_v51, %v281_v1  ;;  %v258_v17 = vmul.f32 %v679_v4, %v904_v50 }
 0x14d   :  { %v297_v7 = vadd.f32 %v956_v51, %v273_v5  ;;  %v250_v39 = vmul.f32 %v681_v6, %v895_v21 }
 0x14e   :  { %634 = vmatmul.mubr.msk.f32.gmra.mxu1 %vm37_vm0, %v305_v40  ;;  %v282_v8 = vmul.f32 %v950_v43, %v258_v17 }
 0x14f   :  { %v683_v9 = vpop.eup %682  ;;  %610 = vmatmul.mubr.msk.f32.gmra.mxu0 %vm37_vm0, %v297_v7  ;;  %636 = vmatprep.mubr.msk.f32.mxu1 %vm687_vm1, %v686_v59  ;;  %v274_v46 = vmul.f32 %v950_v43, %v250_v39 }
 0x150   :  { %v685_v10 = vpop.eup %684  ;;  %612 = vmatprep.mubr.msk.f32.mxu0 %vm687_vm1, %v686_v59  ;;  %v306_v50 = vadd.f32 %v956_v51, %v282_v8  ;;  %v259_v21 = vmul.f32 %v683_v9, %v916_v28 }
 0x151   :  { %v298_v11 = vadd.f32 %v956_v51, %v274_v46  ;;  %v251_v14 = vmul.f32 %v685_v10, %v907_v25  ;;  %v1058_v25 = vld [vmem:[%s1149_s4] ss:$0 sm:$0xff] }
 0x152   :  { %637 = vmatmul.mubr.msk.f32.gmra.mxu1 %vm37_vm0, %v306_v50  ;;  %v283_v15 = vmul.f32 %v950_v43, %v259_v21 }
 0x153   :  { %613 = vmatmul.mubr.msk.f32.gmra.mxu0 %vm37_vm0, %v298_v11  ;;  %639 = vmatprep.mubr.msk.f32.mxu1 %vm687_vm1, %v686_v59  ;;  %v275_v18 = vmul.f32 %v950_v43, %v251_v14 }
 0x154   :  { %615 = vmatprep.mubr.msk.f32.mxu0 %vm687_vm1, %v686_v59  ;;  %v307_v28 = vadd.f32 %v956_v51, %v283_v15 }
 0x155   :  { %v299_v19 = vadd.f32 %v956_v51, %v275_v18 }
 0x156   :  { %640 = vmatmul.mubr.msk.f32.gmra.mxu1 %vm37_vm0, %v307_v28 }
 0x157   :  { %616 = vmatmul.mubr.msk.f32.gmra.mxu0 %vm37_vm0, %v299_v19 }
 0x1f6   :  { %v436_v22 = vpop.f32.mrf.mxu0 }
 0x1f7   :  { %v437_v43 = vadd.f32 %v1058_v25, %v436_v22 }
 0x1f8   :  { %v593_v23 = vpop.f32.mrf.mxu0 }
 0x1f9   :  { %521 = vst.msk [vmem:[%s1150_s5] sm:$0xff] %vm520_vm2, %v437_v43 }
 0x1fa   :  { %v481_v59 = vpop.f32.mrf.mxu1 }
 0x1fb   :  { %v441_v51 = vpop.f32.mrf.mxu0  ;;  %v482_v56 = vadd.f32 %v1058_v25, %v481_v59 }
 0x1fc   :  { %v442_v26 = vadd.f32 %v1058_v25, %v441_v51  ;;  %v620_v16 = vpop.f32.mrf.mxu1 }
 0x1fd   :  { %530 = vst.msk [vmem:[%s1150_s5 + $0x48] sm:$0xff] %vm520_vm2, %v482_v56  ;;  %v596_v30 = vpop.f32.mrf.mxu0 }
 0x1fe   :  { %522 = vst.msk [vmem:[%s1150_s5 + $0x8] sm:$0xff] %vm520_vm2, %v442_v26  ;;  %v486_v47 = vpop.f32.mrf.mxu1 }
 0x1ff   :  { %v446_v31 = vpop.f32.mrf.mxu0  ;;  %v487_v33 = vadd.f32 %v1058_v25, %v486_v47 }
 0x200   :  { %v447_v34 = vadd.f32 %v1058_v25, %v446_v31  ;;  %v623_v35 = vpop.f32.mrf.mxu1 }
 0x201   :  { %531 = vst.msk [vmem:[%s1150_s5 + $0x50] sm:$0xff] %vm520_vm2, %v487_v33  ;;  %v599_v36 = vpop.f32.mrf.mxu0 }
 0x202   :  { %523 = vst.msk [vmem:[%s1150_s5 + $0x10] sm:$0xff] %vm520_vm2, %v447_v34  ;;  %v491_v37 = vpop.f32.mrf.mxu1 }
 0x203   :  { %v451_v20 = vpop.f32.mrf.mxu0  ;;  %v492_v41 = vadd.f32 %v1058_v25, %v491_v37 }
 0x204   :  { %v452_v42 = vadd.f32 %v1058_v25, %v451_v20  ;;  %v626_v2 = vpop.f32.mrf.mxu1 }
 0x205   :  { %532 = vst.msk [vmem:[%s1150_s5 + $0x58] sm:$0xff] %vm520_vm2, %v492_v41  ;;  %v602_v44 = vpop.f32.mrf.mxu0 }
 0x206   :  { %524 = vst.msk [vmem:[%s1150_s5 + $0x18] sm:$0xff] %vm520_vm2, %v452_v42  ;;  %v496_v45 = vpop.f32.mrf.mxu1 }
 0x207   :  { %v456_v48 = vpop.f32.mrf.mxu0  ;;  %v497_v57 = vadd.f32 %v1058_v25, %v496_v45 }
 0x208   :  { %v457_v49 = vadd.f32 %v1058_v25, %v456_v48  ;;  %v629_v24 = vpop.f32.mrf.mxu1 }
 0x209   :  { %533 = vst.msk [vmem:[%s1150_s5 + $0x60] sm:$0xff] %vm520_vm2, %v497_v57  ;;  %v605_v52 = vpop.f32.mrf.mxu0 }
 0x20a   :  { %525 = vst.msk [vmem:[%s1150_s5 + $0x20] sm:$0xff] %vm520_vm2, %v457_v49  ;;  %v501_v53 = vpop.f32.mrf.mxu1 }
 0x20b   :  { %v461_v54 = vpop.f32.mrf.mxu0  ;;  %v502_v55 = vadd.f32 %v1058_v25, %v501_v53 }
 0x20c   :  { %v462_v58 = vadd.f32 %v1058_v25, %v461_v54  ;;  %v632_v3 = vpop.f32.mrf.mxu1 }
 0x20d   :  { %534 = vst.msk [vmem:[%s1150_s5 + $0x68] sm:$0xff] %vm520_vm2, %v502_v55  ;;  %v608_v12 = vpop.f32.mrf.mxu0 }
 0x20e   :  { %526 = vst.msk [vmem:[%s1150_s5 + $0x28] sm:$0xff] %vm520_vm2, %v462_v58  ;;  %v506_v29 = vpop.f32.mrf.mxu1 }
 0x20f   :  { %v466_v60 = vpop.f32.mrf.mxu0  ;;  %v507_v61 = vadd.f32 %v1058_v25, %v506_v29 }
 0x210   :  { %v467_v38 = vadd.f32 %v1058_v25, %v466_v60  ;;  %v635_v62 = vpop.f32.mrf.mxu1 }
 0x211   :  { %535 = vst.msk [vmem:[%s1150_s5 + $0x70] sm:$0xff] %vm520_vm2, %v507_v61  ;;  %v611_v32 = vpop.f32.mrf.mxu0 }
 0x212   :  { %527 = vst.msk [vmem:[%s1150_s5 + $0x30] sm:$0xff] %vm520_vm2, %v467_v38  ;;  %v511_v27 = vpop.f32.mrf.mxu1 }
 0x213   :  { %v471_v13 = vpop.f32.mrf.mxu0  ;;  %v512_v63 = vadd.f32 %v1058_v25, %v511_v27 }
 0x214   :  { %v472_v0 = vadd.f32 %v1058_v25, %v471_v13  ;;  %v638_v1 = vpop.f32.mrf.mxu1 }
 0x215   :  { %536 = vst.msk [vmem:[%s1150_s5 + $0x78] sm:$0xff] %vm520_vm2, %v512_v63  ;;  %v614_v4 = vpop.f32.mrf.mxu0 }
 0x216   :  { %528 = vst.msk [vmem:[%s1150_s5 + $0x38] sm:$0xff] %vm520_vm2, %v472_v0  ;;  %v516_v5 = vpop.f32.mrf.mxu1 }
 0x217   :  { %v476_v6 = vpop.f32.mrf.mxu0  ;;  %v517_v40 = vadd.f32 %v1058_v25, %v516_v5 }
 0x218   :  { %v477_v17 = vadd.f32 %v1058_v25, %v476_v6  ;;  %v641_v7 = vpop.f32.mrf.mxu1 }
 0x219   :  { %537 = vst.msk [vmem:[%s1150_s5 + $0x80] sm:$0xff] %vm520_vm2, %v517_v40  ;;  %v617_v39 = vpop.f32.mrf.mxu0 }
 0x21a   :  { %529 = vst.msk [vmem:[%s1150_s5 + $0x40] sm:$0xff] %vm520_vm2, %v477_v17 }

// kernel: swin_block_forward.5
= control target key start
LH: loop header
LB: loop body
LE: loop exit
PB: predicated region body
PF: predicated region fallthrough
CT: control target
= control target key end

     0   :  { %v1504_v0 = vmov 0.0   ;;  %vm1505_vm0 = vmmov 0   ;;  %vm73_vm1 = vcmask 261120   ;;  %s2281_s2 = inlined_call_operand.vmem [shape: f32[32,32], index: 2, kind: input, shape index: {}]   ;;  %s2282_s0 = inlined_call_operand.vmem [shape: f32[136,32], index: 0, kind: input, shape index: {}]   ;;  %s2283_s1 = inlined_call_operand.vmem [shape: f32[136,32], index: 1, kind: input, shape index: {}]   ;;  %s2284_s3 = inlined_call_operand.vmem [shape: f32[1,32], index: 3, kind: input, shape index: {}]   ;;  %s2285_s6 = inlined_call_operand.vmem [shape: f32[32,128], index: 6, kind: input, shape index: {}]   ;;  %s2286_s8 = inlined_call_operand.vmem [shape: f32[128,32], index: 8, kind: input, shape index: {}]   ;;  %s2287_s4 = inlined_call_operand.vmem [shape: f32[1,32], index: 4, kind: input, shape index: {}]   ;;  %s2288_s5 = inlined_call_operand.vmem [shape: f32[1,32], index: 5, kind: input, shape index: {}]   ;;  %s2289_s7 = inlined_call_operand.vmem [shape: f32[1,128], index: 7, kind: input, shape index: {}]   ;;  %s2290_s9 = inlined_call_operand.vmem [shape: f32[1,32], index: 9, kind: input, shape index: {}]   ;;  %s2291_s10 = inlined_call_operand.vmem [shape: f32[136,32], index: 10, kind: output, shape index: {}]  }
   0x1   :  { %1225 = vmatprep.subr.mxu0 %v1504_v0  ;;  %v72_v1 = vld [vmem:[%s2281_s2 + $0x18] sm:$0xff]  ;;  %v71_v2 = vld [vmem:[%s2281_s2 + $0x10] sm:$0xff]  ;;  %1233 = vmatprep.mubr.msk.f32.mxu0 %vm1505_vm0, %v1504_v0  ;;  %v70_v3 = vld [vmem:[%s2281_s2 + $0x8] sm:$0xff] }
   0x2   :  { %1226 = vmatpush3.msra.mxu0 %v72_v1  ;;  %1426 = vmatprep.subr.mxu1 %v1504_v0  ;;  %v69_v4 = vld [vmem:[%s2281_s2] sm:$0xff]  ;;  %v53_v7 = vld [vmem:[%s2282_s0 + $0x8] sm:$0xff]  ;;  %v54_v9 = vld [vmem:[%s2282_s0 + $0x10] sm:$0xff] }
   0x3   :  { %1227 = vmatprep.subr.mxu0 %v1504_v0  ;;  %1430 = vmatpush3.msra.mxu1 %v72_v1  ;;  %v52_v5 = vld [vmem:[%s2282_s0] sm:$0xff]  ;;  %v61_v8 = vld [vmem:[%s2282_s0 + $0x48] sm:$0xff]  ;;  %v62_v10 = vld [vmem:[%s2282_s0 + $0x50] sm:$0xff] }
   0x4   :  { %1228 = vmatpush3.msra.mxu0 %v71_v2  ;;  %1427 = vmatprep.subr.mxu1 %v1504_v0  ;;  %v60_v6 = vld [vmem:[%s2282_s0 + $0x40] sm:$0xff]  ;;  %v55_v11 = vld [vmem:[%s2282_s0 + $0x18] sm:$0xff]  ;;  %v57_v15 = vld [vmem:[%s2282_s0 + $0x28] sm:$0xff] }
   0x5   :  { %1229 = vmatprep.subr.mxu0 %v1504_v0  ;;  %1431 = vmatpush3.msra.mxu1 %v71_v2  ;;  %v63_v12 = vld [vmem:[%s2282_s0 + $0x58] sm:$0xff]  ;;  %v56_v13 = vld [vmem:[%s2282_s0 + $0x20] sm:$0xff]  ;;  %v65_v16 = vld [vmem:[%s2282_s0 + $0x68] sm:$0xff] }
   0x6   :  { %1230 = vmatpush3.msra.mxu0 %v70_v3  ;;  %1428 = vmatprep.subr.mxu1 %v1504_v0  ;;  %v64_v14 = vld [vmem:[%s2282_s0 + $0x60] sm:$0xff]  ;;  %v58_v17 = vld [vmem:[%s2282_s0 + $0x30] sm:$0xff]  ;;  %v59_v19 = vld [vmem:[%s2282_s0 + $0x38] sm:$0xff] }
   0x7   :  { %1231 = vmatprep.subr.mxu0 %v1504_v0  ;;  %1432 = vmatpush3.msra.mxu1 %v70_v3  ;;  %v66_v18 = vld [vmem:[%s2282_s0 + $0x70] sm:$0xff]  ;;  %v67_v20 = vld [vmem:[%s2282_s0 + $0x78] sm:$0xff]  ;;  %v68_v21 = vld [vmem:[%s2282_s0 + $0x80] sm:$0xff] }
   0x8   :  { %1232 = vmatpush3.msra.mxu0 %v69_v4  ;;  %1429 = vmatprep.subr.mxu1 %v1504_v0  ;;  %v35_v22 = vld [vmem:[%s2283_s1] sm:$0xff]  ;;  %v36_v27 = vld [vmem:[%s2283_s1 + $0x8] sm:$0xff]  ;;  %v37_v35 = vld [vmem:[%s2283_s1 + $0x10] sm:$0xff] }
   0x9   :  { %1234 = vmatmul.mubr.msk.f32.vlgmr.msra.gmra.mxu0 %vm73_vm1, %v52_v5  ;;  %1433 = vmatpush3.msra.mxu1 %v69_v4  ;;  %v1695_v24 = vld [vmem:[%s2284_s3] ss:$0 sm:$0xff]  ;;  %v38_v43 = vld [vmem:[%s2283_s1 + $0x18] sm:$0xff]  ;;  %v40_v59 = vld [vmem:[%s2283_s1 + $0x28] sm:$0xff] }
   0xa   :  { %1236 = vmatprep.mubr.msk.f32.mxu0 %vm1505_vm0, %v1504_v0  ;;  %1257 = vmatprep.mubr.msk.f32.mxu1 %vm1505_vm0, %v1504_v0  ;;  %v39_v51 = vld [vmem:[%s2283_s1 + $0x20] sm:$0xff]  ;;  %v41_v5 = vld [vmem:[%s2283_s1 + $0x30] sm:$0xff] }
   0xb   :  { %1258 = vmatmul.mubr.msk.f32.vlgmr.msra.gmra.mxu1 %vm73_vm1, %v60_v6  ;;  %1284 = vmatprep.subr.mxu1 %v1504_v0  ;;  %v43_v62 = vld [vmem:[%s2283_s1 + $0x40] sm:$0xff] }
   0xc   :  { %1260 = vmatprep.mubr.msk.f32.mxu1 %vm1505_vm0, %v1504_v0  ;;  %1343 = vmatprep.subr.mxu0 %v1504_v0 }
   0xd   :  { %1237 = vmatmul.mubr.msk.f32.gmra.mxu0 %vm73_vm1, %v53_v7 }
   0xe   :  { %1239 = vmatprep.mubr.msk.f32.mxu0 %vm1505_vm0, %v1504_v0 }
   0xf   :  { %1261 = vmatmul.mubr.msk.f32.gmra.mxu1 %vm73_vm1, %v61_v8 }
  0x10   :  { %1263 = vmatprep.mubr.msk.f32.mxu1 %vm1505_vm0, %v1504_v0 }
  0x11   :  { %1240 = vmatmul.mubr.msk.f32.gmra.mxu0 %vm73_vm1, %v54_v9  ;;  %v44_v9 = vld [vmem:[%s2283_s1 + $0x48] sm:$0xff] }
  0x12   :  { %1242 = vmatprep.mubr.msk.f32.mxu0 %vm1505_vm0, %v1504_v0 }
  0x13   :  { %1264 = vmatmul.mubr.msk.f32.gmra.mxu1 %vm73_vm1, %v62_v10  ;;  %v45_v10 = vld [vmem:[%s2283_s1 + $0x50] sm:$0xff] }
  0x14   :  { %1266 = vmatprep.mubr.msk.f32.mxu1 %vm1505_vm0, %v1504_v0 }
  0x15   :  { %1243 = vmatmul.mubr.msk.f32.gmra.mxu0 %vm73_vm1, %v55_v11 }
  0x16   :  { %1245 = vmatprep.mubr.msk.f32.mxu0 %vm1505_vm0, %v1504_v0 }
  0x17   :  { %1267 = vmatmul.mubr.msk.f32.gmra.mxu1 %vm73_vm1, %v63_v12 }
  0x18   :  { %1269 = vmatprep.mubr.msk.f32.mxu1 %vm1505_vm0, %v1504_v0 }
  0x19   :  { %1246 = vmatmul.mubr.msk.f32.gmra.mxu0 %vm73_vm1, %v56_v13 }
  0x1a   :  { %1248 = vmatprep.mubr.msk.f32.mxu0 %vm1505_vm0, %v1504_v0 }
  0x1b   :  { %1270 = vmatmul.mubr.msk.f32.gmra.mxu1 %vm73_vm1, %v64_v14 }
  0x1c   :  { %1272 = vmatprep.mubr.msk.f32.mxu1 %vm1505_vm0, %v1504_v0 }
  0x1d   :  { %1249 = vmatmul.mubr.msk.f32.gmra.mxu0 %vm73_vm1, %v57_v15 }
  0x1e   :  { %1251 = vmatprep.mubr.msk.f32.mxu0 %vm1505_vm0, %v1504_v0 }
  0x1f   :  { %1273 = vmatmul.mubr.msk.f32.gmra.mxu1 %vm73_vm1, %v65_v16  ;;  %v42_v16 = vld [vmem:[%s2283_s1 + $0x38] sm:$0xff] }
  0x20   :  { %1275 = vmatprep.mubr.msk.f32.mxu1 %vm1505_vm0, %v1504_v0 }
  0x21   :  { %1252 = vmatmul.mubr.msk.f32.gmra.mxu0 %vm73_vm1, %v58_v17 }
  0x22   :  { %1254 = vmatprep.mubr.msk.f32.mxu0 %vm1505_vm0, %v1504_v0 }
  0x23   :  { %1276 = vmatmul.mubr.msk.f32.gmra.mxu1 %vm73_vm1, %v66_v18 }
  0x24   :  { %1278 = vmatprep.mubr.msk.f32.mxu1 %vm1505_vm0, %v1504_v0 }
  0x25   :  { %1255 = vmatmul.mubr.msk.f32.gmra.mxu0 %vm73_vm1, %v59_v19 }
  0x26   :  { %1375 = vmatprep.mubr.msk.f32.mxu0 %vm1505_vm0, %v1504_v0 }
  0x27   :  { %1279 = vmatmul.mubr.msk.f32.gmra.mxu1 %vm73_vm1, %v67_v20 }
  0x28   :  { %1281 = vmatprep.mubr.msk.f32.mxu1 %vm1505_vm0, %v1504_v0 }
  0x2b   :  { %1282 = vmatmul.mubr.msk.f32.gmra.mxu1 %vm73_vm1, %v68_v21 }
  0x2c   :  { %1292 = vmatprep.mubr.msk.f32.mxu1 %vm1505_vm0, %v1504_v0 }
  0xc9   :  { %v191_v23 = vpop.f32.mrf.mxu0 }
  0xca   :  { %v275_v25 = vadd.f32 %v191_v23, %v35_v22  ;;  %v46_v22 = vld [vmem:[%s2283_s1 + $0x58] sm:$0xff]  ;;  %v47_v23 = vld [vmem:[%s2283_s1 + $0x60] sm:$0xff] }
  0xcb   :  { %v1235_v26 = vpop.f32.mrf.mxu0  ;;  %v231_v28 = vpop.f32.mrf.mxu1 }
  0xcc   :  { %v1701_v29 = vadd.f32 %v1695_v24, %v275_v25  ;;  %v283_v7 = vadd.f32 %v231_v28, %v43_v62 }
  0xcd   :  { %v196_v30 = vpop.f32.mrf.mxu0  ;;  %v1259_v31 = vpop.f32.mrf.mxu1 }
  0xce   :  { %v276_v32 = vadd.f32 %v196_v30, %v36_v27  ;;  %v316_v33 = vsel %vm73_vm1, %v1701_v29, 0.0  ;;  %v1758_v18 = vadd.f32 %v1695_v24, %v283_v7 }
  0xcf   :  { %317 = vadd.xlane.f32.xlu0 %v316_v33  ;;  %v1238_v34 = vpop.f32.mrf.mxu0  ;;  %v236_v36 = vpop.f32.mrf.mxu1 }
  0xd0   :  { %v1709_v37 = vadd.f32 %v1695_v24, %v276_v32  ;;  %v284_v19 = vadd.f32 %v236_v36, %v44_v9 }
  0xd1   :  { %v201_v38 = vpop.f32.mrf.mxu0  ;;  %v1262_v39 = vpop.f32.mrf.mxu1 }
  0xd2   :  { %v277_v40 = vadd.f32 %v201_v38, %v37_v35  ;;  %v319_v41 = vsel %vm73_vm1, %v1709_v37, 0.0  ;;  %v1772_v34 = vadd.f32 %v1695_v24, %v284_v19  ;;  %v340_v38 = vsel %vm73_vm1, %v1758_v18, 0.0  ;;  %v48_v39 = vld [vmem:[%s2283_s1 + $0x68] sm:$0xff] }
  0xd3   :  { %320 = vadd.xlane.f32.xlu0 %v319_v41  ;;  %v1241_v42 = vpop.f32.mrf.mxu0  ;;  %v241_v44 = vpop.f32.mrf.mxu1 }
  0xd4   :  { %v1717_v45 = vadd.f32 %v1695_v24, %v277_v40  ;;  %v285_v20 = vadd.f32 %v241_v44, %v45_v10  ;;  %v49_v40 = vld [vmem:[%s2283_s1 + $0x70] sm:$0xff] }
  0xd5   :  { %v206_v46 = vpop.f32.mrf.mxu0  ;;  %v1265_v47 = vpop.f32.mrf.mxu1 }
  0xd6   :  { %v278_v48 = vadd.f32 %v206_v46, %v38_v43  ;;  %v322_v49 = vsel %vm73_vm1, %v1717_v45, 0.0  ;;  %v1775_v35 = vadd.f32 %v1695_v24, %v285_v20 }
  0xd7   :  { %323 = vadd.xlane.f32.xlu1 %v322_v49  ;;  %v1244_v50 = vpop.f32.mrf.mxu0  ;;  %v246_v52 = vpop.f32.mrf.mxu1 }
  0xd8   :  { %v1725_v53 = vadd.f32 %v1695_v24, %v278_v48  ;;  %v286_v30 = vadd.f32 %v246_v52, %v46_v22  ;;  %v346_v49 = vsel %vm73_vm1, %v1775_v35, 0.0  ;;  %v343_v50 = vsel %vm73_vm1, %v1772_v34, 0.0  ;;  %v51_v52 = vld [vmem:[%s2283_s1 + $0x80] sm:$0xff] }
  0xd9   :  { %v211_v54 = vpop.f32.mrf.mxu0  ;;  %v1268_v55 = vpop.f32.mrf.mxu1 }
  0xda   :  { %v279_v56 = vadd.f32 %v211_v54, %v39_v51  ;;  %v325_v57 = vsel %vm73_vm1, %v1725_v53, 0.0  ;;  %v1791_v43 = vadd.f32 %v1695_v24, %v286_v30  ;;  %v50_v51 = vld [vmem:[%s2283_s1 + $0x78] sm:$0xff] }
  0xdb   :  { %326 = vadd.xlane.f32.xlu1 %v325_v57  ;;  %v1247_v58 = vpop.f32.mrf.mxu0  ;;  %v251_v60 = vpop.f32.mrf.mxu1 }
  0xdc   :  { %v1733_v61 = vadd.f32 %v1695_v24, %v279_v56  ;;  %v287_v31 = vadd.f32 %v251_v60, %v47_v23  ;;  %v349_v56 = vsel %vm73_vm1, %v1791_v43, 0.0 }
  0xdd   :  { %v216_v63 = vpop.f32.mrf.mxu0  ;;  %v1271_v1 = vpop.f32.mrf.mxu1 }
  0xde   :  { %v280_v2 = vadd.f32 %v216_v63, %v40_v59  ;;  %v328_v3 = vsel %vm73_vm1, %v1733_v61, 0.0  ;;  %v1794_v44 = vadd.f32 %v1695_v24, %v287_v31 }
  0xdf   :  { %329 = vadd.xlane.f32.xlu0 %v328_v3  ;;  %v1250_v4 = vpop.f32.mrf.mxu0  ;;  %v256_v6 = vpop.f32.mrf.mxu1 }
  0xe0   :  { %v1744_v8 = vadd.f32 %v1695_v24, %v280_v2  ;;  %v288_v47 = vadd.f32 %v256_v6, %v48_v39  ;;  %v352_v55 = vsel %vm73_vm1, %v1794_v44, 0.0 }
  0xe1   :  { %v221_v11 = vpop.f32.mrf.mxu0  ;;  %v1274_v12 = vpop.f32.mrf.mxu1 }
  0xe2   :  { %v281_v13 = vadd.f32 %v221_v11, %v41_v5  ;;  %v331_v14 = vsel %vm73_vm1, %v1744_v8, 0.0  ;;  %v1811_v57 = vadd.f32 %v1695_v24, %v288_v47  ;;  %v588_v5 = vld [vmem:[%s2285_s6 + $0x10] sm:$0xff] }
  0xe3   :  { %332 = vadd.xlane.f32.xlu1 %v331_v14  ;;  %v1253_v15 = vpop.f32.mrf.mxu0  ;;  %v261_v17 = vpop.f32.mrf.mxu1 }
  0xe4   :  { %v1761_v21 = vadd.f32 %v1695_v24, %v281_v13  ;;  %v289_v48 = vadd.f32 %v261_v17, %v49_v40  ;;  %v355_v2 = vsel %vm73_vm1, %v1811_v57, 0.0 }
  0xe5   :  { %v226_v25 = vpop.f32.mrf.mxu0  ;;  %v1277_v26 = vpop.f32.mrf.mxu1 }
  0xe6   :  { %v282_v27 = vadd.f32 %v226_v25, %v42_v16  ;;  %v334_v28 = vsel %vm73_vm1, %v1761_v21, 0.0  ;;  %v1814_v58 = vadd.f32 %v1695_v24, %v289_v48 }
  0xe7   :  { %335 = vadd.xlane.f32.xlu0 %v334_v28  ;;  %v1256_v32 = vpop.f32.mrf.mxu0  ;;  %v266_v33 = vpop.f32.mrf.mxu1 }
  0xe8   :  { %v1778_v36 = vadd.f32 %v1695_v24, %v282_v27  ;;  %v290_v59 = vadd.f32 %v266_v33, %v50_v51  ;;  %v358_v1 = vsel %vm73_vm1, %v1814_v58, 0.0 }
  0xe9   :  { %v1280_v41 = vpop.f32.mrf.mxu1 }
  0xea   :  { %v337_v42 = vsel %vm73_vm1, %v1778_v36, 0.0  ;;  %v1817_v62 = vadd.f32 %v1695_v24, %v290_v59 }
  0xeb   :  { %341 = vadd.xlane.f32.xlu0 %v340_v38  ;;  %338 = vadd.xlane.f32.xlu1 %v337_v42  ;;  %v271_v46 = vpop.f32.mrf.mxu1 }
  0xec   :  { %v291_v60 = vadd.f32 %v271_v46, %v51_v52  ;;  %v361_v4 = vsel %vm73_vm1, %v1817_v62, 0.0 }
  0xed   :  { %v1283_v54 = vpop.f32.mrf.mxu1 }
  0xee   :  { %v1820_v63 = vadd.f32 %v1695_v24, %v291_v60  ;;  %v589_v24 = vld [vmem:[%s2285_s6 + $0x18] sm:$0xff] }
  0xef   :  { %347 = vadd.xlane.f32.xlu0 %v346_v49  ;;  %344 = vadd.xlane.f32.xlu1 %v343_v50 }
  0xf0   :  { %v364_v3 = vsel %vm73_vm1, %v1820_v63, 0.0  ;;  %1285 = vmatpush3.msra.mxu1 %v589_v24 }
  0xf1   :  { %1286 = vmatprep.subr.mxu1 %v1504_v0 }
  0xf2   :  { %1287 = vmatpush3.msra.mxu1 %v588_v5 }
  0xf3   :  { %353 = vadd.xlane.f32.xlu0 %v352_v55  ;;  %350 = vadd.xlane.f32.xlu1 %v349_v56 }
  0xf4   :  { %1288 = vmatprep.subr.mxu1 %v1504_v0 }
  0xf7   :  { %359 = vadd.xlane.f32.xlu0 %v358_v1  ;;  %356 = vadd.xlane.f32.xlu1 %v355_v2 }
  0xfb   :  { %365 = vadd.xlane.f32.xlu0 %v364_v3  ;;  %362 = vadd.xlane.f32.xlu1 %v361_v4 }
 0x158   :  { %v318_v6 = vpop.xlane.xlu0 %317 }
 0x159   :  { %v368_v7 = vmul.f32 0.03125, %v318_v6 }
 0x15b   :  { %v1839_v9 = vsub.f32 %v1701_v29, %v368_v7 }
 0x15c   :  { %v321_v10 = vpop.xlane.xlu0 %320 }
 0x15d   :  { %v369_v11 = vmul.f32 0.03125, %v321_v10  ;;  %v402_v12 = vmul.f32 %v1839_v9, %v1839_v9 }
 0x15f   :  { %v1844_v13 = vsub.f32 %v1709_v37, %v369_v11  ;;  %v419_v14 = vsel %vm73_vm1, %v402_v12, 0.0 }
 0x160   :  { %v324_v15 = vpop.xlane.xlu1 %323  ;;  %420 = vadd.xlane.f32.xlu1 %v419_v14 }
 0x161   :  { %v370_v16 = vmul.f32 0.03125, %v324_v15  ;;  %v403_v17 = vmul.f32 %v1844_v13, %v1844_v13 }
 0x163   :  { %v1850_v19 = vsub.f32 %v1717_v45, %v370_v16  ;;  %v422_v20 = vsel %vm73_vm1, %v403_v17, 0.0 }
 0x164   :  { %v327_v22 = vpop.xlane.xlu1 %326  ;;  %423 = vadd.xlane.f32.xlu0 %v422_v20 }
 0x165   :  { %v371_v23 = vmul.f32 0.03125, %v327_v22  ;;  %v404_v25 = vmul.f32 %v1850_v19, %v1850_v19 }
 0x167   :  { %v1856_v26 = vsub.f32 %v1725_v53, %v371_v23  ;;  %v425_v27 = vsel %vm73_vm1, %v404_v25, 0.0  ;;  %v587_v23 = vld [vmem:[%s2285_s6 + $0x8] sm:$0xff] }
 0x168   :  { %v330_v28 = vpop.xlane.xlu0 %329  ;;  %426 = vadd.xlane.f32.xlu1 %v425_v27  ;;  %1289 = vmatpush3.msra.mxu1 %v587_v23 }
 0x169   :  { %v372_v30 = vmul.f32 0.03125, %v330_v28  ;;  %v405_v31 = vmul.f32 %v1856_v26, %v1856_v26  ;;  %1290 = vmatprep.subr.mxu1 %v1504_v0 }
 0x16b   :  { %v1862_v32 = vsub.f32 %v1733_v61, %v372_v30  ;;  %v428_v33 = vsel %vm73_vm1, %v405_v31, 0.0  ;;  %v586_v31 = vld [vmem:[%s2285_s6] sm:$0xff] }
 0x16c   :  { %v333_v38 = vpop.xlane.xlu1 %332  ;;  %429 = vadd.xlane.f32.xlu0 %v428_v33  ;;  %1291 = vmatpush3.msra.mxu1 %v586_v31 }
 0x16d   :  { %v373_v39 = vmul.f32 0.03125, %v333_v38  ;;  %v406_v40 = vmul.f32 %v1862_v32, %v1862_v32 }
 0x16f   :  { %v1868_v41 = vsub.f32 %v1744_v8, %v373_v39  ;;  %v431_v42 = vsel %vm73_vm1, %v406_v40, 0.0 }
 0x170   :  { %v336_v46 = vpop.xlane.xlu0 %335  ;;  %432 = vadd.xlane.f32.xlu1 %v431_v42 }
 0x171   :  { %v374_v47 = vmul.f32 0.03125, %v336_v46  ;;  %v407_v48 = vmul.f32 %v1868_v41, %v1868_v41 }
 0x173   :  { %v1874_v49 = vsub.f32 %v1761_v21, %v374_v47  ;;  %v434_v50 = vsel %vm73_vm1, %v407_v48, 0.0 }
 0x174   :  { %435 = vadd.xlane.f32.xlu0 %v434_v50  ;;  %v342_v51 = vpop.xlane.xlu0 %341  ;;  %v339_v52 = vpop.xlane.xlu1 %338 }
 0x175   :  { %v376_v54 = vmul.f32 0.03125, %v342_v51  ;;  %v375_v55 = vmul.f32 0.03125, %v339_v52  ;;  %v408_v56 = vmul.f32 %v1874_v49, %v1874_v49 }
 0x177   :  { %v1880_v59 = vsub.f32 %v1758_v18, %v376_v54  ;;  %v1883_v60 = vsub.f32 %v1778_v36, %v375_v55  ;;  %v437_v1 = vsel %vm73_vm1, %v408_v56, 0.0 }
 0x178   :  { %v348_v2 = vpop.xlane.xlu0 %347  ;;  %438 = vadd.xlane.f32.xlu1 %v437_v1  ;;  %v345_v3 = vpop.xlane.xlu1 %344 }
 0x179   :  { %v378_v4 = vmul.f32 0.03125, %v348_v2  ;;  %v377_v24 = vmul.f32 0.03125, %v345_v3  ;;  %v410_v5 = vmul.f32 %v1880_v59, %v1880_v59  ;;  %v409_v6 = vmul.f32 %v1883_v60, %v1883_v60 }
 0x17b   :  { %v1891_v7 = vsub.f32 %v1775_v35, %v378_v4  ;;  %v1894_v10 = vsub.f32 %v1772_v34, %v377_v24  ;;  %v443_v11 = vsel %vm73_vm1, %v410_v5, 0.0  ;;  %v440_v12 = vsel %vm73_vm1, %v409_v6, 0.0 }
 0x17c   :  { %v354_v14 = vpop.xlane.xlu0 %353  ;;  %444 = vadd.xlane.f32.xlu1 %v443_v11  ;;  %441 = vadd.xlane.f32.xlu0 %v440_v12  ;;  %v351_v15 = vpop.xlane.xlu1 %350 }
 0x17d   :  { %v380_v16 = vmul.f32 0.03125, %v354_v14  ;;  %v379_v17 = vmul.f32 0.03125, %v351_v15  ;;  %v412_v20 = vmul.f32 %v1891_v7, %v1891_v7  ;;  %v411_v22 = vmul.f32 %v1894_v10, %v1894_v10  ;;  %v898_v15 = vld [vmem:[%s2286_s8 + $0x78] sm:$0xff] }
 0x17e   :  { %1344 = vmatpush3.msra.mxu0 %v898_v15 }
 0x17f   :  { %v1906_v25 = vsub.f32 %v1794_v44, %v380_v16  ;;  %v1909_v27 = vsub.f32 %v1791_v43, %v379_v17  ;;  %v449_v28 = vsel %vm73_vm1, %v412_v20, 0.0  ;;  %v446_v30 = vsel %vm73_vm1, %v411_v22, 0.0  ;;  %v897_v16 = vld [vmem:[%s2286_s8 + $0x70] sm:$0xff]  ;;  %1345 = vmatprep.subr.mxu0 %v1504_v0  ;;  %v896_v17 = vld [vmem:[%s2286_s8 + $0x68] sm:$0xff]  ;;  %v895_v20 = vld [vmem:[%s2286_s8 + $0x60] sm:$0xff] }
 0x180   :  { %v360_v33 = vpop.xlane.xlu0 %359  ;;  %450 = vadd.xlane.f32.xlu1 %v449_v28  ;;  %447 = vadd.xlane.f32.xlu0 %v446_v30  ;;  %v357_v38 = vpop.xlane.xlu1 %356  ;;  %v894_v22 = vld [vmem:[%s2286_s8 + $0x58] sm:$0xff] }
 0x181   :  { %v382_v39 = vmul.f32 0.03125, %v360_v33  ;;  %v381_v40 = vmul.f32 0.03125, %v357_v38  ;;  %v414_v42 = vmul.f32 %v1906_v25, %v1906_v25  ;;  %v413_v46 = vmul.f32 %v1909_v27, %v1909_v27  ;;  %1346 = vmatpush3.msra.mxu0 %v897_v16 }
 0x182   :  { %1347 = vmatprep.subr.mxu0 %v1504_v0 }
 0x183   :  { %v1922_v47 = vsub.f32 %v1814_v58, %v382_v39  ;;  %v1925_v48 = vsub.f32 %v1811_v57, %v381_v40  ;;  %v455_v50 = vsel %vm73_vm1, %v414_v42, 0.0  ;;  %v452_v51 = vsel %vm73_vm1, %v413_v46, 0.0  ;;  %1348 = vmatpush3.msra.mxu0 %v896_v17 }
 0x184   :  { %v366_v52 = vpop.xlane.xlu0 %365  ;;  %456 = vadd.xlane.f32.xlu1 %v455_v50  ;;  %453 = vadd.xlane.f32.xlu0 %v452_v51  ;;  %v363_v54 = vpop.xlane.xlu1 %362 }
 0x185   :  { %v384_v55 = vmul.f32 0.03125, %v366_v52  ;;  %v383_v56 = vmul.f32 0.03125, %v363_v54  ;;  %v416_v1 = vmul.f32 %v1922_v47, %v1922_v47  ;;  %v415_v2 = vmul.f32 %v1925_v48, %v1925_v48  ;;  %1349 = vmatprep.subr.mxu0 %v1504_v0 }
 0x186   :  { %1350 = vmatpush3.msra.mxu0 %v895_v20 }
 0x187   :  { %v1934_v3 = vsub.f32 %v1820_v63, %v384_v55  ;;  %v1937_v4 = vsub.f32 %v1817_v62, %v383_v56  ;;  %v461_v24 = vsel %vm73_vm1, %v416_v1, 0.0  ;;  %v458_v5 = vsel %vm73_vm1, %v415_v2, 0.0  ;;  %1351 = vmatprep.subr.mxu0 %v1504_v0  ;;  %v1970_v56 = vld [vmem:[%s2287_s4] ss:$0 sm:$0xff] }
 0x188   :  { %462 = vadd.xlane.f32.xlu1 %v461_v24  ;;  %459 = vadd.xlane.f32.xlu0 %v458_v5  ;;  %v1976_v5 = vld [vmem:[%s2288_s5] ss:$0 sm:$0xff] }
 0x189   :  { %v418_v6 = vmul.f32 %v1934_v3, %v1934_v3  ;;  %v417_v11 = vmul.f32 %v1937_v4, %v1937_v4  ;;  %1352 = vmatpush3.msra.mxu0 %v894_v22 }
 0x18a   :  { %1353 = vmatprep.subr.mxu0 %v1504_v0 }
 0x18b   :  { %v467_v12 = vsel %vm73_vm1, %v418_v6, 0.0  ;;  %v464_v14 = vsel %vm73_vm1, %v417_v11, 0.0 }
 0x18c   :  { %468 = vadd.xlane.f32.xlu1 %v467_v12  ;;  %465 = vadd.xlane.f32.xlu0 %v464_v14 }
 0x1e9   :  { %v421_v23 = vpop.xlane.xlu1 %420 }
 0x1ea   :  { %v470_v28 = vmul.f32 0.03125, %v421_v23 }
 0x1ec   :  { %v487_v30 = vadd.f32 1e-05, %v470_v28 }
 0x1ed   :  { %v424_v31 = vpop.xlane.xlu0 %423 }
 0x1ee   :  { %1436 = vrsqrt.f32 %v487_v30  ;;  %v471_v33 = vmul.f32 0.03125, %v424_v31 }
 0x1f0   :  { %v488_v38 = vadd.f32 1e-05, %v471_v33 }
 0x1f1   :  { %v427_v39 = vpop.xlane.xlu1 %426 }
 0x1f2   :  { %1438 = vrsqrt.f32 %v488_v38  ;;  %v472_v40 = vmul.f32 0.03125, %v427_v39 }
 0x1f4   :  { %v489_v42 = vadd.f32 1e-05, %v472_v40 }
 0x1f5   :  { %v430_v46 = vpop.xlane.xlu0 %429 }
 0x1f6   :  { %1440 = vrsqrt.f32 %v489_v42  ;;  %v473_v50 = vmul.f32 0.03125, %v430_v46 }
 0x1f8   :  { %v490_v51 = vadd.f32 1e-05, %v473_v50 }
 0x1f9   :  { %v433_v52 = vpop.xlane.xlu1 %432 }
 0x1fa   :  { %1442 = vrsqrt.f32 %v490_v51  ;;  %v474_v54 = vmul.f32 0.03125, %v433_v52 }
 0x1fb   :  { %v1437_v55 = vpop.eup %1436 }
 0x1fc   :  { %v521_v1 = vmul.f32 %v1437_v55, %v1839_v9  ;;  %v491_v2 = vadd.f32 1e-05, %v474_v54 }
 0x1fd   :  { %v436_v24 = vpop.xlane.xlu0 %435 }
 0x1fe   :  { %v545_v6 = vmul.f32 %v1970_v56, %v521_v1  ;;  %1444 = vrsqrt.f32 %v491_v2  ;;  %v475_v11 = vmul.f32 0.03125, %v436_v24 }
 0x1ff   :  { %v1439_v12 = vpop.eup %1438 }
 0x200   :  { %v492_v14 = vadd.f32 1e-05, %v475_v11  ;;  %v569_v15 = vadd.f32 %v1976_v5, %v545_v6  ;;  %v522_v16 = vmul.f32 %v1439_v12, %v1844_v13 }
 0x201   :  { %v439_v17 = vpop.xlane.xlu1 %438 }
 0x202   :  { %1446 = vrsqrt.f32 %v492_v14  ;;  %v476_v9 = vmul.f32 0.03125, %v439_v17  ;;  %1293 = vmatmul.mubr.msk.f32.vlgmr.msra.gmra.mxu1 %vm73_vm1, %v569_v15  ;;  %v546_v20 = vmul.f32 %v1970_v56, %v522_v16 }
 0x203   :  { %v1441_v22 = vpop.eup %1440  ;;  %1295 = vmatprep.mubr.msk.f32.mxu1 %vm1505_vm0, %v1504_v0 }
 0x204   :  { %v493_v23 = vadd.f32 1e-05, %v476_v9  ;;  %v570_v28 = vadd.f32 %v1976_v5, %v546_v20  ;;  %v523_v30 = vmul.f32 %v1441_v22, %v1850_v19 }
 0x205   :  { %v442_v31 = vpop.xlane.xlu0 %441  ;;  %v445_v33 = vpop.xlane.xlu1 %444 }
 0x206   :  { %1448 = vrsqrt.f32 %v493_v23  ;;  %v477_v13 = vmul.f32 0.03125, %v442_v31  ;;  %v478_v38 = vmul.f32 0.03125, %v445_v33  ;;  %1296 = vmatmul.mubr.msk.f32.gmra.mxu1 %vm73_vm1, %v570_v28  ;;  %v547_v39 = vmul.f32 %v1970_v56, %v523_v30 }
 0x207   :  { %v1443_v40 = vpop.eup %1442  ;;  %1298 = vmatprep.mubr.msk.f32.mxu1 %vm1505_vm0, %v1504_v0 }
 0x208   :  { %v494_v42 = vadd.f32 1e-05, %v477_v13  ;;  %v495_v46 = vadd.f32 1e-05, %v478_v38  ;;  %v571_v50 = vadd.f32 %v1976_v5, %v547_v39  ;;  %v524_v51 = vmul.f32 %v1443_v40, %v1856_v26 }
 0x209   :  { %v448_v19 = vpop.xlane.xlu0 %447  ;;  %v451_v52 = vpop.xlane.xlu1 %450 }
 0x20a   :  { %1450 = vrsqrt.f32 %v494_v42  ;;  %v479_v54 = vmul.f32 0.03125, %v448_v19  ;;  %v480_v55 = vmul.f32 0.03125, %v451_v52  ;;  %1299 = vmatmul.mubr.msk.f32.gmra.mxu1 %vm73_vm1, %v571_v50  ;;  %v548_v1 = vmul.f32 %v1970_v56, %v524_v51 }
 0x20b   :  { %v1445_v2 = vpop.eup %1444  ;;  %1452 = vrsqrt.f32 %v495_v46  ;;  %1301 = vmatprep.mubr.msk.f32.mxu1 %vm1505_vm0, %v1504_v0 }
 0x20c   :  { %v496_v24 = vadd.f32 1e-05, %v479_v54  ;;  %v497_v6 = vadd.f32 1e-05, %v480_v55  ;;  %v572_v11 = vadd.f32 %v1976_v5, %v548_v1  ;;  %v525_v26 = vmul.f32 %v1445_v2, %v1862_v32 }
 0x20d   :  { %v454_v12 = vpop.xlane.xlu0 %453  ;;  %v457_v14 = vpop.xlane.xlu1 %456 }
 0x20e   :  { %1454 = vrsqrt.f32 %v496_v24  ;;  %v481_v15 = vmul.f32 0.03125, %v454_v12  ;;  %1302 = vmatmul.mubr.msk.f32.gmra.mxu1 %vm73_vm1, %v572_v11  ;;  %v549_v16 = vmul.f32 %v1970_v56, %v525_v26  ;;  %v482_v9 = vmul.f32 0.03125, %v457_v14 }
 0x20f   :  { %v1447_v17 = vpop.eup %1446  ;;  %1304 = vmatprep.mubr.msk.f32.mxu1 %vm1505_vm0, %v1504_v0  ;;  %1456 = vrsqrt.f32 %v497_v6 }
 0x210   :  { %v498_v20 = vadd.f32 1e-05, %v481_v15  ;;  %v573_v22 = vadd.f32 %v1976_v5, %v549_v16  ;;  %v526_v23 = vmul.f32 %v1447_v17, %v1868_v41  ;;  %v499_v13 = vadd.f32 1e-05, %v482_v9 }
 0x211   :  { %v460_v32 = vpop.xlane.xlu0 %459  ;;  %v463_v28 = vpop.xlane.xlu1 %462 }
 0x212   :  { %v483_v30 = vmul.f32 0.03125, %v460_v32  ;;  %1305 = vmatmul.mubr.msk.f32.gmra.mxu1 %vm73_vm1, %v573_v22  ;;  %v550_v31 = vmul.f32 %v1970_v56, %v526_v23  ;;  %1458 = vrsqrt.f32 %v498_v20  ;;  %v484_v51 = vmul.f32 0.03125, %v463_v28 }
 0x213   :  { %v1449_v33 = vpop.eup %1448  ;;  %1307 = vmatprep.mubr.msk.f32.mxu1 %vm1505_vm0, %v1504_v0  ;;  %1460 = vrsqrt.f32 %v499_v13 }
 0x214   :  { %v574_v38 = vadd.f32 %v1976_v5, %v550_v31  ;;  %v527_v39 = vmul.f32 %v1449_v33, %v1874_v49  ;;  %v500_v42 = vadd.f32 1e-05, %v483_v30  ;;  %v501_v6 = vadd.f32 1e-05, %v484_v51 }
 0x215   :  { %v469_v40 = vpop.xlane.xlu1 %468  ;;  %v466_v49 = vpop.xlane.xlu0 %465 }
 0x216   :  { %v486_v41 = vmul.f32 0.03125, %v469_v40  ;;  %1308 = vmatmul.mubr.msk.f32.gmra.mxu1 %vm73_vm1, %v574_v38  ;;  %v551_v46 = vmul.f32 %v1970_v56, %v527_v39  ;;  %1462 = vrsqrt.f32 %v500_v42  ;;  %v485_v11 = vmul.f32 0.03125, %v466_v49  ;;  %v888_v49 = vld [vmem:[%s2286_s8 + $0x28] sm:$0xff] }
 0x217   :  { %v1451_v50 = vpop.eup %1450  ;;  %1310 = vmatprep.mubr.msk.f32.mxu1 %vm1505_vm0, %v1504_v0 }
 0x218   :  { %v1453_v19 = vpop.eup %1452  ;;  %v503_v52 = vadd.f32 1e-05, %v486_v41  ;;  %v575_v54 = vadd.f32 %v1976_v5, %v551_v46  ;;  %v528_v55 = vmul.f32 %v1451_v50, %v1883_v60 }
 0x219   :  { %v529_v1 = vmul.f32 %v1453_v19, %v1880_v59  ;;  %v502_v59 = vadd.f32 1e-05, %v485_v11  ;;  %v883_v11 = vld [vmem:[%s2286_s8] sm:$0xff] }
 0x21a   :  { %1311 = vmatmul.mubr.msk.f32.gmra.mxu1 %vm73_vm1, %v575_v54  ;;  %v552_v2 = vmul.f32 %v1970_v56, %v528_v55  ;;  %1464 = vrsqrt.f32 %v503_v52  ;;  %v890_v54 = vld [vmem:[%s2286_s8 + $0x38] sm:$0xff]  ;;  %v889_v55 = vld [vmem:[%s2286_s8 + $0x30] sm:$0xff] }
 0x21b   :  { %v1455_v24 = vpop.eup %1454  ;;  %1313 = vmatprep.mubr.msk.f32.mxu1 %vm1505_vm0, %v1504_v0  ;;  %v553_v12 = vmul.f32 %v1970_v56, %v529_v1  ;;  %1466 = vrsqrt.f32 %v501_v6  ;;  %v887_v1 = vld [vmem:[%s2286_s8 + $0x20] sm:$0xff]  ;;  %v884_v6 = vld [vmem:[%s2286_s8 + $0x8] sm:$0xff] }
 0x21c   :  { %v576_v26 = vadd.f32 %v1976_v5, %v552_v2  ;;  %v530_v60 = vmul.f32 %v1455_v24, %v1894_v10  ;;  %v1457_v14 = vpop.eup %1456  ;;  %1468 = vrsqrt.f32 %v502_v59  ;;  %v886_v2 = vld [vmem:[%s2286_s8 + $0x18] sm:$0xff]  ;;  %v885_v24 = vld [vmem:[%s2286_s8 + $0x10] sm:$0xff] }
 0x21d   :  { %v577_v15 = vadd.f32 %v1976_v5, %v553_v12  ;;  %v531_v17 = vmul.f32 %v1457_v14, %v1891_v7 }
 0x21e   :  { %1314 = vmatmul.mubr.msk.f32.gmra.mxu1 %vm73_vm1, %v576_v26  ;;  %v554_v16 = vmul.f32 %v1970_v56, %v530_v60  ;;  %v2123_v26 = vld [vmem:[%s2289_s7] ss:$0 sm:$0xff] }
 0x21f   :  { %1316 = vmatprep.mubr.msk.f32.mxu1 %vm1505_vm0, %v1504_v0  ;;  %v1459_v9 = vpop.eup %1458  ;;  %v555_v20 = vmul.f32 %v1970_v56, %v531_v17 }
 0x220   :  { %v578_v10 = vadd.f32 %v1976_v5, %v554_v16  ;;  %v532_v22 = vmul.f32 %v1459_v9, %v1909_v27  ;;  %v1461_v23 = vpop.eup %1460 }
 0x221   :  { %v579_v28 = vadd.f32 %v1976_v5, %v555_v20  ;;  %v533_v31 = vmul.f32 %v1461_v23, %v1906_v25 }
 0x222   :  { %1317 = vmatmul.mubr.msk.f32.gmra.mxu1 %vm73_vm1, %v577_v15  ;;  %v556_v30 = vmul.f32 %v1970_v56, %v532_v22 }
 0x223   :  { %1319 = vmatprep.mubr.msk.f32.mxu1 %vm1505_vm0, %v1504_v0  ;;  %v1463_v32 = vpop.eup %1462  ;;  %v557_v39 = vmul.f32 %v1970_v56, %v533_v31 }
 0x224   :  { %v580_v38 = vadd.f32 %v1976_v5, %v556_v30  ;;  %v534_v40 = vmul.f32 %v1463_v32, %v1925_v48 }
 0x225   :  { %v581_v25 = vadd.f32 %v1976_v5, %v557_v39 }
 0x226   :  { %1320 = vmatmul.mubr.msk.f32.gmra.mxu1 %vm73_vm1, %v578_v10 }
 0x227   :  { %1322 = vmatprep.mubr.msk.f32.mxu1 %vm1505_vm0, %v1504_v0  ;;  %v1465_v7 = vpop.eup %1464 }
 0x228   :  { %v537_v33 = vmul.f32 %v1465_v7, %v1934_v3  ;;  %v1467_v13 = vpop.eup %1466  ;;  %v558_v3 = vmul.f32 %v1970_v56, %v534_v40 }
 0x229   :  { %v535_v41 = vmul.f32 %v1467_v13, %v1922_v47  ;;  %v1469_v46 = vpop.eup %1468 }
 0x22a   :  { %1323 = vmatmul.mubr.msk.f32.gmra.mxu1 %vm73_vm1, %v579_v28  ;;  %v561_v27 = vmul.f32 %v1970_v56, %v537_v33  ;;  %v582_v48 = vadd.f32 %v1976_v5, %v558_v3  ;;  %v536_v51 = vmul.f32 %v1469_v46, %v1937_v4  ;;  %v893_v4 = vld [vmem:[%s2286_s8 + $0x50] sm:$0xff] }
 0x22b   :  { %1325 = vmatprep.mubr.msk.f32.mxu1 %vm1505_vm0, %v1504_v0  ;;  %v559_v50 = vmul.f32 %v1970_v56, %v535_v41  ;;  %1354 = vmatpush3.msra.mxu0 %v893_v4 }
 0x22c   :  { %v585_v42 = vadd.f32 %v1976_v5, %v561_v27  ;;  %v560_v47 = vmul.f32 %v1970_v56, %v536_v51  ;;  %1355 = vmatprep.subr.mxu0 %v1504_v0  ;;  %v892_v56 = vld [vmem:[%s2286_s8 + $0x48] sm:$0xff] }
 0x22d   :  { %v583_v19 = vadd.f32 %v1976_v5, %v559_v50  ;;  %1356 = vmatpush3.msra.mxu0 %v892_v56 }
 0x22e   :  { %1326 = vmatmul.mubr.msk.f32.gmra.mxu1 %vm73_vm1, %v580_v38  ;;  %v584_v52 = vadd.f32 %v1976_v5, %v560_v47  ;;  %1357 = vmatprep.subr.mxu0 %v1504_v0  ;;  %v891_v5 = vld [vmem:[%s2286_s8 + $0x40] sm:$0xff] }
 0x22f   :  { %1328 = vmatprep.mubr.msk.f32.mxu1 %vm1505_vm0, %v1504_v0  ;;  %1358 = vmatpush3.msra.mxu0 %v891_v5 }
 0x230   :  { %1359 = vmatprep.subr.mxu0 %v1504_v0 }
 0x231   :  { %1360 = vmatpush3.msra.mxu0 %v890_v54 }
 0x232   :  { %1329 = vmatmul.mubr.msk.f32.gmra.mxu1 %vm73_vm1, %v581_v25  ;;  %1361 = vmatprep.subr.mxu0 %v1504_v0 }
 0x233   :  { %1331 = vmatprep.mubr.msk.f32.mxu1 %vm1505_vm0, %v1504_v0  ;;  %1362 = vmatpush3.msra.mxu0 %v889_v55 }
 0x234   :  { %1363 = vmatprep.subr.mxu0 %v1504_v0 }
 0x235   :  { %1364 = vmatpush3.msra.mxu0 %v888_v49 }
 0x236   :  { %1332 = vmatmul.mubr.msk.f32.gmra.mxu1 %vm73_vm1, %v582_v48  ;;  %1365 = vmatprep.subr.mxu0 %v1504_v0 }
 0x237   :  { %1334 = vmatprep.mubr.msk.f32.mxu1 %vm1505_vm0, %v1504_v0  ;;  %1366 = vmatpush3.msra.mxu0 %v887_v1 }
 0x238   :  { %1367 = vmatprep.subr.mxu0 %v1504_v0 }
 0x239   :  { %1368 = vmatpush3.msra.mxu0 %v886_v2 }
 0x23a   :  { %1335 = vmatmul.mubr.msk.f32.gmra.mxu1 %vm73_vm1, %v583_v19  ;;  %1369 = vmatprep.subr.mxu0 %v1504_v0 }
 0x23b   :  { %1337 = vmatprep.mubr.msk.f32.mxu1 %vm1505_vm0, %v1504_v0  ;;  %1370 = vmatpush3.msra.mxu0 %v885_v24 }
 0x23c   :  { %1371 = vmatprep.subr.mxu0 %v1504_v0 }
 0x23d   :  { %1372 = vmatpush3.msra.mxu0 %v884_v6 }
 0x23e   :  { %1338 = vmatmul.mubr.msk.f32.gmra.mxu1 %vm73_vm1, %v584_v52  ;;  %1373 = vmatprep.subr.mxu0 %v1504_v0 }
 0x23f   :  { %1340 = vmatprep.mubr.msk.f32.mxu1 %vm1505_vm0, %v1504_v0  ;;  %1374 = vmatpush3.msra.mxu0 %v883_v11 }
 0x242   :  { %1341 = vmatmul.mubr.msk.f32.gmra.mxu1 %vm73_vm1, %v585_v42 }
 0x2c2   :  { %v714_v12 = vpop.f32.mrf.mxu1 }
 0x2c3   :  { %v715_v60 = vadd.f32 %v2123_v26, %v714_v12 }
 0x2c4   :  { %v1294_v14 = vpop.f32.mrf.mxu1 }
 0x2c5   :  { %v815_v59 = vmul.f32 0.70710677, %v715_v60  ;;  %v798_v38 = vmul.f32 0.5, %v715_v60 }
 0x2c6   :  { %v719_v15 = vpop.f32.mrf.mxu1 }
 0x2c7   :  { %1470 = verf.f32 %v815_v59  ;;  %v720_v16 = vadd.f32 %v2123_v26, %v719_v15 }
 0x2c8   :  { %v1297_v17 = vpop.f32.mrf.mxu1 }
 0x2c9   :  { %v816_v9 = vmul.f32 0.70710677, %v720_v16  ;;  %v799_v48 = vmul.f32 0.5, %v720_v16 }
 0x2ca   :  { %v724_v10 = vpop.f32.mrf.mxu1 }
 0x2cb   :  { %1472 = verf.f32 %v816_v9  ;;  %v725_v20 = vadd.f32 %v2123_v26, %v724_v10 }
 0x2cc   :  { %v1300_v22 = vpop.f32.mrf.mxu1 }
 0x2cd   :  { %v817_v23 = vmul.f32 0.70710677, %v725_v20  ;;  %v800_v5 = vmul.f32 0.5, %v725_v20 }
 0x2ce   :  { %v729_v32 = vpop.f32.mrf.mxu1 }
 0x2cf   :  { %1474 = verf.f32 %v817_v23  ;;  %v730_v7 = vadd.f32 %v2123_v26, %v729_v32 }
 0x2d0   :  { %v1303_v28 = vpop.f32.mrf.mxu1 }
 0x2d1   :  { %v818_v30 = vmul.f32 0.70710677, %v730_v7  ;;  %v801_v11 = vmul.f32 0.5, %v730_v7 }
 0x2d2   :  { %v734_v31 = vpop.f32.mrf.mxu1 }
 0x2d3   :  { %1476 = verf.f32 %v818_v30  ;;  %v735_v33 = vadd.f32 %v2123_v26, %v734_v31 }
 0x2d4   :  { %v1471_v27 = vpop.eup %1470  ;;  %v1306_v13 = vpop.f32.mrf.mxu1 }
 0x2d5   :  { %v849_v39 = vadd.f32 1.0, %v1471_v27  ;;  %v819_v40 = vmul.f32 0.70710677, %v735_v33  ;;  %v802_v9 = vmul.f32 0.5, %v735_v33 }
 0x2d6   :  { %v739_v42 = vpop.f32.mrf.mxu1 }
 0x2d7   :  { %v866_v25 = vmul.f32 %v849_v39, %v798_v38  ;;  %1478 = verf.f32 %v819_v40  ;;  %v740_v3 = vadd.f32 %v2123_v26, %v739_v42 }
 0x2d8   :  { %v1473_v41 = vpop.eup %1472  ;;  %v1309_v46 = vpop.f32.mrf.mxu1 }
 0x2d9   :  { %v820_v50 = vmul.f32 0.70710677, %v740_v3  ;;  %1376 = vmatmul.mubr.f32.vlgmr.msra.gmra.mxu0 %v866_v25  ;;  %v850_v51 = vadd.f32 1.0, %v1473_v41  ;;  %v803_v30 = vmul.f32 0.5, %v740_v3 }
 0x2da   :  { %v744_v19 = vpop.f32.mrf.mxu1  ;;  %1378 = vmatprep.mubr.msk.f32.mxu0 %vm1505_vm0, %v1504_v0 }
 0x2db   :  { %1480 = verf.f32 %v820_v50  ;;  %v745_v47 = vadd.f32 %v2123_v26, %v744_v19  ;;  %v867_v52 = vmul.f32 %v850_v51, %v799_v48 }
 0x2dc   :  { %v1475_v4 = vpop.eup %1474  ;;  %v1312_v56 = vpop.f32.mrf.mxu1 }
 0x2dd   :  { %v821_v54 = vmul.f32 0.70710677, %v745_v47  ;;  %1379 = vmatmul.mubr.f32.gmra.mxu0 %v867_v52  ;;  %v851_v55 = vadd.f32 1.0, %v1475_v4  ;;  %v804_v42 = vmul.f32 0.5, %v745_v47 }
 0x2de   :  { %v749_v49 = vpop.f32.mrf.mxu1  ;;  %1381 = vmatprep.mubr.msk.f32.mxu0 %vm1505_vm0, %v1504_v0 }
 0x2df   :  { %1482 = verf.f32 %v821_v54  ;;  %v750_v1 = vadd.f32 %v2123_v26, %v749_v49  ;;  %v868_v2 = vmul.f32 %v851_v55, %v800_v5 }
 0x2e0   :  { %v1477_v24 = vpop.eup %1476  ;;  %v1315_v6 = vpop.f32.mrf.mxu1 }
 0x2e1   :  { %v822_v12 = vmul.f32 0.70710677, %v750_v1  ;;  %1382 = vmatmul.mubr.f32.gmra.mxu0 %v868_v2  ;;  %v852_v60 = vadd.f32 1.0, %v1477_v24  ;;  %v805_v19 = vmul.f32 0.5, %v750_v1 }
 0x2e2   :  { %v754_v14 = vpop.f32.mrf.mxu1  ;;  %1384 = vmatprep.mubr.msk.f32.mxu0 %vm1505_vm0, %v1504_v0 }
 0x2e3   :  { %1484 = verf.f32 %v822_v12  ;;  %v755_v59 = vadd.f32 %v2123_v26, %v754_v14  ;;  %v869_v15 = vmul.f32 %v852_v60, %v801_v11 }
 0x2e4   :  { %v1479_v16 = vpop.eup %1478  ;;  %v1318_v17 = vpop.f32.mrf.mxu1 }
 0x2e5   :  { %v823_v10 = vmul.f32 0.70710677, %v755_v59  ;;  %1385 = vmatmul.mubr.f32.gmra.mxu0 %v869_v15  ;;  %v853_v20 = vadd.f32 1.0, %v1479_v16  ;;  %v806_v49 = vmul.f32 0.5, %v755_v59 }
 0x2e6   :  { %v759_v22 = vpop.f32.mrf.mxu1  ;;  %1387 = vmatprep.mubr.msk.f32.mxu0 %vm1505_vm0, %v1504_v0 }
 0x2e7   :  { %1486 = verf.f32 %v823_v10  ;;  %v760_v23 = vadd.f32 %v2123_v26, %v759_v22  ;;  %v870_v32 = vmul.f32 %v853_v20, %v802_v9 }
 0x2e8   :  { %v1481_v7 = vpop.eup %1480  ;;  %v1321_v28 = vpop.f32.mrf.mxu1 }
 0x2e9   :  { %v824_v31 = vmul.f32 0.70710677, %v760_v23  ;;  %1388 = vmatmul.mubr.f32.gmra.mxu0 %v870_v32  ;;  %v854_v27 = vadd.f32 1.0, %v1481_v7  ;;  %v807_v14 = vmul.f32 0.5, %v760_v23 }
 0x2ea   :  { %v764_v13 = vpop.f32.mrf.mxu1  ;;  %1390 = vmatprep.mubr.msk.f32.mxu0 %vm1505_vm0, %v1504_v0 }
 0x2eb   :  { %1488 = verf.f32 %v824_v31  ;;  %v765_v33 = vadd.f32 %v2123_v26, %v764_v13  ;;  %v871_v38 = vmul.f32 %v854_v27, %v803_v30 }
 0x2ec   :  { %v1483_v39 = vpop.eup %1482  ;;  %v1324_v40 = vpop.f32.mrf.mxu1 }
 0x2ed   :  { %v825_v25 = vmul.f32 0.70710677, %v765_v33  ;;  %1391 = vmatmul.mubr.f32.gmra.mxu0 %v871_v38  ;;  %v855_v41 = vadd.f32 1.0, %v1483_v39  ;;  %v808_v22 = vmul.f32 0.5, %v765_v33 }
 0x2ee   :  { %v769_v46 = vpop.f32.mrf.mxu1  ;;  %1393 = vmatprep.mubr.msk.f32.mxu0 %vm1505_vm0, %v1504_v0 }
 0x2ef   :  { %1490 = verf.f32 %v825_v25  ;;  %v770_v3 = vadd.f32 %v2123_v26, %v769_v46  ;;  %v872_v48 = vmul.f32 %v855_v41, %v804_v42 }
 0x2f0   :  { %v1485_v50 = vpop.eup %1484  ;;  %v1327_v51 = vpop.f32.mrf.mxu1 }
 0x2f1   :  { %v826_v52 = vmul.f32 0.70710677, %v770_v3  ;;  %1394 = vmatmul.mubr.f32.gmra.mxu0 %v872_v48  ;;  %v856_v4 = vadd.f32 1.0, %v1485_v50  ;;  %v809_v13 = vmul.f32 0.5, %v770_v3 }
 0x2f2   :  { %v774_v56 = vpop.f32.mrf.mxu1  ;;  %1396 = vmatprep.mubr.msk.f32.mxu0 %vm1505_vm0, %v1504_v0 }
 0x2f3   :  { %1492 = verf.f32 %v826_v52  ;;  %v775_v47 = vadd.f32 %v2123_v26, %v774_v56  ;;  %v873_v5 = vmul.f32 %v856_v4, %v805_v19 }
 0x2f4   :  { %v1487_v54 = vpop.eup %1486  ;;  %v1330_v55 = vpop.f32.mrf.mxu1 }
 0x2f5   :  { %v827_v2 = vmul.f32 0.70710677, %v775_v47  ;;  %1397 = vmatmul.mubr.f32.gmra.mxu0 %v873_v5  ;;  %v857_v24 = vadd.f32 1.0, %v1487_v54  ;;  %v810_v46 = vmul.f32 0.5, %v775_v47 }
 0x2f6   :  { %v779_v6 = vpop.f32.mrf.mxu1  ;;  %1399 = vmatprep.mubr.msk.f32.mxu0 %vm1505_vm0, %v1504_v0 }
 0x2f7   :  { %1494 = verf.f32 %v827_v2  ;;  %v780_v1 = vadd.f32 %v2123_v26, %v779_v6  ;;  %v874_v11 = vmul.f32 %v857_v24, %v806_v49 }
 0x2f8   :  { %v1489_v12 = vpop.eup %1488  ;;  %v1333_v60 = vpop.f32.mrf.mxu1 }
 0x2f9   :  { %v828_v15 = vmul.f32 0.70710677, %v780_v1  ;;  %1400 = vmatmul.mubr.f32.gmra.mxu0 %v874_v11  ;;  %v858_v16 = vadd.f32 1.0, %v1489_v12  ;;  %v811_v19 = vmul.f32 0.5, %v780_v1  ;;  %v2177_v60 = vld [vmem:[%s2290_s9] ss:$0 sm:$0xff] }
 0x2fa   :  { %v784_v17 = vpop.f32.mrf.mxu1  ;;  %1402 = vmatprep.mubr.msk.f32.mxu0 %vm1505_vm0, %v1504_v0 }
 0x2fb   :  { %1496 = verf.f32 %v828_v15  ;;  %v785_v59 = vadd.f32 %v2123_v26, %v784_v17  ;;  %v875_v9 = vmul.f32 %v858_v16, %v807_v14 }
 0x2fc   :  { %v1491_v10 = vpop.eup %1490  ;;  %v1336_v20 = vpop.f32.mrf.mxu1 }
 0x2fd   :  { %v829_v32 = vmul.f32 0.70710677, %v785_v59  ;;  %1403 = vmatmul.mubr.f32.gmra.mxu0 %v875_v9  ;;  %v859_v7 = vadd.f32 1.0, %v1491_v10  ;;  %v812_v56 = vmul.f32 0.5, %v785_v59 }
 0x2fe   :  { %v789_v28 = vpop.f32.mrf.mxu1  ;;  %1405 = vmatprep.mubr.msk.f32.mxu0 %vm1505_vm0, %v1504_v0 }
 0x2ff   :  { %1498 = verf.f32 %v829_v32  ;;  %v790_v23 = vadd.f32 %v2123_v26, %v789_v28  ;;  %v876_v30 = vmul.f32 %v859_v7, %v808_v22 }
 0x300   :  { %v1493_v31 = vpop.eup %1492  ;;  %v1339_v27 = vpop.f32.mrf.mxu1 }
 0x301   :  { %v830_v38 = vmul.f32 0.70710677, %v790_v23  ;;  %1406 = vmatmul.mubr.f32.gmra.mxu0 %v876_v30  ;;  %v860_v39 = vadd.f32 1.0, %v1493_v31  ;;  %v813_v55 = vmul.f32 0.5, %v790_v23 }
 0x302   :  { %v794_v40 = vpop.f32.mrf.mxu1  ;;  %1408 = vmatprep.mubr.msk.f32.mxu0 %vm1505_vm0, %v1504_v0 }
 0x303   :  { %1500 = verf.f32 %v830_v38  ;;  %v795_v33 = vadd.f32 %v2123_v26, %v794_v40  ;;  %v877_v42 = vmul.f32 %v860_v39, %v809_v13 }
 0x304   :  { %v1495_v25 = vpop.eup %1494  ;;  %v1342_v41 = vpop.f32.mrf.mxu1 }
 0x305   :  { %v831_v48 = vmul.f32 0.70710677, %v795_v33  ;;  %1409 = vmatmul.mubr.f32.gmra.mxu0 %v877_v42  ;;  %v861_v50 = vadd.f32 1.0, %v1495_v25  ;;  %v814_v6 = vmul.f32 0.5, %v795_v33 }
 0x306   :  { %1411 = vmatprep.mubr.msk.f32.mxu0 %vm1505_vm0, %v1504_v0 }
 0x307   :  { %1502 = verf.f32 %v831_v48  ;;  %v878_v3 = vmul.f32 %v861_v50, %v810_v46 }
 0x308   :  { %v1497_v51 = vpop.eup %1496 }
 0x309   :  { %1412 = vmatmul.mubr.f32.gmra.mxu0 %v878_v3  ;;  %v862_v52 = vadd.f32 1.0, %v1497_v51 }
 0x30a   :  { %1414 = vmatprep.mubr.msk.f32.mxu0 %vm1505_vm0, %v1504_v0 }
 0x30b   :  { %v879_v26 = vmul.f32 %v862_v52, %v811_v19 }
 0x30c   :  { %v1499_v4 = vpop.eup %1498 }
 0x30d   :  { %1415 = vmatmul.mubr.f32.gmra.mxu0 %v879_v26  ;;  %v863_v47 = vadd.f32 1.0, %v1499_v4 }
 0x30e   :  { %1417 = vmatprep.mubr.msk.f32.mxu0 %vm1505_vm0, %v1504_v0 }
 0x30f   :  { %v880_v5 = vmul.f32 %v863_v47, %v812_v56 }
 0x310   :  { %v1501_v54 = vpop.eup %1500 }
 0x311   :  { %1418 = vmatmul.mubr.f32.gmra.mxu0 %v880_v5  ;;  %v864_v49 = vadd.f32 1.0, %v1501_v54 }
 0x312   :  { %1420 = vmatprep.mubr.msk.f32.mxu0 %vm1505_vm0, %v1504_v0 }
 0x313   :  { %v881_v2 = vmul.f32 %v864_v49, %v813_v55 }
 0x314   :  { %v1503_v24 = vpop.eup %1502 }
 0x315   :  { %1421 = vmatmul.mubr.f32.gmra.mxu0 %v881_v2  ;;  %v865_v1 = vadd.f32 1.0, %v1503_v24 }
 0x316   :  { %1423 = vmatprep.mubr.msk.f32.mxu0 %vm1505_vm0, %v1504_v0 }
 0x317   :  { %v882_v11 = vmul.f32 %v865_v1, %v814_v6 }
 0x319   :  { %1424 = vmatmul.mubr.f32.gmra.mxu0 %v882_v11 }
 0x399   :  { %v965_v12 = vpop.f32.mrf.mxu0 }
 0x39a   :  { %v1049_v14 = vadd.f32 %v965_v12, %v1701_v29 }
 0x39b   :  { %v1377_v15 = vpop.f32.mrf.mxu0 }
 0x39c   :  { %v1073_v16 = vadd.f32 %v2177_v60, %v1049_v14 }
 0x39d   :  { %v970_v17 = vpop.f32.mrf.mxu0 }
 0x39e   :  { %1090 = vst.msk [vmem:[%s2291_s10] sm:$0xff] %vm73_vm1, %v1073_v16  ;;  %v1050_v0 = vadd.f32 %v970_v17, %v1709_v37 }
 0x39f   :  { %v1380_v59 = vpop.f32.mrf.mxu0 }
 0x3a0   :  { %v1074_v9 = vadd.f32 %v2177_v60, %v1050_v0 }
 0x3a1   :  { %v975_v10 = vpop.f32.mrf.mxu0 }
 0x3a2   :  { %1091 = vst.msk [vmem:[%s2291_s10 + $0x8] sm:$0xff] %vm73_vm1, %v1074_v9  ;;  %v1051_v29 = vadd.f32 %v975_v10, %v1717_v45 }
 0x3a3   :  { %v1383_v20 = vpop.f32.mrf.mxu0 }
 0x3a4   :  { %v1075_v22 = vadd.f32 %v2177_v60, %v1051_v29 }
 0x3a5   :  { %v980_v32 = vpop.f32.mrf.mxu0 }
 0x3a6   :  { %1092 = vst.msk [vmem:[%s2291_s10 + $0x10] sm:$0xff] %vm73_vm1, %v1075_v22  ;;  %v1052_v37 = vadd.f32 %v980_v32, %v1725_v53 }
 0x3a7   :  { %v1386_v7 = vpop.f32.mrf.mxu0 }
 0x3a8   :  { %v1076_v28 = vadd.f32 %v2177_v60, %v1052_v37 }
 0x3a9   :  { %v985_v23 = vpop.f32.mrf.mxu0 }
 0x3aa   :  { %1093 = vst.msk [vmem:[%s2291_s10 + $0x18] sm:$0xff] %vm73_vm1, %v1076_v28  ;;  %v1053_v45 = vadd.f32 %v985_v23, %v1733_v61 }
 0x3ab   :  { %v1389_v30 = vpop.f32.mrf.mxu0 }
 0x3ac   :  { %v1077_v31 = vadd.f32 %v2177_v60, %v1053_v45 }
 0x3ad   :  { %v990_v27 = vpop.f32.mrf.mxu0 }
 0x3ae   :  { %1094 = vst.msk [vmem:[%s2291_s10 + $0x20] sm:$0xff] %vm73_vm1, %v1077_v31  ;;  %v1054_v53 = vadd.f32 %v990_v27, %v1744_v8 }
 0x3af   :  { %v1392_v13 = vpop.f32.mrf.mxu0 }
 0x3b0   :  { %v1078_v38 = vadd.f32 %v2177_v60, %v1054_v53 }
 0x3b1   :  { %v995_v39 = vpop.f32.mrf.mxu0 }
 0x3b2   :  { %1095 = vst.msk [vmem:[%s2291_s10 + $0x28] sm:$0xff] %vm73_vm1, %v1078_v38  ;;  %v1055_v61 = vadd.f32 %v995_v39, %v1761_v21 }
 0x3b3   :  { %v1395_v40 = vpop.f32.mrf.mxu0 }
 0x3b4   :  { %v1079_v33 = vadd.f32 %v2177_v60, %v1055_v61 }
 0x3b5   :  { %v1000_v42 = vpop.f32.mrf.mxu0 }
 0x3b6   :  { %1096 = vst.msk [vmem:[%s2291_s10 + $0x30] sm:$0xff] %vm73_vm1, %v1079_v33  ;;  %v1056_v8 = vadd.f32 %v1000_v42, %v1778_v36 }
 0x3b7   :  { %v1398_v25 = vpop.f32.mrf.mxu0 }
 0x3b8   :  { %v1080_v41 = vadd.f32 %v2177_v60, %v1056_v8 }
 0x3b9   :  { %v1005_v46 = vpop.f32.mrf.mxu0 }
 0x3ba   :  { %1097 = vst.msk [vmem:[%s2291_s10 + $0x38] sm:$0xff] %vm73_vm1, %v1080_v41  ;;  %v1057_v21 = vadd.f32 %v1005_v46, %v1758_v18 }
 0x3bb   :  { %v1401_v48 = vpop.f32.mrf.mxu0 }
 0x3bc   :  { %v1081_v50 = vadd.f32 %v2177_v60, %v1057_v21 }
 0x3bd   :  { %v1010_v3 = vpop.f32.mrf.mxu0 }
 0x3be   :  { %1098 = vst.msk [vmem:[%s2291_s10 + $0x40] sm:$0xff] %vm73_vm1, %v1081_v50  ;;  %v1058_v36 = vadd.f32 %v1010_v3, %v1772_v34 }
 0x3bf   :  { %v1404_v51 = vpop.f32.mrf.mxu0 }
 0x3c0   :  { %v1082_v19 = vadd.f32 %v2177_v60, %v1058_v36 }
 0x3c1   :  { %v1015_v52 = vpop.f32.mrf.mxu0 }
 0x3c2   :  { %1099 = vst.msk [vmem:[%s2291_s10 + $0x48] sm:$0xff] %vm73_vm1, %v1082_v19  ;;  %v1059_v18 = vadd.f32 %v1015_v52, %v1775_v35 }
 0x3c3   :  { %v1407_v26 = vpop.f32.mrf.mxu0 }
 0x3c4   :  { %v1083_v4 = vadd.f32 %v2177_v60, %v1059_v18 }
 0x3c5   :  { %v1020_v56 = vpop.f32.mrf.mxu0 }
 0x3c6   :  { %1100 = vst.msk [vmem:[%s2291_s10 + $0x50] sm:$0xff] %vm73_vm1, %v1083_v4  ;;  %v1060_v34 = vadd.f32 %v1020_v56, %v1791_v43 }
 0x3c7   :  { %v1410_v47 = vpop.f32.mrf.mxu0 }
 0x3c8   :  { %v1084_v5 = vadd.f32 %v2177_v60, %v1060_v34 }
 0x3c9   :  { %v1025_v54 = vpop.f32.mrf.mxu0 }
 0x3ca   :  { %1101 = vst.msk [vmem:[%s2291_s10 + $0x58] sm:$0xff] %vm73_vm1, %v1084_v5  ;;  %v1061_v35 = vadd.f32 %v1025_v54, %v1794_v44 }
 0x3cb   :  { %v1413_v55 = vpop.f32.mrf.mxu0 }
 0x3cc   :  { %v1085_v49 = vadd.f32 %v2177_v60, %v1061_v35 }
 0x3cd   :  { %v1030_v2 = vpop.f32.mrf.mxu0 }
 0x3ce   :  { %1102 = vst.msk [vmem:[%s2291_s10 + $0x60] sm:$0xff] %vm73_vm1, %v1085_v49  ;;  %v1062_v43 = vadd.f32 %v1030_v2, %v1811_v57 }
 0x3cf   :  { %v1416_v24 = vpop.f32.mrf.mxu0 }
 0x3d0   :  { %v1086_v6 = vadd.f32 %v2177_v60, %v1062_v43 }
 0x3d1   :  { %v1035_v1 = vpop.f32.mrf.mxu0 }
 0x3d2   :  { %1103 = vst.msk [vmem:[%s2291_s10 + $0x68] sm:$0xff] %vm73_vm1, %v1086_v6  ;;  %v1063_v44 = vadd.f32 %v1035_v1, %v1814_v58 }
 0x3d3   :  { %v1419_v11 = vpop.f32.mrf.mxu0 }
 0x3d4   :  { %v1087_v12 = vadd.f32 %v2177_v60, %v1063_v44 }
 0x3d5   :  { %v1040_v14 = vpop.f32.mrf.mxu0 }
 0x3d6   :  { %1104 = vst.msk [vmem:[%s2291_s10 + $0x70] sm:$0xff] %vm73_vm1, %v1087_v12  ;;  %v1064_v57 = vadd.f32 %v1040_v14, %v1817_v62 }
 0x3d7   :  { %v1422_v15 = vpop.f32.mrf.mxu0 }
 0x3d8   :  { %v1088_v16 = vadd.f32 %v2177_v60, %v1064_v57 }
 0x3d9   :  { %v1045_v17 = vpop.f32.mrf.mxu0 }
 0x3da   :  { %1105 = vst.msk [vmem:[%s2291_s10 + $0x78] sm:$0xff] %vm73_vm1, %v1088_v16  ;;  %v1065_v58 = vadd.f32 %v1045_v17, %v1820_v63 }
 0x3db   :  { %v1425_v0 = vpop.f32.mrf.mxu0 }
 0x3dc   :  { %v1089_v59 = vadd.f32 %v2177_v60, %v1065_v58 }
 0x3de   :  { %1106 = vst.msk [vmem:[%s2291_s10 + $0x80] sm:$0xff] %vm73_vm1, %v1089_v59 }

// kernel: swin_block_forward.4
= control target key start
LH: loop header
LB: loop body
LE: loop exit
PB: predicated region body
PF: predicated region fallthrough
CT: control target
= control target key end

     0   :  { %s5715_s15 = smov 0   ;;  %s7922_s0 = inlined_call_operand.vmem [shape: f32[2,65,96], index: 0, kind: input, shape index: {}]   ;;  %s7923_s1 = inlined_call_operand.vmem [shape: f32[2,4,16,96], index: 1, kind: input, shape index: {}]   ;;  %s7924_s2 = inlined_call_operand.vmem [shape: f32[4,16,17], index: 2, kind: input, shape index: {}]   ;;  %s7925_s3 = inlined_call_operand.vmem [shape: f32[2,4,16,32], index: 3, kind: output, shape index: {0}]   ;;  %s7926_s4 = inlined_call_operand.vmem [shape: f32[2,1,32], index: 4, kind: output, shape index: {1}]  }
   0x1 LB: > { %s4890_s16 = sadd.s32 4294967295, %s5673_s15   ;;  %p4894_p0 = scmp.ge.s32.totalorder %s5673_s15, 1  ;;  %s5673_s15 = sphi %s5715_s15, %s15_s15  }
   0x2   : > { %p175_p1 = scmp.lt.s32.totalorder %s5673_s15, 3 }
   0x4   : > { %p176_p2 = pnand %p4894_p0, %p175_p1 }
   0x6   : > { %179 = sbr.rel (%p176_p2) target bundleno = 2832 (0xb10), region = 32 }
   0xb   : > { %p209_p3 = scmp.lt.s32.totalorder %s4890_s16, 1  ;;  %v617_v2 = vlaneseq  ;;  %s5675_s20 = smov 96   ;;  %vm258_vm0 = vcmask 64512   ;;  %vm657_vm1 = vcmask 130048   ;;  %vm4206_vm2 = vcmask 57344  }
   0xc   : > { %s5676_s25 = smov 64   ;;  %s5677_s26 = smov 88   ;;  %vm4214_vm3 = vcmask 1040384   ;;  %vm4287_vm4 = vcmask 589312   ;;  %vm4442_vm5 = vcmask 654912   ;;  %vm4303_vm6 = vcmask 582144  }
   0xd   : > { %s8049_s16 = smov (!%p209_p3, %s4890_s16), 1  ;;  %v5758_v7 = vshrl.u32 %v617_v2, 7  ;;  %s5678_s27 = smov 120   ;;  %vm4458_vm7 = vcmask 647744   ;;  %vm4597_vm8 = vcmask 720512   ;;  %vm4613_vm9 = vcmask 713344  }
   0xe   : > { %s4998_s2 = sshll.u32 %s8049_s16, 6  ;;  %s5352_s21 = smul.u32 72, %s8049_s16  ;;  %vm4752_vm10 = vcmask 786112   ;;  %vm4768_vm11 = vcmask 778944   ;;  %vm4110_vm12 = vcmask 195584   ;;  %vm4119_vm13 = vcmask 261120  }
   0xf   : > { %s5731_s19 = scalar_lea.vmem %s7923_s1, %s4998_s2  ;;  %7937 = vst [vmem:[#allocation2_spill] sm:$0xff] %v5758_v7  ;;  %v7927_v10 = vsub.s32 0, %v5758_v7  ;;  %s5679_s28 = smov 56   ;;  %vm4796_vm14 = vcmask 253952  }
  0x10   : > { %v5734_v0 = vld [vmem:[%s5731_s19 + $0x8] sm:$0xff]  ;;  %v5737_v1 = vld [vmem:[%s5731_s19] sm:$0xff]  ;;  %v5747_v4 = vld [vmem:[%s5731_s19 + $0x18] sm:$0xff]  ;;  %s5775_s24 = scalar_lea.vmem %s7922_s0, %s5352_s21  ;;  %s5680_s29 = smov 80  }
  0x11   : > { %256 = vrot.lane.b32.xlu0 %v5734_v0, %s5675_s20  ;;  %254 = vrot.lane.b32.xlu1 %v5737_v1, %s5675_s20  ;;  %v5744_v3 = vmul.f32 0.35355338, %v5737_v1  ;;  %v5750_v5 = vld [vmem:[%s5731_s19 + $0x10] sm:$0xff]  ;;  %v5765_v8 = vld [vmem:[%s5731_s19 + $0x28] sm:$0xff]  ;;  %v5804_v19 = vmul.f32 0.35355338, %v5734_v0  ;;  %s7857_s17 = scalar_lea.vmem %s7925_s3, %s4998_s2 }
  0x12   : > { %v5756_v6 = vmul.f32 0.35355338, %v5750_v5  ;;  %v5768_v9 = vld [vmem:[%s5731_s19 + $0x38] sm:$0xff]  ;;  %v227_v11 = vld [vmem:[%s5775_s24] sm:$0xff]  ;;  %v5787_v13 = vld [vmem:[%s5731_s19 + $0x30] sm:$0xff]  ;;  %s5681_s30 = smov 112  }
  0x13   : > { %5132 = vmatprep.mubr.msk.f32.mxu0 %vm258_vm0, %v5744_v3  ;;  %v5784_v12 = vld [vmem:[%s5731_s19 + $0x20] sm:$0xff]  ;;  %v5791_v14 = vrot.slane %v227_v11, %v7927_v10  ;;  %v5816_v23 = vmul.f32 0.35355338, %v5747_v4  ;;  %v5824_v24 = vmul.f32 0.35355338, %v5787_v13  ;;  %s5682_s5 = smov 48  }
  0x14   : > { %5139 = vmatprep.mubr.msk.f32.mxu1 %vm258_vm0, %v5756_v6  ;;  %v5810_v20 = vmul.f32 0.35355338, %v5784_v12  ;;  %v5830_v27 = vmul.f32 0.35355338, %v5765_v8  ;;  %v5838_v28 = vmul.f32 0.35355338, %v5768_v9 }
  0x15   : > { %348 = vrot.lane.b32.xlu0 %v5747_v4, %s5675_s20  ;;  %346 = vrot.lane.b32.xlu1 %v5750_v5, %s5675_s20  ;;  %7938 = vst [vmem:[#allocation3_spill] sm:$0xff] %v5791_v14  ;;  %s5683_s6 = smov 72   ;;  %s5684_s7 = smov 104  }
  0x16   : > { %s5685_s8 = smov 32   ;;  %s5686_s9 = smov 40  }
  0x17   : > { %s5687_s10 = smov 8   ;;  %s5688_s11 = smov 16  }
  0x18   : > { %s5689_s12 = smov 24  }
  0x19   : > { %439 = vrot.lane.b32.xlu0 %v5765_v8, %s5675_s20  ;;  %530 = vrot.lane.b32.xlu1 %v5768_v9, %s5675_s20 }
  0x1d   : > { %437 = vrot.lane.b32.xlu0 %v5784_v12, %s5675_s20  ;;  %528 = vrot.lane.b32.xlu1 %v5787_v13, %s5675_s20 }
  0x21   : > { %622 = vrot.lane.b32.xlu0 %v5791_v14, %s5675_s20 }
  0x83   : > { %v257_v15 = vpop.permute.xlu0 %256  ;;  %v255_v16 = vpop.permute.xlu1 %254 }
  0x84   : > { %5128 = vmatprep.subr.msk.mxu0 %vm258_vm0, %v257_v15 }
  0x85   : > { %5129 = vmatpush3.xpose.msk.msra.mxu0 %vm258_vm0, %v257_v15 }
  0x86   : > { %5130 = vmatprep.subr.msk.mxu0 %vm258_vm0, %v255_v16 }
  0x87   : > { %v349_v17 = vpop.permute.xlu0 %348  ;;  %v347_v18 = vpop.permute.xlu1 %346 }
  0x88   : > { %5135 = vmatprep.subr.msk.mxu1 %vm258_vm0, %v349_v17 }
  0x89   : > { %5131 = vmatpush3.xpose.msk.msra.mxu0 %vm258_vm0, %v255_v16  ;;  %5136 = vmatpush3.xpose.msk.msra.mxu1 %vm258_vm0, %v349_v17 }
  0x8a   : > { %5137 = vmatprep.subr.msk.mxu1 %vm258_vm0, %v347_v18 }
  0x8b   : > { %v440_v21 = vpop.permute.xlu0 %439  ;;  %v531_v22 = vpop.permute.xlu1 %530 }
  0x8c   : > { %5133 = vmatmul.mubr.msk.f32.vlgmr.msra.gmra.mxu0 %vm258_vm0, %v5804_v19  ;;  %5142 = vmatprep.subr.msk.mxu0 %vm258_vm0, %v440_v21 }
  0x8d   : > { %5138 = vmatpush3.xpose.msk.msra.mxu1 %vm258_vm0, %v347_v18  ;;  %5143 = vmatpush3.xpose.msk.msra.mxu0 %vm258_vm0, %v440_v21 }
  0x8e   : > { %5149 = vmatprep.subr.msk.mxu1 %vm258_vm0, %v531_v22  ;;  %5146 = vmatprep.mubr.msk.f32.mxu0 %vm258_vm0, %v5810_v20 }
  0x8f   : > { %v438_v25 = vpop.permute.xlu0 %437  ;;  %v529_v26 = vpop.permute.xlu1 %528 }
  0x90   : > { %5140 = vmatmul.mubr.msk.f32.vlgmr.msra.gmra.mxu1 %vm258_vm0, %v5816_v23  ;;  %5144 = vmatprep.subr.msk.mxu0 %vm258_vm0, %v438_v25 }
  0x91   : > { %5145 = vmatpush3.xpose.msk.msra.mxu0 %vm258_vm0, %v438_v25  ;;  %5150 = vmatpush3.xpose.msk.msra.mxu1 %vm258_vm0, %v531_v22 }
  0x92   : > { %5151 = vmatprep.subr.msk.mxu1 %vm258_vm0, %v529_v26  ;;  %5153 = vmatprep.mubr.msk.f32.mxu1 %vm258_vm0, %v5824_v24 }
  0x93   : > { %v623_v29 = vpop.permute.xlu0 %622 }
  0x94   : > { %5147 = vmatmul.mubr.msk.f32.vlgmr.msra.gmra.mxu0 %vm258_vm0, %v5830_v27  ;;  %v5843_v30 = vmul.f32 %v623_v29, %v5756_v6  ;;  %v5846_v31 = vmul.f32 %v623_v29, %v5744_v3  ;;  %v5849_v32 = vmul.f32 %v623_v29, %v5804_v19  ;;  %v5852_v33 = vmul.f32 %v623_v29, %v5816_v23 }
  0x95   : > { %5152 = vmatpush3.xpose.msk.msra.mxu1 %vm258_vm0, %v529_v26  ;;  %v5866_v38 = vmul.f32 %v623_v29, %v5810_v20  ;;  %v5869_v39 = vmul.f32 %v623_v29, %v5824_v24  ;;  %v5876_v42 = vmul.f32 %v623_v29, %v5830_v27  ;;  %v5879_v43 = vmul.f32 %v623_v29, %v5838_v28 }
  0x96   : > { %v639_v34 = vsel %vm258_vm0, %v5843_v30, 0.0  ;;  %v633_v35 = vsel %vm258_vm0, %v5846_v31, 0.0  ;;  %v636_v36 = vsel %vm258_vm0, %v5849_v32, 0.0  ;;  %v642_v37 = vsel %vm258_vm0, %v5852_v33, 0.0 }
  0x97   : > { %640 = vadd.xlane.f32.xlu0 %v639_v34  ;;  %634 = vadd.xlane.f32.xlu1 %v633_v35  ;;  %v645_v40 = vsel %vm258_vm0, %v5866_v38, 0.0  ;;  %v651_v41 = vsel %vm258_vm0, %v5869_v39, 0.0  ;;  %7939 = vst [vmem:[#allocation4_spill] sm:$0xff] %v5876_v42  ;;  %v648_v44 = vsel %vm258_vm0, %v5876_v42, 0.0  ;;  %v654_v45 = vsel %vm258_vm0, %v5879_v43, 0.0 }
  0x98   : > { %5154 = vmatmul.mubr.msk.f32.vlgmr.msra.gmra.mxu1 %vm258_vm0, %v5838_v28 }
  0x9b   : > { %637 = vadd.xlane.f32.xlu0 %v636_v36  ;;  %643 = vadd.xlane.f32.xlu1 %v642_v37 }
  0x9f   : > { %646 = vadd.xlane.f32.xlu0 %v645_v40  ;;  %652 = vadd.xlane.f32.xlu1 %v651_v41 }
  0xa3   : > { %649 = vadd.xlane.f32.xlu0 %v648_v44  ;;  %655 = vadd.xlane.f32.xlu1 %v654_v45 }
 0x120   : > { %v5938_v62 = vpop.xlane.xlu0 %640  ;;  %v5940_v63 = vpop.xlane.xlu1 %634 }
 0x124   : > { %v5942_v2 = vpop.xlane.xlu0 %637  ;;  %v5944_v11 = vpop.xlane.xlu1 %643 }
 0x128   : > { %v5946_v15 = vpop.xlane.xlu0 %646  ;;  %v5948_v16 = vpop.xlane.xlu1 %652 }
 0x12c   : > { %v5950_v17 = vpop.xlane.xlu0 %649  ;;  %v5952_v18 = vpop.xlane.xlu1 %655 }
 0x14c   : > { %v5134_v46 = vpop.f32.mrf.mxu0 }
 0x14d   : > { %v661_v47 = vsel %vm657_vm1, %v5134_v46, -inf }
 0x14e   : > { %662 = vmax.xlane.f32.xlu0 %v661_v47  ;;  %v335_v48 = vpop.f32.mrf.mxu0 }
 0x14f   : > { %v658_v49 = vsel %vm657_vm1, %v335_v48, -inf }
 0x150   : > { %v5141_v50 = vpop.f32.mrf.mxu1 }
 0x151   : > { %v667_v51 = vsel %vm657_vm1, %v5141_v50, -inf }
 0x152   : > { %v5888_v52 = vpop.f32.mrf.mxu1  ;;  %659 = vmax.xlane.f32.xlu0 %v658_v49  ;;  %668 = vmax.xlane.f32.xlu1 %v667_v51 }
 0x153   : > { %v664_v54 = vsel %vm657_vm1, %v5888_v52, -inf }
 0x154   : > { %v5890_v53 = vpop.f32.mrf.mxu0 }
 0x155   : > { %v673_v59 = vsel %vm657_vm1, %v5890_v53, -inf }
 0x156   : > { %v5894_v55 = vpop.f32.mrf.mxu0  ;;  %665 = vmax.xlane.f32.xlu1 %v664_v54 }
 0x157   : > { %v670_v56 = vsel %vm657_vm1, %v5894_v55, -inf }
 0x158   : > { %v5898_v57 = vpop.f32.mrf.mxu1  ;;  %671 = vmax.xlane.f32.xlu0 %v670_v56 }
 0x159   : > { %v679_v58 = vsel %vm657_vm1, %v5898_v57, -inf }
 0x15a   : > { %680 = vmax.xlane.f32.xlu1 %v679_v58  ;;  %v5920_v60 = vpop.f32.mrf.mxu1 }
 0x15b   : > { %v676_v61 = vsel %vm657_vm1, %v5920_v60, -inf }
 0x15c   : > { %674 = vmax.xlane.f32.xlu0 %v673_v59 }
 0x16b   : > { %899 = vrot.lane.b32.xlu1 %v5747_v4, %s5676_s25 }
 0x172   : > { %804 = vrot.lane.b32.xlu0 %v5734_v0, %s5676_s25 }
 0x176   : > { %897 = vrot.lane.b32.xlu0 %v5750_v5, %s5676_s25 }
 0x17a   : > { %1089 = vrot.lane.b32.xlu0 %v5768_v9, %s5676_s25 }
 0x17e   : > { %1087 = vrot.lane.b32.xlu0 %v5787_v13, %s5676_s25 }
 0x182   : > { %1279 = vrot.lane.b32.xlu0 %v5747_v4, %s5677_s26 }
 0x186   : > { %1277 = vrot.lane.b32.xlu0 %v5750_v5, %s5677_s26 }
 0x18a   : > { %1273 = vrot.lane.b32.xlu0 %v5756_v6, %s5678_s27 }
 0x18f   : > { %677 = vmax.xlane.f32.xlu1 %v676_v61 }
 0x1a0   : > { %802 = vrot.lane.b32.xlu1 %v5737_v1, %s5676_s25 }
 0x1a4   : > { %994 = vrot.lane.b32.xlu1 %v5765_v8, %s5676_s25 }
 0x1a8   : > { %992 = vrot.lane.b32.xlu1 %v5784_v12, %s5676_s25 }
 0x1ac   : > { %1188 = vrot.lane.b32.xlu1 %v5734_v0, %s5677_s26 }
 0x1b0   : > { %1186 = vrot.lane.b32.xlu1 %v5737_v1, %s5677_s26 }
 0x1b4   : > { %1182 = vrot.lane.b32.xlu1 %v5744_v3, %s5678_s27 }
 0x1b8   : > { %1370 = vrot.lane.b32.xlu1 %v5765_v8, %s5677_s26 }
 0x1d7   : > { %v663_v21 = vpop.xlane.xlu0 %662 }
 0x1d8   : > { %v5955_v22 = vmax.f32 %v663_v21, %v5942_v2 }
 0x1da   : > { %v691_v25 = vsub.f32 %v5134_v46, %v5955_v22 }
 0x1db   : > { %v660_v26 = vpop.xlane.xlu0 %659  ;;  %v669_v29 = vpop.xlane.xlu1 %668 }
 0x1dc   : > { %v700_v34 = vmul.f32 1.442695, %v691_v25  ;;  %v5959_v35 = vmax.f32 %v660_v26, %v5940_v63  ;;  %v5962_v36 = vmax.f32 %v669_v29, %v5944_v11 }
 0x1de   : > { %5376 = vpow2.f32 %v700_v34  ;;  %v690_v37 = vsub.f32 %v335_v48, %v5959_v35  ;;  %v693_v40 = vsub.f32 %v5141_v50, %v5962_v36 }
 0x1df   : > { %v666_v41 = vpop.xlane.xlu1 %665 }
 0x1e0   : > { %v698_v44 = vmul.f32 1.442695, %v690_v37  ;;  %v704_v45 = vmul.f32 1.442695, %v693_v40  ;;  %v5967_v47 = vmax.f32 %v666_v41, %v5938_v62 }
 0x1e1   : > { %v672_v46 = vpop.xlane.xlu0 %671 }
 0x1e2   : > { %5378 = vpow2.f32 %v698_v44  ;;  %v692_v49 = vsub.f32 %v5888_v52, %v5967_v47  ;;  %v5972_v51 = vmax.f32 %v672_v46, %v5946_v15  ;;  %v716_v10 = vsub.f32 %v5938_v62, %v5967_v47 }
 0x1e3   : > { %v681_v54 = vpop.xlane.xlu1 %680  ;;  %5380 = vpow2.f32 %v704_v45 }
 0x1e4   : > { %v702_v56 = vmul.f32 1.442695, %v692_v49  ;;  %v5975_v48 = vmax.f32 %v681_v54, %v5952_v18  ;;  %v694_v59 = vsub.f32 %v5894_v55, %v5972_v51  ;;  %v718_v62 = vsub.f32 %v5946_v15, %v5972_v51 }
 0x1e5   : > { %v675_v50 = vpop.xlane.xlu0 %674 }
 0x1e6   : > { %5382 = vpow2.f32 %v702_v56  ;;  %v5978_v58 = vmax.f32 %v675_v50, %v5950_v17  ;;  %v697_v52 = vsub.f32 %v5898_v57, %v5975_v48  ;;  %v706_v37 = vmul.f32 1.442695, %v694_v59 }
 0x1e7   : > { %v900_v61 = vpop.permute.xlu1 %899 }
 0x1e8   : > { %v695_v21 = vsub.f32 %v5890_v53, %v5978_v58  ;;  %5163 = vmatprep.subr.mxu1 %v900_v61  ;;  %v712_v25 = vmul.f32 1.442695, %v697_v52 }
 0x1e9   : > { %5164 = vmatpush3.msra.mxu1 %v900_v61  ;;  %v805_v26 = vpop.permute.xlu0 %804 }
 0x1ea   : > { %v708_v29 = vmul.f32 1.442695, %v695_v21  ;;  %5156 = vmatprep.subr.mxu0 %v805_v26  ;;  %5384 = vpow2.f32 %v712_v25 }
 0x1eb   : > { %v5986_v34 = vpop.eup %5376  ;;  %5157 = vmatpush3.msra.mxu0 %v805_v26 }
 0x1ec   : > { %v741_v55 = vsel %vm657_vm1, %v5986_v34, 0.0  ;;  %5386 = vpow2.f32 %v708_v29 }
 0x1ed   : > { %742 = vadd.xlane.f32.xlu0 %v741_v55  ;;  %v898_v57 = vpop.permute.xlu0 %897  ;;  %5388 = vpow2.f32 %v706_v37 }
 0x1ee   : > { %5165 = vmatprep.subr.mxu1 %v898_v57 }
 0x1ef   : > { %v5990_v40 = vpop.eup %5378  ;;  %5166 = vmatpush3.msra.mxu1 %v898_v57 }
 0x1f0   : > { %v738_v53 = vsel %vm657_vm1, %v5990_v40, 0.0  ;;  %v5994_v41 = vpop.eup %5380 }
 0x1f1   : > { %739 = vadd.xlane.f32.xlu0 %v738_v53  ;;  %v5996_v44 = vpop.permute.xlu0 %1089  ;;  %v747_v45 = vsel %vm657_vm1, %v5994_v41, 0.0 }
 0x1f2   : > { %5177 = vmatprep.subr.mxu1 %v5996_v44  ;;  %748 = vadd.xlane.f32.xlu1 %v747_v45 }
 0x1f3   : > { %v6001_v46 = vpop.eup %5382 }
 0x1f4   : > { %v744_v49 = vsel %vm657_vm1, %v6001_v46, 0.0 }
 0x1f5   : > { %v6063_v53 = vpop.permute.xlu0 %1087 }
 0x1f6   : > { %745 = vadd.xlane.f32.xlu1 %v744_v49  ;;  %v715_v49 = vsub.f32 %v5942_v2, %v5955_v22  ;;  %v726_v22 = vmul.f32 1.442695, %v716_v10 }
 0x1f7   : > { %v6005_v54 = vpop.eup %5384 }
 0x1f8   : > { %v759_v56 = vsel %vm657_vm1, %v6005_v54, 0.0 }
 0x1f9   : > { %v6009_v50 = vpop.eup %5386 }
 0x1fa   : > { %760 = vadd.xlane.f32.xlu1 %v759_v56  ;;  %v753_v59 = vsel %vm657_vm1, %v6009_v50, 0.0  ;;  %v6013_v52 = vpop.eup %5388  ;;  %v6069_v56 = vpop.permute.xlu0 %1279 }
 0x1fb   : > { %754 = vadd.xlane.f32.xlu0 %v753_v59  ;;  %v750_v61 = vsel %vm657_vm1, %v6013_v52, 0.0  ;;  %v724_v59 = vmul.f32 1.442695, %v715_v49 }
 0x1ff   : > { %751 = vadd.xlane.f32.xlu0 %v750_v61  ;;  %v714_v61 = vsub.f32 %v5940_v63, %v5959_v35  ;;  %v721_v63 = vsub.f32 %v5952_v18, %v5975_v48  ;;  %v719_v35 = vsub.f32 %v5950_v17, %v5978_v58 }
 0x201   : > { %v736_v49 = vmul.f32 1.442695, %v721_v63  ;;  %v732_v47 = vmul.f32 1.442695, %v719_v35 }
 0x215   : > { %1461 = vrot.lane.b32.xlu0 %v5768_v9, %s5677_s26 }
 0x218   : > { %v678_v21 = vpop.xlane.xlu1 %677 }
 0x219   : > { %v6020_v25 = vmax.f32 %v678_v21, %v5948_v16  ;;  %1275 = vrot.lane.b32.xlu0 %v5816_v23, %s5678_s27 }
 0x21b   : > { %v696_v26 = vsub.f32 %v5920_v60, %v6020_v25 }
 0x21c   : > { %v803_v29 = vpop.permute.xlu1 %802 }
 0x21d   : > { %v710_v37 = vmul.f32 1.442695, %v696_v26  ;;  %5158 = vmatprep.subr.mxu0 %v803_v29  ;;  %1459 = vrot.lane.b32.xlu0 %v5787_v13, %s5677_s26  ;;  %v717_v26 = vsub.f32 %v5944_v11, %v5962_v36 }
 0x21e   : > { %5159 = vmatpush3.msra.mxu0 %v803_v29  ;;  %v722_v29 = vmul.f32 1.442695, %v714_v61 }
 0x21f   : > { %5390 = vpow2.f32 %v710_v37  ;;  %v6077_v37 = vpop.permute.xlu0 %1277 }
 0x220   : > { %v6028_v55 = vpop.permute.xlu1 %994  ;;  %5392 = vpow2.f32 %v724_v59 }
 0x221   : > { %5170 = vmatprep.subr.mxu0 %v6028_v55  ;;  %1455 = vrot.lane.b32.xlu0 %v5824_v24, %s5678_s27  ;;  %5394 = vpow2.f32 %v722_v29 }
 0x223   : > { %v6087_v11 = vpop.permute.xlu0 %1273 }
 0x224   : > { %v6065_v45 = vpop.permute.xlu1 %992 }
 0x225   : > { %1457 = vrot.lane.b32.xlu0 %v5838_v28, %s5678_s27 }
 0x228   : > { %v6073_v21 = vpop.permute.xlu1 %1188 }
 0x229   : > { %1558 = vrot.lane.b32.xlu0 %v5843_v30, %s5678_s27 }
 0x22c   : > { %v6037_v60 = vpop.eup %5390  ;;  %v6081_v2 = vpop.permute.xlu1 %1186 }
 0x22d   : > { %v756_v57 = vsel %vm657_vm1, %v6037_v60, 0.0  ;;  %1560 = vrot.lane.b32.xlu0 %v5852_v33, %s5678_s27  ;;  %v5393_v59 = vpop.eup %5392 }
 0x22e   : > { %757 = vadd.xlane.f32.xlu1 %v756_v57  ;;  %v728_v57 = vmul.f32 1.442695, %v717_v26  ;;  %v730_v26 = vmul.f32 1.442695, %v718_v62  ;;  %v5395_v17 = vpop.eup %5394 }
 0x230   : > { %5396 = vpow2.f32 %v728_v57  ;;  %v6089_v36 = vpop.permute.xlu1 %1182 }
 0x231   : > { %1566 = vrot.lane.b32.xlu0 %v5869_v39, %s5678_s27  ;;  %5398 = vpow2.f32 %v726_v22 }
 0x232   : > { %5400 = vpow2.f32 %v736_v49 }
 0x233   : > { %5402 = vpow2.f32 %v732_v47 }
 0x234   : > { %v6093_v18 = vpop.permute.xlu1 %1370 }
 0x235   : > { %1568 = vrot.lane.b32.xlu0 %v5879_v43, %s5678_s27 }
 0x23d   : > { %v5397_v29 = vpop.eup %5396 }
 0x23e   : > { %v5399_v15 = vpop.eup %5398 }
 0x23f   : > { %1184 = vrot.lane.b32.xlu1 %v5804_v19, %s5678_s27  ;;  %v5401_v35 = vpop.eup %5400 }
 0x240   : > { %v5403_v62 = vpop.eup %5402 }
 0x243   : > { %1368 = vrot.lane.b32.xlu1 %v5784_v12, %s5677_s26 }
 0x247   : > { %1364 = vrot.lane.b32.xlu1 %v5810_v20, %s5678_s27 }
 0x24b   : > { %1366 = vrot.lane.b32.xlu1 %v5830_v27, %s5678_s27 }
 0x24f   : > { %1554 = vrot.lane.b32.xlu1 %v5846_v31, %s5678_s27 }
 0x253   : > { %1556 = vrot.lane.b32.xlu1 %v5849_v32, %s5678_s27 }
 0x257   : > { %1562 = vrot.lane.b32.xlu1 %v5866_v38, %s5678_s27 }
 0x25b   : > { %1564 = vrot.lane.b32.xlu1 %v5876_v42, %s5678_s27 }
 0x276   : > { %v743_v61 = vpop.xlane.xlu0 %742 }
 0x277   : > { %v763_v10 = vadd.f32 %v5393_v59, %v743_v61 }
 0x279   : > { %5404 = vrcp.f32 %v763_v10 }
 0x27a   : > { %v740_v48 = vpop.xlane.xlu0 %739  ;;  %5406 = vpow2.f32 %v730_v26 }
 0x27b   : > { %v762_v58 = vadd.f32 %v5395_v17, %v740_v48  ;;  %v749_v57 = vpop.xlane.xlu1 %748 }
 0x27c   : > { %v765_v22 = vadd.f32 %v5397_v29, %v749_v57 }
 0x27d   : > { %5408 = vrcp.f32 %v762_v58 }
 0x27e   : > { %5410 = vrcp.f32 %v765_v22 }
 0x27f   : > { %v746_v51 = vpop.xlane.xlu1 %745 }
 0x280   : > { %v764_v63 = vadd.f32 %v5399_v15, %v746_v51 }
 0x282   : > { %5412 = vrcp.f32 %v764_v63 }
 0x283   : > { %v761_v49 = vpop.xlane.xlu1 %760 }
 0x284   : > { %v769_v47 = vadd.f32 %v5401_v35, %v761_v49  ;;  %v755_v61 = vpop.xlane.xlu0 %754 }
 0x285   : > { %v767_v10 = vadd.f32 %v5403_v62, %v755_v61 }
 0x286   : > { %v5405_v7 = vpop.eup %5404  ;;  %5414 = vrcp.f32 %v769_v47 }
 0x287   : > { %v6095_v14 = vmul.f32 %v5405_v7, %v5393_v59  ;;  %5416 = vrcp.f32 %v767_v10  ;;  %v5407_v26 = vpop.eup %5406  ;;  %v779_v63 = vmul.f32 %v5405_v7, %v5986_v34 }
 0x288   : > { %v752_v48 = vpop.xlane.xlu0 %751 }
 0x289   : > { %v766_v57 = vadd.f32 %v5407_v26, %v752_v48 }
 0x28a   : > { %v5409_v58 = vpop.eup %5408 }
 0x28b   : > { %v778_v22 = vmul.f32 %v5409_v58, %v5990_v40  ;;  %v6098_v42 = vmul.f32 %v5409_v58, %v5395_v17  ;;  %v5411_v51 = vpop.eup %5410  ;;  %5418 = vrcp.f32 %v766_v57 }
 0x28c   : > { %v6101_v49 = vpop.permute.xlu0 %1461  ;;  %v6104_v47 = vmul.f32 %v5411_v51, %v5397_v29  ;;  %v781_v34 = vmul.f32 %v5411_v51, %v5994_v41 }
 0x28d   : > { %5160 = vmatprep.mubr.msk.f32.mxu0 %vm657_vm1, %v778_v22 }
 0x28e   : > { %5161 = vmatmul.mubr.msk.f32.vlgmr.msra.gmra.mxu0 %vm657_vm1, %v779_v63 }
 0x28f   : > { %5171 = vmatpush3.msra.mxu0 %v6028_v55  ;;  %v5413_v59 = vpop.eup %5412 }
 0x290   : > { %5172 = vmatprep.subr.mxu0 %v6065_v45  ;;  %v6109_v40 = vpop.permute.xlu0 %1275  ;;  %v780_v17 = vmul.f32 %v5413_v59, %v6001_v46  ;;  %v6113_v7 = vmul.f32 %v5413_v59, %v5399_v15 }
 0x291   : > { %5173 = vmatpush3.msra.mxu0 %v6065_v45 }
 0x292   : > { %5184 = vmatprep.subr.msk.mxu0 %vm258_vm0, %v6073_v21  ;;  %5167 = vmatprep.mubr.msk.f32.mxu1 %vm657_vm1, %v780_v17 }
 0x293   : > { %v5415_v29 = vpop.eup %5414  ;;  %5168 = vmatmul.mubr.msk.f32.vlgmr.msra.gmra.mxu1 %vm657_vm1, %v781_v34 }
 0x294   : > { %v5417_v55 = vpop.eup %5416  ;;  %5178 = vmatpush3.msra.mxu1 %v5996_v44  ;;  %v6121_v61 = vpop.permute.xlu0 %1459  ;;  %v6123_v45 = vmul.f32 %v5415_v29, %v5401_v35  ;;  %v785_v59 = vmul.f32 %v5415_v29, %v6005_v54 }
 0x295   : > { %5179 = vmatprep.subr.mxu1 %v6063_v53  ;;  %v6126_v46 = vmul.f32 %v5417_v55, %v5403_v62  ;;  %v783_v44 = vmul.f32 %v5417_v55, %v6009_v50 }
 0x296   : > { %7940 = vst [vmem:[#allocation5_spill] sm:$0xff] %v6123_v45  ;;  %5180 = vmatpush3.msra.mxu1 %v6063_v53  ;;  %v720_v53 = vsub.f32 %v5948_v16, %v6020_v25 }
 0x297   : > { %5191 = vmatprep.subr.msk.mxu1 %vm258_vm0, %v6069_v56 }
 0x298   : > { %v5419_v41 = vpop.eup %5418  ;;  %v1456_v15 = vpop.permute.xlu0 %1455 }
 0x299   : > { %v782_v10 = vmul.f32 %v5419_v41, %v6013_v52  ;;  %v6132_v48 = vmul.f32 %v5419_v41, %v5407_v26 }
 0x29b   : > { %5174 = vmatprep.mubr.msk.f32.mxu0 %vm657_vm1, %v782_v10 }
 0x29c   : > { %v6136_v35 = vpop.permute.xlu0 %1457  ;;  %5175 = vmatmul.mubr.msk.f32.vlgmr.msra.gmra.mxu0 %vm657_vm1, %v783_v44 }
 0x29d   : > { %5185 = vmatpush3.xpose.msk.msra.mxu0 %vm258_vm0, %v6073_v21  ;;  %5188 = vmatprep.mubr.msk.f32.mxu0 %vm258_vm0, %v6089_v36  ;;  %v734_v21 = vmul.f32 1.442695, %v720_v53 }
 0x29e   : > { %5186 = vmatprep.subr.msk.mxu0 %vm258_vm0, %v6081_v2 }
 0x29f   : > { %5420 = vpow2.f32 %v734_v21 }
 0x2a0   : > { %v1559_v52 = vpop.permute.xlu0 %1558 }
 0x2a1   : > { %5187 = vmatpush3.xpose.msk.msra.mxu0 %vm258_vm0, %v6081_v2  ;;  %v1584_v50 = vsel %vm258_vm0, %v1559_v52, 0.0 }
 0x2a2   : > { %5198 = vmatprep.subr.msk.mxu0 %vm258_vm0, %v6093_v18  ;;  %1585 = vadd.xlane.f32.xlu0 %v1584_v50 }
 0x2a4   : > { %v1561_v63 = vpop.permute.xlu0 %1560 }
 0x2a5   : > { %v1587_v54 = vsel %vm258_vm0, %v1561_v63, 0.0 }
 0x2ac   : > { %v5421_v62 = vpop.eup %5420 }
 0x2b7   : > { %v758_v36 = vpop.xlane.xlu1 %757 }
 0x2b8   : > { %v768_v26 = vadd.f32 %v5421_v62, %v758_v36 }
 0x2ba   : > { %5422 = vrcp.f32 %v768_v26 }
 0x2bb   : > { %v1185_v58 = vpop.permute.xlu1 %1184 }
 0x2bc   : > { %5189 = vmatmul.mubr.msk.f32.vlgmr.msra.gmra.mxu0 %vm258_vm0, %v1185_v58 }
 0x2bd   : > { %5199 = vmatpush3.xpose.msk.msra.mxu0 %vm258_vm0, %v6093_v18 }
 0x2bf   : > { %v1369_v16 = vpop.permute.xlu1 %1368 }
 0x2c0   : > { %5200 = vmatprep.subr.msk.mxu0 %vm258_vm0, %v1369_v16 }
 0x2c1   : > { %5201 = vmatpush3.xpose.msk.msra.mxu0 %vm258_vm0, %v1369_v16 }
 0x2c3   : > { %v1365_v25 = vpop.permute.xlu1 %1364 }
 0x2c4   : > { %5202 = vmatprep.mubr.msk.f32.mxu0 %vm258_vm0, %v1365_v25 }
 0x2c7   : > { %v5423_v2 = vpop.eup %5422  ;;  %v1367_v57 = vpop.permute.xlu1 %1366 }
 0x2c8   : > { %5203 = vmatmul.mubr.msk.f32.vlgmr.msra.gmra.mxu0 %vm258_vm0, %v1367_v57  ;;  %v784_v22 = vmul.f32 %v5423_v2, %v6037_v60  ;;  %v6160_v51 = vmul.f32 %v5423_v2, %v5421_v62  ;;  %v1567_v60 = vpop.permute.xlu0 %1566 }
 0x2ca   : > { %5181 = vmatprep.mubr.msk.f32.mxu1 %vm657_vm1, %v784_v22 }
 0x2cb   : > { %5182 = vmatmul.mubr.msk.f32.vlgmr.msra.gmra.mxu1 %vm657_vm1, %v785_v59  ;;  %v1555_v18 = vpop.permute.xlu1 %1554 }
 0x2cc   : > { %5192 = vmatpush3.xpose.msk.msra.mxu1 %vm258_vm0, %v6069_v56  ;;  %5195 = vmatprep.mubr.msk.f32.mxu1 %vm258_vm0, %v6087_v11  ;;  %v1578_v17 = vsel %vm258_vm0, %v1555_v18, 0.0  ;;  %v1596_v11 = vsel %vm258_vm0, %v1567_v60, 0.0  ;;  %v1569_v55 = vpop.permute.xlu0 %1568 }
 0x2cd   : > { %5193 = vmatprep.subr.msk.mxu1 %vm258_vm0, %v6077_v37  ;;  %1579 = vadd.xlane.f32.xlu1 %v1578_v17 }
 0x2cf   : > { %v1557_v34 = vpop.permute.xlu1 %1556 }
 0x2d0   : > { %5194 = vmatpush3.xpose.msk.msra.mxu1 %vm258_vm0, %v6077_v37  ;;  %v1581_v29 = vsel %vm258_vm0, %v1557_v34, 0.0 }
 0x2d1   : > { %5205 = vmatprep.subr.msk.mxu1 %vm258_vm0, %v6101_v49  ;;  %1588 = vadd.xlane.f32.xlu1 %v1587_v54 }
 0x2d2   : > { %1582 = vadd.xlane.f32.xlu0 %v1581_v29 }
 0x2d3   : > { %5196 = vmatmul.mubr.msk.f32.vlgmr.msra.gmra.mxu1 %vm258_vm0, %v6109_v40  ;;  %v1563_v56 = vpop.permute.xlu1 %1562  ;;  %v1599_v40 = vsel %vm258_vm0, %v1569_v55, 0.0 }
 0x2d4   : > { %5206 = vmatpush3.xpose.msk.msra.mxu1 %vm258_vm0, %v6101_v49  ;;  %v1590_v37 = vsel %vm258_vm0, %v1563_v56, 0.0  ;;  %5209 = vmatprep.mubr.msk.f32.mxu1 %vm258_vm0, %v1456_v15 }
 0x2d5   : > { %5207 = vmatprep.subr.msk.mxu1 %vm258_vm0, %v6121_v61  ;;  %1597 = vadd.xlane.f32.xlu1 %v1596_v11 }
 0x2d6   : > { %1591 = vadd.xlane.f32.xlu0 %v1590_v37 }
 0x2d7   : > { %v1565_v41 = vpop.permute.xlu1 %1564 }
 0x2d8   : > { %5208 = vmatpush3.xpose.msk.msra.mxu1 %vm258_vm0, %v6121_v61  ;;  %v1593_v49 = vsel %vm258_vm0, %v1565_v41, 0.0 }
 0x2d9   : > { %1600 = vadd.xlane.f32.xlu1 %v1599_v40 }
 0x2da   : > { %1594 = vadd.xlane.f32.xlu0 %v1593_v49 }
 0x2db   : > { %5210 = vmatmul.mubr.msk.f32.vlgmr.msra.gmra.mxu1 %vm258_vm0, %v6136_v35 }
 0x34e   : > { %v6193_v15 = vpop.f32.mrf.mxu0 }
 0x34f   : > { %7941 = vst [vmem:[#allocation6_spill] sm:$0xff] %v6193_v15 }
 0x350   : > { %v6195_v10 = vpop.f32.mrf.mxu0 }
 0x351   : > { %7942 = vst [vmem:[#allocation7_spill] sm:$0xff] %v6195_v10 }
 0x353   : > { %v6203_v62 = vpop.f32.mrf.mxu1 }
 0x354   : > { %7945 = vst [vmem:[#allocation10_spill] sm:$0xff] %v6203_v62 }
 0x355   : > { %v6209_v26 = vpop.f32.mrf.mxu1 }
 0x356   : > { %7946 = vst [vmem:[#allocation11_spill] sm:$0xff] %v6209_v26  ;;  %v6273_v56 = vpop.xlane.xlu1 %1579 }
 0x35a   : > { %v6282_v41 = vpop.xlane.xlu1 %1588 }
 0x35c   : > { %v6197_v44 = vpop.f32.mrf.mxu0 }
 0x35d   : > { %7943 = vst [vmem:[#allocation8_spill] sm:$0xff] %v6197_v44 }
 0x35e   : > { %v6199_v52 = vpop.f32.mrf.mxu0  ;;  %v6285_v49 = vpop.xlane.xlu1 %1597 }
 0x35f   : > { %7944 = vst [vmem:[#allocation9_spill] sm:$0xff] %v6199_v52 }
 0x37c   : > { %v5190_v53 = vpop.f32.mrf.mxu0 }
 0x37d   : > { %v1605_v61 = vsel %vm657_vm1, %v5190_v53, -inf }
 0x37e   : > { %1606 = vmax.xlane.f32.xlu0 %v1605_v61  ;;  %v1264_v50 = vpop.f32.mrf.mxu0 }
 0x37f   : > { %v1602_v21 = vsel %vm657_vm1, %v1264_v50, -inf }
 0x382   : > { %1603 = vmax.xlane.f32.xlu0 %v1602_v21 }
 0x388   : > { %v6205_v36 = vpop.f32.mrf.mxu0 }
 0x389   : > { %v1617_v25 = vsel %vm657_vm1, %v6205_v36, -inf }
 0x38a   : > { %v6207_v35 = vpop.f32.mrf.mxu0 }
 0x38b   : > { %v1614_v58 = vsel %vm657_vm1, %v6207_v35, -inf  ;;  %v6213_v16 = vpop.f32.mrf.mxu1 }
 0x38c   : > { %1615 = vmax.xlane.f32.xlu0 %v1614_v58  ;;  %7947 = vst [vmem:[#allocation12_spill] sm:$0xff] %v6213_v16 }
 0x38d   : > { %v6217_v2 = vpop.f32.mrf.mxu1 }
 0x38e   : > { %7948 = vst [vmem:[#allocation13_spill] sm:$0xff] %v6217_v2 }
 0x390   : > { %1618 = vmax.xlane.f32.xlu0 %v1617_v25 }
 0x393   : > { %v6219_v57 = vpop.f32.mrf.mxu1 }
 0x394   : > { %v1611_v22 = vsel %vm657_vm1, %v6219_v57, -inf }
 0x395   : > { %v6223_v63 = vpop.f32.mrf.mxu1  ;;  %1612 = vmax.xlane.f32.xlu1 %v1611_v22 }
 0x396   : > { %v1608_v59 = vsel %vm657_vm1, %v6223_v63, -inf }
 0x399   : > { %1609 = vmax.xlane.f32.xlu1 %v1608_v59 }
 0x39b   : > { %v6227_v18 = vpop.f32.mrf.mxu1 }
 0x39c   : > { %v1623_v17 = vsel %vm657_vm1, %v6227_v18, -inf }
 0x39d   : > { %1624 = vmax.xlane.f32.xlu1 %v1623_v17  ;;  %v6247_v60 = vpop.f32.mrf.mxu1 }
 0x39e   : > { %v1620_v34 = vsel %vm657_vm1, %v6247_v60, -inf }
 0x3a6   : > { %1748 = vrot.lane.b32.xlu0 %v5734_v0, %s5679_s28 }
 0x3aa   : > { %1841 = vrot.lane.b32.xlu0 %v5750_v5, %s5679_s28 }
 0x3ae   : > { %1843 = vrot.lane.b32.xlu1 %v5747_v4, %s5679_s28  ;;  %2033 = vrot.lane.b32.xlu0 %v5768_v9, %s5679_s28 }
 0x3b2   : > { %2031 = vrot.lane.b32.xlu0 %v5787_v13, %s5679_s28 }
 0x3b6   : > { %2223 = vrot.lane.b32.xlu0 %v5747_v4, %s5680_s29  ;;  %v6259_v4 = vpop.xlane.xlu0 %1585 }
 0x3ba   : > { %2221 = vrot.lane.b32.xlu0 %v5750_v5, %s5680_s29  ;;  %v6263_v5 = vpop.xlane.xlu0 %1582 }
 0x3be   : > { %2217 = vrot.lane.b32.xlu0 %v5756_v6, %s5681_s30  ;;  %v6269_v54 = vpop.xlane.xlu0 %1591 }
 0x3c2   : > { %v6271_v29 = vpop.xlane.xlu0 %1594 }
 0x3d2   : > { %1621 = vmax.xlane.f32.xlu1 %v1620_v34 }
 0x3e3   : > { %1746 = vrot.lane.b32.xlu1 %v5737_v1, %s5679_s28 }
 0x3e7   : > { %1938 = vrot.lane.b32.xlu1 %v5765_v8, %s5679_s28 }
 0x3eb   : > { %1936 = vrot.lane.b32.xlu1 %v5784_v12, %s5679_s28 }
 0x3ef   : > { %2132 = vrot.lane.b32.xlu1 %v5734_v0, %s5680_s29 }
 0x3f3   : > { %2130 = vrot.lane.b32.xlu1 %v5737_v1, %s5680_s29 }
 0x3f7   : > { %2126 = vrot.lane.b32.xlu1 %v5744_v3, %s5681_s30 }
 0x3fb   : > { %2314 = vrot.lane.b32.xlu1 %v5765_v8, %s5680_s29 }
 0x407   : > { %v1607_v12 = vpop.xlane.xlu0 %1606 }
 0x408   : > { %v6276_v0 = vmax.f32 %v1607_v12, %v6263_v5 }
 0x40a   : > { %v1635_v1 = vsub.f32 %v5190_v53, %v6276_v0  ;;  %v6290_v53 = vpop.xlane.xlu1 %1600 }
 0x40b   : > { %v1604_v11 = vpop.xlane.xlu0 %1603 }
 0x40c   : > { %v1644_v37 = vmul.f32 1.442695, %v1635_v1  ;;  %v6280_v55 = vmax.f32 %v1604_v11, %v6273_v56 }
 0x40e   : > { %5424 = vpow2.f32 %v1644_v37  ;;  %v1634_v8 = vsub.f32 %v1264_v50, %v6280_v55 }
 0x410   : > { %v1642_v40 = vmul.f32 1.442695, %v1634_v8 }
 0x412   : > { %5426 = vpow2.f32 %v1642_v40 }
 0x415   : > { %v1616_v61 = vpop.xlane.xlu0 %1615 }
 0x416   : > { %v6288_v21 = vmax.f32 %v1616_v61, %v6269_v54 }
 0x418   : > { %v1638_v25 = vsub.f32 %v6207_v35, %v6288_v21 }
 0x419   : > { %v1619_v58 = vpop.xlane.xlu0 %1618 }
 0x41a   : > { %v6295_v22 = vmax.f32 %v1619_v58, %v6271_v29  ;;  %v1650_v12 = vmul.f32 1.442695, %v1638_v25 }
 0x41b   : > { %v6297_v59 = vpop.eup %5424 }
 0x41c   : > { %v1639_v50 = vsub.f32 %v6205_v36, %v6295_v22  ;;  %v1685_v17 = vsel %vm657_vm1, %v6297_v59, 0.0 }
 0x41d   : > { %1686 = vadd.xlane.f32.xlu0 %v1685_v17  ;;  %v1749_v34 = vpop.permute.xlu0 %1748 }
 0x41e   : > { %v1652_v1 = vmul.f32 1.442695, %v1639_v50  ;;  %v1613_v11 = vpop.xlane.xlu1 %1612  ;;  %5212 = vmatprep.subr.mxu0 %v1749_v34 }
 0x41f   : > { %v6303_v37 = vpop.eup %5426  ;;  %v6306_v35 = vmax.f32 %v1613_v11, %v6282_v41  ;;  %5213 = vmatpush3.msra.mxu0 %v1749_v34 }
 0x420   : > { %5428 = vpow2.f32 %v1652_v1  ;;  %v1682_v8 = vsel %vm657_vm1, %v6303_v37, 0.0 }
 0x421   : > { %v1637_v36 = vsub.f32 %v6219_v57, %v6306_v35  ;;  %1683 = vadd.xlane.f32.xlu0 %v1682_v8  ;;  %5430 = vpow2.f32 %v1650_v12  ;;  %v1842_v1 = vpop.permute.xlu0 %1841 }
 0x422   : > { %v1610_v40 = vpop.xlane.xlu1 %1609 }
 0x423   : > { %v1648_v61 = vmul.f32 1.442695, %v1637_v36  ;;  %v6313_v58 = vmax.f32 %v1610_v40, %v6259_v4 }
 0x425   : > { %5432 = vpow2.f32 %v1648_v61  ;;  %v1636_v25 = vsub.f32 %v6223_v63, %v6313_v58  ;;  %v6326_v36 = vpop.permute.xlu0 %2033 }
 0x426   : > { %v1625_v50 = vpop.xlane.xlu1 %1624 }
 0x427   : > { %v1646_v17 = vmul.f32 1.442695, %v1636_v25  ;;  %v6318_v34 = vmax.f32 %v1625_v50, %v6290_v53 }
 0x429   : > { %5434 = vpow2.f32 %v1646_v17  ;;  %v1641_v57 = vsub.f32 %v6227_v18, %v6318_v34 }
 0x42a   : > { %v1844_v12 = vpop.permute.xlu1 %1843 }
 0x42b   : > { %v1656_v11 = vmul.f32 1.442695, %v1641_v57  ;;  %5219 = vmatprep.subr.mxu1 %v1844_v12 }
 0x42c   : > { %5220 = vmatpush3.msra.mxu1 %v1844_v12 }
 0x42d   : > { %v6322_v8 = vpop.eup %5428  ;;  %5436 = vpow2.f32 %v1656_v11  ;;  %5221 = vmatprep.subr.mxu1 %v1842_v1 }
 0x42e   : > { %v1697_v63 = vsel %vm657_vm1, %v6322_v8, 0.0  ;;  %5222 = vmatpush3.msra.mxu1 %v1842_v1  ;;  %v6328_v40 = vpop.eup %5430 }
 0x42f   : > { %1698 = vadd.xlane.f32.xlu0 %v1697_v63  ;;  %5233 = vmatprep.subr.mxu1 %v6326_v36  ;;  %v1694_v61 = vsel %vm657_vm1, %v6328_v40, 0.0 }
 0x432   : > { %v6331_v18 = vpop.eup %5432 }
 0x433   : > { %1695 = vadd.xlane.f32.xlu0 %v1694_v61  ;;  %v1691_v25 = vsel %vm657_vm1, %v6331_v18, 0.0 }
 0x434   : > { %1692 = vadd.xlane.f32.xlu1 %v1691_v25 }
 0x436   : > { %v6337_v50 = vpop.eup %5434 }
 0x437   : > { %v1688_v17 = vsel %vm657_vm1, %v6337_v50, 0.0 }
 0x438   : > { %1689 = vadd.xlane.f32.xlu1 %v1688_v17  ;;  %v6378_v17 = vld [vmem:[%s5731_s19 + $0x20] sm:$0xff] }
 0x43a   : > { %v6341_v1 = vpop.eup %5436 }
 0x43b   : > { %v1703_v57 = vsel %vm657_vm1, %v6341_v1, 0.0 }
 0x43c   : > { %1704 = vadd.xlane.f32.xlu1 %v1703_v57  ;;  %v6386_v57 = vpop.permute.xlu0 %2031 }
 0x449   : > { %2405 = vrot.lane.b32.xlu0 %v5768_v9, %s5680_s29 }
 0x44d   : > { %2219 = vrot.lane.b32.xlu0 %v5816_v23, %s5681_s30 }
 0x451   : > { %2403 = vrot.lane.b32.xlu0 %v5787_v13, %s5680_s29 }
 0x455   : > { %2399 = vrot.lane.b32.xlu0 %v5824_v24, %s5681_s30 }
 0x459   : > { %2401 = vrot.lane.b32.xlu0 %v5838_v28, %s5681_s30 }
 0x45b   : > { %v1622_v12 = vpop.xlane.xlu1 %1621 }
 0x45c   : > { %v6356_v11 = vmax.f32 %v1622_v12, %v6285_v49  ;;  %v1659_v12 = vsub.f32 %v6263_v5, %v6276_v0  ;;  %v7949_v5 = vld [vmem:[#allocation4_spill] sm:$0xff] }
 0x45d   : > { %2494 = vrot.lane.b32.xlu0 %v5843_v30, %s5681_s30 }
 0x45e   : > { %v1640_v9 = vsub.f32 %v6247_v60, %v6356_v11 }
 0x45f   : > { %v1747_v63 = vpop.permute.xlu1 %1746 }
 0x460   : > { %v1654_v61 = vmul.f32 1.442695, %v1640_v9  ;;  %5214 = vmatprep.subr.mxu0 %v1747_v63  ;;  %v6392_v9 = vpop.permute.xlu0 %2223 }
 0x461   : > { %2496 = vrot.lane.b32.xlu0 %v5852_v33, %s5681_s30  ;;  %5215 = vmatpush3.msra.mxu0 %v1747_v63  ;;  %v1668_v63 = vmul.f32 1.442695, %v1659_v12 }
 0x462   : > { %5438 = vpow2.f32 %v1654_v61  ;;  %v1658_v61 = vsub.f32 %v6273_v56, %v6280_v55  ;;  %v1663_v56 = vsub.f32 %v6271_v29, %v6295_v22  ;;  %v1660_v29 = vsub.f32 %v6259_v4, %v6313_v58 }
 0x463   : > { %v6364_v13 = vpop.permute.xlu1 %1938  ;;  %5440 = vpow2.f32 %v1668_v63  ;;  %v1662_v63 = vsub.f32 %v6269_v54, %v6288_v21  ;;  %v1665_v54 = vsub.f32 %v6290_v53, %v6318_v34 }
 0x464   : > { %5226 = vmatprep.subr.mxu0 %v6364_v13  ;;  %v6400_v2 = vpop.permute.xlu0 %2221 }
 0x465   : > { %2502 = vrot.lane.b32.xlu0 %v5869_v39, %s5681_s30  ;;  %v1674_v26 = vmul.f32 1.442695, %v1662_v63 }
 0x467   : > { %v1937_v12 = vpop.permute.xlu1 %1936 }
 0x468   : > { %v6404_v0 = vpop.permute.xlu0 %2217 }
 0x469   : > { %2504 = vrot.lane.b32.xlu0 %v5879_v43, %s5681_s30 }
 0x46b   : > { %v6410_v16 = vpop.permute.xlu1 %2132 }
 0x46f   : > { %v6371_v25 = vpop.eup %5438  ;;  %v6416_v22 = vpop.permute.xlu1 %2130 }
 0x470   : > { %v1700_v60 = vsel %vm657_vm1, %v6371_v25, 0.0  ;;  %v5441_v55 = vpop.eup %5440 }
 0x471   : > { %1701 = vadd.xlane.f32.xlu1 %v1700_v60  ;;  %v1666_v60 = vmul.f32 1.442695, %v1658_v61  ;;  %v1676_v61 = vmul.f32 1.442695, %v1663_v56 }
 0x473   : > { %5442 = vpow2.f32 %v1666_v60  ;;  %v1661_v60 = vsub.f32 %v6282_v41, %v6306_v35  ;;  %v2127_v41 = vpop.permute.xlu1 %2126 }
 0x475   : > { %v1672_v45 = vmul.f32 1.442695, %v1661_v60 }
 0x477   : > { %v6422_v63 = vpop.permute.xlu1 %2314 }
 0x480   : > { %v5443_v52 = vpop.eup %5442 }
 0x482   : > { %2128 = vrot.lane.b32.xlu1 %v5804_v19, %s5681_s30 }
 0x486   : > { %2312 = vrot.lane.b32.xlu1 %v6378_v17, %s5680_s29 }
 0x48a   : > { %2308 = vrot.lane.b32.xlu1 %v5810_v20, %s5681_s30 }
 0x48e   : > { %2310 = vrot.lane.b32.xlu1 %v5830_v27, %s5681_s30 }
 0x492   : > { %2490 = vrot.lane.b32.xlu1 %v5846_v31, %s5681_s30 }
 0x496   : > { %2492 = vrot.lane.b32.xlu1 %v5849_v32, %s5681_s30 }
 0x49a   : > { %2498 = vrot.lane.b32.xlu1 %v5866_v38, %s5681_s30 }
 0x49e   : > { %2500 = vrot.lane.b32.xlu1 %v7949_v5, %s5681_s30 }
 0x4a6   : > { %v1687_v62 = vpop.xlane.xlu0 %1686 }
 0x4a7   : > { %v1707_v15 = vadd.f32 %v5441_v55, %v1687_v62  ;;  %v1670_v62 = vmul.f32 1.442695, %v1660_v29 }
 0x4a9   : > { %5444 = vrcp.f32 %v1707_v15  ;;  %v1680_v15 = vmul.f32 1.442695, %v1665_v54 }
 0x4aa   : > { %v1684_v44 = vpop.xlane.xlu0 %1683  ;;  %5446 = vpow2.f32 %v1676_v61 }
 0x4ab   : > { %v1706_v10 = vadd.f32 %v5443_v52, %v1684_v44 }
 0x4ad   : > { %5448 = vrcp.f32 %v1706_v10 }
 0x4ae   : > { %5450 = vpow2.f32 %v1674_v26 }
 0x4af   : > { %5452 = vpow2.f32 %v1672_v45 }
 0x4b0   : > { %5454 = vpow2.f32 %v1670_v62 }
 0x4b1   : > { %5456 = vpow2.f32 %v1680_v15 }
 0x4b6   : > { %v5445_v21 = vpop.eup %5444 }
 0x4b7   : > { %v6420_v35 = vmul.f32 %v5445_v21, %v5441_v55  ;;  %v5447_v44 = vpop.eup %5446  ;;  %v1723_v34 = vmul.f32 %v5445_v21, %v6297_v59 }
 0x4b8   : > { %v1699_v56 = vpop.xlane.xlu0 %1698 }
 0x4b9   : > { %v1711_v10 = vadd.f32 %v5447_v44, %v1699_v56 }
 0x4ba   : > { %v5449_v4 = vpop.eup %5448 }
 0x4bb   : > { %5458 = vrcp.f32 %v1711_v10  ;;  %v1722_v45 = vmul.f32 %v5449_v4, %v6303_v37  ;;  %v6425_v26 = vmul.f32 %v5449_v4, %v5443_v52  ;;  %v5451_v58 = vpop.eup %5450 }
 0x4bc   : > { %v1696_v53 = vpop.xlane.xlu0 %1695  ;;  %v5453_v61 = vpop.eup %5452 }
 0x4bd   : > { %v1710_v60 = vadd.f32 %v5451_v58, %v1696_v53  ;;  %v1693_v55 = vpop.xlane.xlu1 %1692  ;;  %5216 = vmatprep.mubr.msk.f32.mxu0 %vm657_vm1, %v1722_v45  ;;  %v5455_v52 = vpop.eup %5454 }
 0x4be   : > { %v1709_v29 = vadd.f32 %v5453_v61, %v1693_v55  ;;  %5217 = vmatmul.mubr.msk.f32.vlgmr.msra.gmra.mxu0 %vm657_vm1, %v1723_v34  ;;  %v5457_v15 = vpop.eup %5456 }
 0x4bf   : > { %5460 = vrcp.f32 %v1710_v60  ;;  %5227 = vmatpush3.msra.mxu0 %v6364_v13 }
 0x4c0   : > { %5462 = vrcp.f32 %v1709_v29  ;;  %5228 = vmatprep.subr.mxu0 %v1937_v12  ;;  %v6431_v37 = vpop.permute.xlu0 %2405 }
 0x4c1   : > { %5229 = vmatpush3.msra.mxu0 %v1937_v12  ;;  %v1690_v62 = vpop.xlane.xlu1 %1689 }
 0x4c2   : > { %v1708_v54 = vadd.f32 %v5455_v52, %v1690_v62  ;;  %5240 = vmatprep.subr.msk.mxu0 %vm258_vm0, %v6410_v16 }
 0x4c4   : > { %5464 = vrcp.f32 %v1708_v54  ;;  %v6435_v59 = vpop.permute.xlu0 %2219 }
 0x4c5   : > { %v1705_v21 = vpop.xlane.xlu1 %1704 }
 0x4c6   : > { %v1713_v56 = vadd.f32 %v5457_v15, %v1705_v21 }
 0x4c8   : > { %v5459_v10 = vpop.eup %5458  ;;  %5466 = vrcp.f32 %v1713_v56  ;;  %v6437_v13 = vpop.permute.xlu0 %2403 }
 0x4c9   : > { %v6439_v4 = vmul.f32 %v5459_v10, %v5447_v44  ;;  %v1727_v55 = vmul.f32 %v5459_v10, %v6322_v8 }
 0x4cc   : > { %v5461_v45 = vpop.eup %5460  ;;  %v6441_v53 = vpop.permute.xlu0 %2399 }
 0x4cd   : > { %v5463_v12 = vpop.eup %5462  ;;  %v1726_v34 = vmul.f32 %v5461_v45, %v6328_v40  ;;  %v6444_v60 = vmul.f32 %v5461_v45, %v5451_v58 }
 0x4ce   : > { %v6447_v29 = vmul.f32 %v5463_v12, %v5453_v61  ;;  %v1725_v58 = vmul.f32 %v5463_v12, %v6331_v18  ;;  %v1664_v18 = vsub.f32 %v6285_v49, %v6356_v11 }
 0x4cf   : > { %5230 = vmatprep.mubr.msk.f32.mxu0 %vm657_vm1, %v1726_v34 }
 0x4d0   : > { %v6450_v62 = vpop.permute.xlu0 %2401  ;;  %5231 = vmatmul.mubr.msk.f32.vlgmr.msra.gmra.mxu0 %vm657_vm1, %v1727_v55 }
 0x4d1   : > { %v5465_v44 = vpop.eup %5464  ;;  %5241 = vmatpush3.xpose.msk.msra.mxu0 %vm258_vm0, %v6410_v16  ;;  %5244 = vmatprep.mubr.msk.f32.mxu0 %vm258_vm0, %v2127_v41 }
 0x4d2   : > { %5242 = vmatprep.subr.msk.mxu0 %vm258_vm0, %v6416_v22  ;;  %v1724_v40 = vmul.f32 %v5465_v44, %v6337_v50  ;;  %v6459_v8 = vmul.f32 %v5465_v44, %v5455_v52 }
 0x4d4   : > { %5223 = vmatprep.mubr.msk.f32.mxu1 %vm657_vm1, %v1724_v40  ;;  %v2495_v61 = vpop.permute.xlu0 %2494 }
 0x4d5   : > { %v5467_v54 = vpop.eup %5466  ;;  %5224 = vmatmul.mubr.msk.f32.vlgmr.msra.gmra.mxu1 %vm657_vm1, %v1725_v58  ;;  %5243 = vmatpush3.xpose.msk.msra.mxu0 %vm258_vm0, %v6416_v22  ;;  %v2520_v16 = vsel %vm258_vm0, %v2495_v61, 0.0  ;;  %v1678_v22 = vmul.f32 1.442695, %v1664_v18  ;;  %v6526_v61 = vld [vmem:[%s5731_s19 + $0x8] sm:$0xff] }
 0x4d6   : > { %5234 = vmatpush3.msra.mxu1 %v6326_v36  ;;  %5254 = vmatprep.subr.msk.mxu0 %vm258_vm0, %v6422_v63  ;;  %v6470_v50 = vmul.f32 %v5467_v54, %v5457_v15  ;;  %v1729_v12 = vmul.f32 %v5467_v54, %v6341_v1 }
 0x4d7   : > { %5235 = vmatprep.subr.mxu1 %v6386_v57  ;;  %2521 = vadd.xlane.f32.xlu0 %v2520_v16  ;;  %5468 = vpow2.f32 %v1678_v22 }
 0x4d8   : > { %5236 = vmatpush3.msra.mxu1 %v6386_v57  ;;  %v2497_v45 = vpop.permute.xlu0 %2496 }
 0x4d9   : > { %5247 = vmatprep.subr.msk.mxu1 %vm258_vm0, %v6392_v9  ;;  %v2523_v1 = vsel %vm258_vm0, %v2497_v45, 0.0 }
 0x4e4   : > { %v5469_v41 = vpop.eup %5468 }
 0x4fa   : > { %v1702_v36 = vpop.xlane.xlu1 %1701 }
 0x4fb   : > { %v1712_v52 = vadd.f32 %v5469_v41, %v1702_v36 }
 0x4fd   : > { %5470 = vrcp.f32 %v1712_v52 }
 0x4fe   : > { %v2129_v21 = vpop.permute.xlu1 %2128 }
 0x4ff   : > { %5245 = vmatmul.mubr.msk.f32.vlgmr.msra.gmra.mxu0 %vm258_vm0, %v2129_v21 }
 0x500   : > { %5255 = vmatpush3.xpose.msk.msra.mxu0 %vm258_vm0, %v6422_v63 }
 0x502   : > { %v2313_v15 = vpop.permute.xlu1 %2312 }
 0x503   : > { %5256 = vmatprep.subr.msk.mxu0 %vm258_vm0, %v2313_v15 }
 0x504   : > { %5257 = vmatpush3.xpose.msk.msra.mxu0 %vm258_vm0, %v2313_v15 }
 0x506   : > { %v2309_v57 = vpop.permute.xlu1 %2308 }
 0x507   : > { %5258 = vmatprep.mubr.msk.f32.mxu0 %vm258_vm0, %v2309_v57 }
 0x50a   : > { %v5471_v49 = vpop.eup %5470  ;;  %v2311_v11 = vpop.permute.xlu1 %2310 }
 0x50b   : > { %5259 = vmatmul.mubr.msk.f32.vlgmr.msra.gmra.mxu0 %vm258_vm0, %v2311_v11  ;;  %v1728_v56 = vmul.f32 %v5471_v49, %v6371_v25  ;;  %v6486_v10 = vmul.f32 %v5471_v49, %v5469_v41  ;;  %v2503_v25 = vpop.permute.xlu0 %2502 }
 0x50d   : > { %5237 = vmatprep.mubr.msk.f32.mxu1 %vm657_vm1, %v1728_v56 }
 0x50e   : > { %5238 = vmatmul.mubr.msk.f32.vlgmr.msra.gmra.mxu1 %vm657_vm1, %v1729_v12  ;;  %v2491_v63 = vpop.permute.xlu1 %2490 }
 0x50f   : > { %5248 = vmatpush3.xpose.msk.msra.mxu1 %vm258_vm0, %v6392_v9  ;;  %5251 = vmatprep.mubr.msk.f32.mxu1 %vm258_vm0, %v6404_v0  ;;  %v2514_v34 = vsel %vm258_vm0, %v2491_v63, 0.0  ;;  %v2532_v0 = vsel %vm258_vm0, %v2503_v25, 0.0  ;;  %v2505_v40 = vpop.permute.xlu0 %2504 }
 0x510   : > { %5249 = vmatprep.subr.msk.mxu1 %vm258_vm0, %v6400_v2  ;;  %2515 = vadd.xlane.f32.xlu1 %v2514_v34 }
 0x512   : > { %v2493_v55 = vpop.permute.xlu1 %2492 }
 0x513   : > { %5250 = vmatpush3.xpose.msk.msra.mxu1 %vm258_vm0, %v6400_v2  ;;  %v2517_v44 = vsel %vm258_vm0, %v2493_v55, 0.0 }
 0x514   : > { %5261 = vmatprep.subr.msk.mxu1 %vm258_vm0, %v6431_v37  ;;  %2524 = vadd.xlane.f32.xlu1 %v2523_v1 }
 0x515   : > { %2518 = vadd.xlane.f32.xlu0 %v2517_v44 }
 0x516   : > { %5252 = vmatmul.mubr.msk.f32.vlgmr.msra.gmra.mxu1 %vm258_vm0, %v6435_v59  ;;  %v2499_v9 = vpop.permute.xlu1 %2498 }
 0x517   : > { %5262 = vmatpush3.xpose.msk.msra.mxu1 %vm258_vm0, %v6431_v37  ;;  %v2526_v2 = vsel %vm258_vm0, %v2499_v9, 0.0  ;;  %5265 = vmatprep.mubr.msk.f32.mxu1 %vm258_vm0, %v6441_v53  ;;  %v2535_v37 = vsel %vm258_vm0, %v2505_v40, 0.0  ;;  %v6521_v53 = vld [vmem:[%s5731_s19 + $0x18] sm:$0xff] }
 0x518   : > { %5263 = vmatprep.subr.msk.mxu1 %vm258_vm0, %v6437_v13  ;;  %2533 = vadd.xlane.f32.xlu1 %v2532_v0 }
 0x519   : > { %2527 = vadd.xlane.f32.xlu0 %v2526_v2 }
 0x51a   : > { %v2501_v59 = vpop.permute.xlu1 %2500 }
 0x51b   : > { %5264 = vmatpush3.xpose.msk.msra.mxu1 %vm258_vm0, %v6437_v13  ;;  %v2529_v58 = vsel %vm258_vm0, %v2501_v59, 0.0 }
 0x51c   : > { %2536 = vadd.xlane.f32.xlu1 %v2535_v37 }
 0x51d   : > { %2530 = vadd.xlane.f32.xlu0 %v2529_v58 }
 0x51e   : > { %5266 = vmatmul.mubr.msk.f32.vlgmr.msra.gmra.mxu1 %vm258_vm0, %v6450_v62 }
 0x52d   : > { %2779 = vrot.lane.b32.xlu1 %v6521_v53, %s5682_s5 }
 0x533   : > { %2684 = vrot.lane.b32.xlu0 %v6526_v61, %s5682_s5 }
 0x560   : > { %v6532_v54 = vpop.xlane.xlu0 %2521 }
 0x57e   : > { %v6546_v15 = vpop.f32.mrf.mxu0 }
 0x57f   : > { %7950 = vst [vmem:[#allocation4_spill] sm:$0xff] %v6546_v15 }
 0x580   : > { %v6548_v57 = vpop.f32.mrf.mxu0 }
 0x581   : > { %7951 = vst [vmem:[#allocation14_spill] sm:$0xff] %v6548_v57 }
 0x590   : > { %v6550_v49 = vpop.f32.mrf.mxu0 }
 0x591   : > { %7952 = vst [vmem:[#allocation15_spill] sm:$0xff] %v6550_v49 }
 0x592   : > { %v6552_v11 = vpop.f32.mrf.mxu0 }
 0x593   : > { %7953 = vst [vmem:[#allocation16_spill] sm:$0xff] %v6552_v11 }
 0x595   : > { %v6556_v34 = vpop.f32.mrf.mxu1 }
 0x596   : > { %7954 = vst [vmem:[#allocation17_spill] sm:$0xff] %v6556_v34 }
 0x597   : > { %v6559_v44 = vpop.f32.mrf.mxu1 }
 0x598   : > { %7955 = vst [vmem:[#allocation18_spill] sm:$0xff] %v6559_v44 }
 0x599   : > { %v6530_v13 = vpop.xlane.xlu1 %2515 }
 0x59d   : > { %v6534_v16 = vpop.xlane.xlu1 %2524 }
 0x59e   : > { %v6536_v18 = vpop.xlane.xlu0 %2518 }
 0x5a1   : > { %v6538_v62 = vpop.xlane.xlu1 %2533 }
 0x5a2   : > { %v6540_v22 = vpop.xlane.xlu0 %2527 }
 0x5a5   : > { %v6542_v41 = vpop.xlane.xlu1 %2536 }
 0x5a6   : > { %v6544_v36 = vpop.xlane.xlu0 %2530 }
 0x5a9   : > { %v2780_v52 = vpop.permute.xlu1 %2779 }
 0x5aa   : > { %5275 = vmatprep.subr.mxu1 %v2780_v52  ;;  %v2685_v21 = vpop.permute.xlu0 %2684 }
 0x5ab   : > { %5276 = vmatpush3.msra.mxu1 %v2780_v52  ;;  %5268 = vmatprep.subr.mxu0 %v2685_v21 }
 0x5ac   : > { %5269 = vmatpush3.msra.mxu0 %v2685_v21 }
 0x5bf   : > { %v5246_v56 = vpop.f32.mrf.mxu0 }
 0x5c0   : > { %v2541_v45 = vsel %vm657_vm1, %v5246_v56, -inf }
 0x5c1   : > { %2542 = vmax.xlane.f32.xlu0 %v2541_v45  ;;  %v2208_v12 = vpop.f32.mrf.mxu0 }
 0x5c2   : > { %v2538_v63 = vsel %vm657_vm1, %v2208_v12, -inf }
 0x5c5   : > { %2539 = vmax.xlane.f32.xlu0 %v2538_v63 }
 0x5cb   : > { %v5260_v25 = vpop.f32.mrf.mxu0 }
 0x5cc   : > { %v2553_v55 = vsel %vm657_vm1, %v5260_v25, -inf }
 0x5cd   : > { %2554 = vmax.xlane.f32.xlu0 %v2553_v55  ;;  %v2390_v1 = vpop.f32.mrf.mxu0  ;;  %v6583_v55 = vld [vmem:[%s5731_s19 + $0x10] sm:$0xff] }
 0x5ce   : > { %v2550_v9 = vsel %vm657_vm1, %v2390_v1, -inf  ;;  %v6562_v0 = vpop.f32.mrf.mxu1  ;;  %7958 = vst [vmem:[#allocation21_spill] sm:$0xff] %v6583_v55 }
 0x5cf   : > { %7956 = vst [vmem:[#allocation19_spill] sm:$0xff] %v6562_v0 }
 0x5d0   : > { %v6564_v2 = vpop.f32.mrf.mxu1 }
 0x5d1   : > { %2551 = vmax.xlane.f32.xlu0 %v2550_v9  ;;  %7957 = vst [vmem:[#allocation20_spill] sm:$0xff] %v6564_v2  ;;  %v6588_v9 = vld [vmem:[%s5731_s19 + $0x38] sm:$0xff] }
 0x5d2   : > { %7959 = vst [vmem:[#allocation22_spill] sm:$0xff] %v6588_v9 }
 0x5d6   : > { %v6566_v40 = vpop.f32.mrf.mxu1 }
 0x5d7   : > { %v2547_v59 = vsel %vm657_vm1, %v6566_v40, -inf }
 0x5d8   : > { %v6570_v37 = vpop.f32.mrf.mxu1  ;;  %2548 = vmax.xlane.f32.xlu1 %v2547_v59  ;;  %v6593_v59 = vld [vmem:[%s5731_s19 + $0x30] sm:$0xff] }
 0x5d9   : > { %v2544_v58 = vsel %vm657_vm1, %v6570_v37, -inf }
 0x5dc   : > { %2545 = vmax.xlane.f32.xlu1 %v2544_v58  ;;  %v6600_v58 = vld [vmem:[%s5731_s19] sm:$0xff] }
 0x5dd   : > { %7960 = vst [vmem:[#allocation23_spill] sm:$0xff] %v6600_v58 }
 0x5de   : > { %v6574_v52 = vpop.f32.mrf.mxu1 }
 0x5df   : > { %v2559_v21 = vsel %vm657_vm1, %v6574_v52, -inf }
 0x5e0   : > { %v6578_v45 = vpop.f32.mrf.mxu1  ;;  %2560 = vmax.xlane.f32.xlu1 %v2559_v21  ;;  %v6607_v21 = vld [vmem:[%s5731_s19 + $0x28] sm:$0xff] }
 0x5e1   : > { %v2556_v63 = vsel %vm657_vm1, %v6578_v45, -inf  ;;  %7961 = vst [vmem:[#allocation24_spill] sm:$0xff] %v6607_v21 }
 0x5e4   : > { %2557 = vmax.xlane.f32.xlu1 %v2556_v63 }
 0x5e7   : > { %2777 = vrot.lane.b32.xlu0 %v6583_v55, %s5682_s5 }
 0x5eb   : > { %2969 = vrot.lane.b32.xlu0 %v6588_v9, %s5682_s5 }
 0x5ef   : > { %2967 = vrot.lane.b32.xlu0 %v6593_v59, %s5682_s5 }
 0x5f3   : > { %3159 = vrot.lane.b32.xlu0 %v6521_v53, %s5683_s6 }
 0x5f5   : > { %2682 = vrot.lane.b32.xlu1 %v6600_v58, %s5682_s5 }
 0x5f7   : > { %3157 = vrot.lane.b32.xlu0 %v6583_v55, %s5683_s6 }
 0x5f9   : > { %2874 = vrot.lane.b32.xlu1 %v6607_v21, %s5682_s5 }
 0x5fb   : > { %3153 = vrot.lane.b32.xlu0 %v5756_v6, %s5684_s7 }
 0x5fd   : > { %2872 = vrot.lane.b32.xlu1 %v6378_v17, %s5682_s5 }
 0x5ff   : > { %3341 = vrot.lane.b32.xlu0 %v6588_v9, %s5683_s6 }
 0x601   : > { %3068 = vrot.lane.b32.xlu1 %v6526_v61, %s5683_s6 }
 0x605   : > { %3066 = vrot.lane.b32.xlu1 %v6600_v58, %s5683_s6 }
 0x609   : > { %3062 = vrot.lane.b32.xlu1 %v5744_v3, %s5684_s7 }
 0x60d   : > { %3250 = vrot.lane.b32.xlu1 %v6607_v21, %s5683_s6 }
 0x64a   : > { %v2543_v63 = vpop.xlane.xlu0 %2542 }
 0x64b   : > { %v6626_v6 = vmax.f32 %v2543_v63, %v6536_v18 }
 0x64d   : > { %v2571_v0 = vsub.f32 %v5246_v56, %v6626_v6 }
 0x64e   : > { %v2540_v49 = vpop.xlane.xlu0 %2539 }
 0x64f   : > { %v2580_v34 = vmul.f32 1.442695, %v2571_v0  ;;  %v6630_v15 = vmax.f32 %v2540_v49, %v6530_v13 }
 0x651   : > { %5472 = vpow2.f32 %v2580_v34  ;;  %v2570_v2 = vsub.f32 %v2208_v12, %v6630_v15 }
 0x653   : > { %v2578_v11 = vmul.f32 1.442695, %v2570_v2 }
 0x655   : > { %5474 = vpow2.f32 %v2578_v11 }
 0x656   : > { %v2555_v3 = vpop.xlane.xlu0 %2554 }
 0x657   : > { %v6634_v44 = vmax.f32 %v2555_v3, %v6544_v36 }
 0x659   : > { %v2575_v57 = vsub.f32 %v5260_v25, %v6634_v44 }
 0x65a   : > { %v2552_v63 = vpop.xlane.xlu0 %2551 }
 0x65b   : > { %v2588_v9 = vmul.f32 1.442695, %v2575_v57  ;;  %v6638_v56 = vmax.f32 %v2552_v63, %v6540_v22 }
 0x65d   : > { %5476 = vpow2.f32 %v2588_v9  ;;  %v2574_v49 = vsub.f32 %v2390_v1, %v6638_v56 }
 0x65e   : > { %v6641_v0 = vpop.eup %5472  ;;  %v2778_v34 = vpop.permute.xlu0 %2777 }
 0x65f   : > { %v2586_v12 = vmul.f32 1.442695, %v2574_v49  ;;  %v2621_v11 = vsel %vm657_vm1, %v6641_v0, 0.0  ;;  %5277 = vmatprep.subr.mxu1 %v2778_v34 }
 0x660   : > { %2622 = vadd.xlane.f32.xlu0 %v2621_v11  ;;  %5278 = vmatpush3.msra.mxu1 %v2778_v34 }
 0x661   : > { %5478 = vpow2.f32 %v2586_v12  ;;  %v2549_v25 = vpop.xlane.xlu1 %2548 }
 0x662   : > { %v6645_v2 = vpop.eup %5474  ;;  %v6648_v57 = vmax.f32 %v2549_v25, %v6534_v16  ;;  %v6650_v9 = vpop.permute.xlu0 %2969 }
 0x663   : > { %v2618_v1 = vsel %vm657_vm1, %v6645_v2, 0.0  ;;  %5289 = vmatprep.subr.mxu1 %v6650_v9 }
 0x664   : > { %v2573_v3 = vsub.f32 %v6566_v40, %v6648_v57  ;;  %2619 = vadd.xlane.f32.xlu0 %v2618_v1 }
 0x665   : > { %v2546_v63 = vpop.xlane.xlu1 %2545 }
 0x666   : > { %v2584_v49 = vmul.f32 1.442695, %v2573_v3  ;;  %v6658_v34 = vmax.f32 %v2546_v63, %v6532_v54 }
 0x668   : > { %5480 = vpow2.f32 %v2584_v49  ;;  %v2572_v12 = vsub.f32 %v6570_v37, %v6658_v34 }
 0x669   : > { %v2561_v11 = vpop.xlane.xlu1 %2560 }
 0x66a   : > { %v6662_v25 = vpop.eup %5476  ;;  %v2582_v55 = vmul.f32 1.442695, %v2572_v12  ;;  %v6665_v58 = vmax.f32 %v2561_v11, %v6542_v41 }
 0x66b   : > { %v2633_v40 = vsel %vm657_vm1, %v6662_v25, 0.0 }
 0x66c   : > { %5482 = vpow2.f32 %v2582_v55  ;;  %v2577_v1 = vsub.f32 %v6574_v52, %v6665_v58  ;;  %2634 = vadd.xlane.f32.xlu0 %v2633_v40 }
 0x66d   : > { %v2558_v3 = vpop.xlane.xlu1 %2557 }
 0x66e   : > { %v6671_v63 = vpop.eup %5478  ;;  %v2592_v49 = vmul.f32 1.442695, %v2577_v1  ;;  %v6674_v37 = vmax.f32 %v2558_v3, %v6538_v62 }
 0x66f   : > { %v2630_v12 = vsel %vm657_vm1, %v6671_v63, 0.0 }
 0x670   : > { %5484 = vpow2.f32 %v2592_v49  ;;  %v2576_v11 = vsub.f32 %v6578_v45, %v6674_v37  ;;  %2631 = vadd.xlane.f32.xlu0 %v2630_v12 }
 0x671   : > { %v2683_v55 = vpop.permute.xlu1 %2682 }
 0x672   : > { %v2590_v21 = vmul.f32 1.442695, %v2576_v11  ;;  %5270 = vmatprep.subr.mxu0 %v2683_v55 }
 0x673   : > { %5271 = vmatpush3.msra.mxu0 %v2683_v55  ;;  %v2597_v55 = vsub.f32 %v6534_v16, %v6648_v57 }
 0x674   : > { %5486 = vpow2.f32 %v2590_v21 }
 0x675   : > { %v6680_v52 = vpop.eup %5480  ;;  %v6682_v40 = vpop.permute.xlu1 %2874 }
 0x676   : > { %v2627_v1 = vsel %vm657_vm1, %v6680_v52, 0.0  ;;  %5282 = vmatprep.subr.mxu0 %v6682_v40 }
 0x677   : > { %2628 = vadd.xlane.f32.xlu1 %v2627_v1 }
 0x679   : > { %v6687_v3 = vpop.eup %5482 }
 0x67a   : > { %v2624_v45 = vsel %vm657_vm1, %v6687_v3, 0.0 }
 0x67b   : > { %2625 = vadd.xlane.f32.xlu1 %v2624_v45 }
 0x67d   : > { %v6691_v49 = vpop.eup %5484 }
 0x67e   : > { %v2639_v21 = vsel %vm657_vm1, %v6691_v49, 0.0 }
 0x67f   : > { %2640 = vadd.xlane.f32.xlu1 %v2639_v21 }
 0x681   : > { %v6695_v12 = vpop.eup %5486 }
 0x682   : > { %v2636_v11 = vsel %vm657_vm1, %v6695_v12, 0.0 }
 0x683   : > { %2637 = vadd.xlane.f32.xlu1 %v2636_v11  ;;  %v2601_v11 = vsub.f32 %v6542_v41, %v6665_v58 }
 0x685   : > { %v2616_v57 = vmul.f32 1.442695, %v2601_v11 }
 0x686   : > { %3155 = vrot.lane.b32.xlu0 %v5816_v23, %s5684_s7 }
 0x68a   : > { %3339 = vrot.lane.b32.xlu0 %v6593_v59, %s5683_s6 }
 0x68e   : > { %3335 = vrot.lane.b32.xlu0 %v5824_v24, %s5684_s7 }
 0x692   : > { %3337 = vrot.lane.b32.xlu0 %v5838_v28, %s5684_s7  ;;  %v2595_v28 = vsub.f32 %v6536_v18, %v6626_v6 }
 0x694   : > { %3064 = vrot.lane.b32.xlu1 %v5804_v19, %s5684_s7  ;;  %v7962_v19 = vld [vmem:[#allocation3_spill] sm:$0xff] }
 0x695   : > { %v795_v23 = vmul.f32 %v6095_v14, %v7962_v19  ;;  %v796_v24 = vmul.f32 %v6113_v7, %v7962_v19  ;;  %v6740_v14 = vpop.permute.xlu0 %2967  ;;  %v2873_v7 = vpop.permute.xlu1 %2872 }
 0x696   : > { %3430 = vrot.lane.b32.xlu0 %v5843_v30, %s5684_s7  ;;  %v2604_v30 = vmul.f32 1.442695, %v2595_v28  ;;  %v2600_v28 = vsub.f32 %v6538_v62, %v6674_v37 }
 0x698   : > { %3248 = vrot.lane.b32.xlu1 %v6378_v17, %s5683_s6  ;;  %5488 = vpow2.f32 %v2604_v30 }
 0x69a   : > { %3432 = vrot.lane.b32.xlu0 %v5852_v33, %s5684_s7 }
 0x69c   : > { %3244 = vrot.lane.b32.xlu1 %v5810_v20, %s5684_s7  ;;  %v794_v20 = vmul.f32 %v6098_v42, %v7962_v19  ;;  %v2598_v42 = vsub.f32 %v6540_v22, %v6638_v56  ;;  %v2608_v22 = vmul.f32 1.442695, %v2597_v55  ;;  %v2596_v56 = vsub.f32 %v6532_v54, %v6658_v34 }
 0x69e   : > { %3438 = vrot.lane.b32.xlu0 %v5869_v39, %s5684_s7  ;;  %v2599_v39 = vsub.f32 %v6544_v36, %v6634_v44  ;;  %v2606_v21 = vmul.f32 1.442695, %v2596_v56 }
 0x6a0   : > { %3246 = vrot.lane.b32.xlu1 %v5830_v27, %s5684_s7  ;;  %v6742_v27 = vpop.permute.xlu0 %3159 }
 0x6a2   : > { %3440 = vrot.lane.b32.xlu0 %v5879_v43, %s5684_s7  ;;  %v2612_v43 = vmul.f32 1.442695, %v2599_v39  ;;  %v2614_v39 = vmul.f32 1.442695, %v2600_v28 }
 0x6a4   : > { %3426 = vrot.lane.b32.xlu1 %v5846_v31, %s5684_s7  ;;  %v2594_v31 = vsub.f32 %v6530_v13, %v6630_v15  ;;  %v6758_v15 = vpop.permute.xlu1 %3068 }
 0x6a5   : > { %v5489_v13 = vpop.eup %5488 }
 0x6a6   : > { %812 = vrot.lane.b32.xlu0 %v795_v23, %s5676_s25  ;;  %v2602_v33 = vmul.f32 1.442695, %v2594_v31 }
 0x6a8   : > { %3428 = vrot.lane.b32.xlu1 %v5849_v32, %s5684_s7  ;;  %v6748_v32 = vpop.permute.xlu0 %3157  ;;  %5490 = vpow2.f32 %v2602_v33  ;;  %v6764_v45 = vpop.permute.xlu1 %3066 }
 0x6a9   : > { %5492 = vpow2.f32 %v2612_v43 }
 0x6ac   : > { %3434 = vrot.lane.b32.xlu1 %v5866_v38, %s5684_s7  ;;  %v6750_v38 = vpop.permute.xlu0 %3153 }
 0x6b0   : > { %3436 = vrot.lane.b32.xlu1 %v7949_v5, %s5684_s7  ;;  %v6756_v17 = vpop.permute.xlu0 %3341  ;;  %v2610_v5 = vmul.f32 1.442695, %v2598_v42 }
 0x6b2   : > { %5494 = vpow2.f32 %v2610_v5 }
 0x6b4   : > { %810 = vrot.lane.b32.xlu1 %v794_v20, %s5676_s25 }
 0x6b5   : > { %v5491_v36 = vpop.eup %5490 }
 0x6b6   : > { %v5493_v23 = vpop.eup %5492 }
 0x6b8   : > { %905 = vrot.lane.b32.xlu1 %v796_v24, %s5676_s25  ;;  %v3063_v24 = vpop.permute.xlu1 %3062 }
 0x6bc   : > { %v3251_v42 = vpop.permute.xlu1 %3250 }
 0x6bf   : > { %v5495_v30 = vpop.eup %5494 }
 0x6e9   : > { %v2623_v18 = vpop.xlane.xlu0 %2622 }
 0x6ea   : > { %v2643_v6 = vadd.f32 %v5489_v13, %v2623_v18 }
 0x6ec   : > { %5496 = vrcp.f32 %v2643_v6 }
 0x6ed   : > { %v2620_v44 = vpop.xlane.xlu0 %2619 }
 0x6ee   : > { %v2642_v1 = vadd.f32 %v5491_v36, %v2620_v44 }
 0x6f0   : > { %5498 = vrcp.f32 %v2642_v1 }
 0x6f1   : > { %5500 = vpow2.f32 %v2608_v22 }
 0x6f2   : > { %5502 = vpow2.f32 %v2606_v21 }
 0x6f5   : > { %v2635_v20 = vpop.xlane.xlu0 %2634 }
 0x6f6   : > { %v2647_v16 = vadd.f32 %v5493_v23, %v2635_v20 }
 0x6f8   : > { %5504 = vrcp.f32 %v2647_v16 }
 0x6f9   : > { %v5497_v54 = vpop.eup %5496  ;;  %v2632_v34 = vpop.xlane.xlu0 %2631  ;;  %5506 = vpow2.f32 %v2616_v57 }
 0x6fa   : > { %v2646_v31 = vadd.f32 %v5495_v30, %v2632_v34  ;;  %v6770_v33 = vmul.f32 %v5497_v54, %v5489_v13  ;;  %v2659_v62 = vmul.f32 %v5497_v54, %v6641_v0 }
 0x6fc   : > { %5508 = vrcp.f32 %v2646_v31 }
 0x6fd   : > { %v5499_v41 = vpop.eup %5498  ;;  %v6772_v58 = vpop.permute.xlu0 %3155  ;;  %5510 = vpow2.f32 %v2614_v39 }
 0x6fe   : > { %v2658_v43 = vmul.f32 %v5499_v41, %v6645_v2  ;;  %v6775_v5 = vmul.f32 %v5499_v41, %v5491_v36  ;;  %v5501_v37 = vpop.eup %5500 }
 0x6ff   : > { %v5503_v55 = vpop.eup %5502 }
 0x700   : > { %v2629_v18 = vpop.xlane.xlu1 %2628  ;;  %5272 = vmatprep.mubr.msk.f32.mxu0 %vm657_vm1, %v2658_v43 }
 0x701   : > { %v2645_v13 = vadd.f32 %v5501_v37, %v2629_v18  ;;  %v6779_v6 = vpop.permute.xlu0 %3339  ;;  %5273 = vmatmul.mubr.msk.f32.vlgmr.msra.gmra.mxu0 %vm657_vm1, %v2659_v62 }
 0x702   : > { %5283 = vmatpush3.msra.mxu0 %v6682_v40 }
 0x703   : > { %5512 = vrcp.f32 %v2645_v13  ;;  %5284 = vmatprep.subr.mxu0 %v2873_v7 }
 0x704   : > { %5285 = vmatpush3.msra.mxu0 %v2873_v7  ;;  %v2626_v2 = vpop.xlane.xlu1 %2625 }
 0x705   : > { %v5505_v36 = vpop.eup %5504  ;;  %v2644_v44 = vadd.f32 %v5503_v55, %v2626_v2  ;;  %5296 = vmatprep.subr.msk.mxu0 %vm258_vm0, %v6758_v15  ;;  %v6785_v0 = vpop.permute.xlu0 %3335 }
 0x706   : > { %v6787_v1 = vmul.f32 %v5505_v36, %v5493_v23  ;;  %v5507_v22 = vpop.eup %5506  ;;  %v2663_v16 = vmul.f32 %v5505_v36, %v6662_v25 }
 0x707   : > { %5514 = vrcp.f32 %v2644_v44 }
 0x708   : > { %v2641_v56 = vpop.xlane.xlu1 %2640 }
 0x709   : > { %v5509_v21 = vpop.eup %5508  ;;  %v2649_v11 = vadd.f32 %v5507_v22, %v2641_v56  ;;  %v6789_v40 = vpop.permute.xlu0 %3337  ;;  %v800_v56 = vmul.f32 %v6160_v51, %v7962_v19  ;;  %v1741_v51 = vmul.f32 %v6447_v29, %v7962_v19 }
 0x70a   : > { %v2662_v20 = vmul.f32 %v5509_v21, %v6671_v63  ;;  %v6792_v7 = vmul.f32 %v5509_v21, %v5495_v30  ;;  %v5511_v57 = vpop.eup %5510  ;;  %v7966_v21 = vld [vmem:[#allocation5_spill] sm:$0xff] }
 0x70b   : > { %5516 = vrcp.f32 %v2649_v11  ;;  %v801_v11 = vmul.f32 %v7966_v21, %v7962_v19  ;;  %v228_v21 = vld [vmem:[%s5775_s24 + $0x8] sm:$0xff] }
 0x70c   : > { %7963 = vst [vmem:[#allocation3_spill] sm:$0xff] %v6792_v7  ;;  %v2638_v28 = vpop.xlane.xlu1 %2637  ;;  %5286 = vmatprep.mubr.msk.f32.mxu0 %vm657_vm1, %v2662_v20 }
 0x70d   : > { %v2648_v23 = vadd.f32 %v5511_v57, %v2638_v28  ;;  %v3431_v54 = vpop.permute.xlu0 %3430  ;;  %5287 = vmatmul.mubr.msk.f32.vlgmr.msra.gmra.mxu0 %vm657_vm1, %v2663_v16  ;;  %v5657_v28 = vld [vmem:[%s5731_s19 + $0x20] sm:$0xff]  ;;  %s226_s19 = scalar_lea.vmem %s7926_s4, %s8049_s16 }
 0x70e   : > { %5297 = vmatpush3.xpose.msk.msra.mxu0 %vm258_vm0, %v6758_v15  ;;  %5300 = vmatprep.mubr.msk.f32.mxu0 %vm258_vm0, %v3063_v24  ;;  %v3456_v63 = vsel %vm258_vm0, %v3431_v54, 0.0 }
 0x70f   : > { %5518 = vrcp.f32 %v2648_v23  ;;  %5298 = vmatprep.subr.msk.mxu0 %vm258_vm0, %v6764_v45  ;;  %3457 = vadd.xlane.f32.xlu1 %v3456_v63  ;;  %v7972_v23 = vld [vmem:[#allocation22_spill] sm:$0xff] }
 0x710   : > { %v5513_v25 = vpop.eup %5512  ;;  %v3065_v30 = vpop.permute.xlu1 %3064 }
 0x711   : > { %v6803_v34 = vmul.f32 %v5513_v25, %v5501_v37  ;;  %v2661_v41 = vmul.f32 %v5513_v25, %v6680_v52  ;;  %v3433_v37 = vpop.permute.xlu0 %3432 }
 0x712   : > { %5299 = vmatpush3.xpose.msk.msra.mxu0 %vm258_vm0, %v6764_v45 }
 0x713   : > { %5310 = vmatprep.subr.msk.mxu0 %vm258_vm0, %v3251_v42 }
 0x714   : > { %v5515_v31 = vpop.eup %5514  ;;  %v3249_v15 = vpop.permute.xlu1 %3248 }
 0x715   : > { %5301 = vmatmul.mubr.msk.f32.vlgmr.msra.gmra.mxu0 %vm258_vm0, %v3065_v30  ;;  %v2660_v24 = vmul.f32 %v5515_v31, %v6687_v3  ;;  %v6810_v39 = vmul.f32 %v5515_v31, %v5503_v55 }
 0x716   : > { %5311 = vmatpush3.xpose.msk.msra.mxu0 %vm258_vm0, %v3251_v42 }
 0x717   : > { %5279 = vmatprep.mubr.msk.f32.mxu1 %vm657_vm1, %v2660_v24  ;;  %5312 = vmatprep.subr.msk.mxu0 %vm258_vm0, %v3249_v15 }
 0x718   : > { %v5517_v43 = vpop.eup %5516  ;;  %5280 = vmatmul.mubr.msk.f32.vlgmr.msra.gmra.mxu1 %vm657_vm1, %v2661_v41  ;;  %v3245_v45 = vpop.permute.xlu1 %3244 }
 0x719   : > { %5290 = vmatpush3.msra.mxu1 %v6650_v9  ;;  %5314 = vmatprep.mubr.msk.f32.mxu0 %vm258_vm0, %v3245_v45  ;;  %v6819_v62 = vmul.f32 %v5517_v43, %v5507_v22  ;;  %v2665_v18 = vmul.f32 %v5517_v43, %v6691_v49  ;;  %v3459_v49 = vsel %vm258_vm0, %v3433_v37, 0.0  ;;  %v799_v22 = vmul.f32 %v6126_v46, %v7962_v19 }
 0x71a   : > { %5291 = vmatprep.subr.mxu1 %v6740_v14  ;;  %5313 = vmatpush3.xpose.msk.msra.mxu0 %vm258_vm0, %v3249_v15  ;;  %v1739_v46 = vmul.f32 %v6420_v35, %v7962_v19  ;;  %v1743_v35 = vmul.f32 %v6439_v4, %v7962_v19  ;;  %v7969_v4 = vld [vmem:[#allocation24_spill] sm:$0xff] }
 0x71b   : > { %7964 = vst [vmem:[#allocation25_spill] sm:$0xff] %v6819_v62  ;;  %5292 = vmatpush3.msra.mxu1 %v6740_v14 }
 0x71c   : > { %v5519_v52 = vpop.eup %5518  ;;  %5303 = vmatprep.subr.msk.mxu1 %vm258_vm0, %v6742_v27  ;;  %v3247_v3 = vpop.permute.xlu1 %3246 }
 0x71d   : > { %5315 = vmatmul.mubr.msk.f32.vlgmr.msra.gmra.mxu0 %vm258_vm0, %v3247_v3  ;;  %v2664_v42 = vmul.f32 %v5519_v52, %v6695_v12  ;;  %v6828_v9 = vmul.f32 %v5519_v52, %v5511_v57  ;;  %v3439_v12 = vpop.permute.xlu0 %3438  ;;  %v1744_v57 = vmul.f32 %v6486_v10, %v7962_v19  ;;  %v7970_v10 = vld [vmem:[#allocation23_spill] sm:$0xff] }
 0x71f   : > { %7965 = vst [vmem:[#allocation26_spill] sm:$0xff] %v6828_v9  ;;  %5293 = vmatprep.mubr.msk.f32.mxu1 %vm657_vm1, %v2664_v42 }
 0x720   : > { %5294 = vmatmul.mubr.msk.f32.vlgmr.msra.gmra.mxu1 %vm657_vm1, %v2665_v18  ;;  %v3427_v13 = vpop.permute.xlu1 %3426 }
 0x721   : > { %5304 = vmatpush3.xpose.msk.msra.mxu1 %vm258_vm0, %v6742_v27  ;;  %5307 = vmatprep.mubr.msk.f32.mxu1 %vm258_vm0, %v6750_v38  ;;  %v3450_v14 = vsel %vm258_vm0, %v3427_v13, 0.0  ;;  %v3441_v36 = vpop.permute.xlu0 %3440 }
 0x722   : > { %5305 = vmatprep.subr.msk.mxu1 %vm258_vm0, %v6748_v32  ;;  %3451 = vadd.xlane.f32.xlu0 %v3450_v14 }
 0x724   : > { %v3429_v55 = vpop.permute.xlu1 %3428 }
 0x725   : > { %5306 = vmatpush3.xpose.msk.msra.mxu1 %vm258_vm0, %v6748_v32  ;;  %v3453_v2 = vsel %vm258_vm0, %v3429_v55, 0.0  ;;  %v3468_v32 = vsel %vm258_vm0, %v3439_v12, 0.0 }
 0x726   : > { %5317 = vmatprep.subr.msk.mxu1 %vm258_vm0, %v6756_v17  ;;  %3460 = vadd.xlane.f32.xlu0 %v3459_v49 }
 0x727   : > { %3454 = vadd.xlane.f32.xlu1 %v3453_v2  ;;  %v231_v2 = vld [vmem:[%s5775_s24 + $0x20] sm:$0xff] }
 0x728   : > { %5308 = vmatmul.mubr.msk.f32.vlgmr.msra.gmra.mxu1 %vm258_vm0, %v6772_v58  ;;  %v3435_v27 = vpop.permute.xlu1 %3434  ;;  %v3471_v58 = vsel %vm258_vm0, %v3441_v36, 0.0 }
 0x729   : > { %5318 = vmatpush3.xpose.msk.msra.mxu1 %vm258_vm0, %v6756_v17  ;;  %5321 = vmatprep.mubr.msk.f32.mxu1 %vm258_vm0, %v6785_v0  ;;  %v3462_v38 = vsel %vm258_vm0, %v3435_v27, 0.0  ;;  %v797_v0 = vmul.f32 %v6104_v47, %v7962_v19  ;;  %v1738_v47 = vmul.f32 %v6425_v26, %v7962_v19  ;;  %v1742_v26 = vmul.f32 %v6444_v60, %v7962_v19 }
 0x72a   : > { %5319 = vmatprep.subr.msk.mxu1 %vm258_vm0, %v6779_v6  ;;  %3469 = vadd.xlane.f32.xlu0 %v3468_v32  ;;  %v1745_v60 = vmul.f32 %v6470_v50, %v7962_v19  ;;  %v7971_v50 = vld [vmem:[#allocation21_spill] sm:$0xff] }
 0x72b   : > { %3463 = vadd.xlane.f32.xlu1 %v3462_v38 }
 0x72c   : > { %v3437_v44 = vpop.permute.xlu1 %3436 }
 0x72d   : > { %5320 = vmatpush3.xpose.msk.msra.mxu1 %vm258_vm0, %v6779_v6  ;;  %v3465_v17 = vsel %vm258_vm0, %v3437_v44, 0.0  ;;  %v798_v6 = vmul.f32 %v6132_v48, %v7962_v19  ;;  %v1740_v48 = vmul.f32 %v6459_v8, %v7962_v19  ;;  %v7967_v8 = vld [vmem:[#allocation2_spill] sm:$0xff] }
 0x72e   : > { %3472 = vadd.xlane.f32.xlu0 %v3471_v58  ;;  %v7968_v16 = vsub.s32 0, %v7967_v8  ;;  %v235_v58 = vld [vmem:[%s5775_s24 + $0x40] sm:$0x1]  ;;  %v233_v8 = vld [vmem:[%s5775_s24 + $0x30] sm:$0xff] }
 0x72f   : > { %3466 = vadd.xlane.f32.xlu1 %v3465_v17 }
 0x730   : > { %5322 = vmatmul.mubr.msk.f32.vlgmr.msra.gmra.mxu1 %vm258_vm0, %v6789_v40  ;;  %v5656_v40 = vld [vmem:[%s5775_s24] sm:$0xff] }
 0x731   : > { %v4128_v20 = vmul.f32 0.35355338, %v5656_v40 }
 0x733   : > { %v4132_v29 = vrot.slane %v4128_v20, %v7968_v16 }
 0x740   : > { %907 = vrot.lane.b32.xlu1 %v797_v0, %s5676_s25 }
 0x744   : > { %1002 = vrot.lane.b32.xlu1 %v799_v22, %s5676_s25  ;;  %1000 = vrot.lane.b32.xlu0 %v798_v6, %s5676_s25 }
 0x748   : > { %1095 = vrot.lane.b32.xlu1 %v800_v56, %s5676_s25  ;;  %1097 = vrot.lane.b32.xlu0 %v801_v11, %s5676_s25  ;;  %v229_v56 = vld [vmem:[%s5775_s24 + $0x10] sm:$0xff] }
 0x74c   : > { %1754 = vrot.lane.b32.xlu1 %v1738_v47, %s5679_s28  ;;  %1756 = vrot.lane.b32.xlu0 %v1739_v46, %s5679_s28 }
 0x750   : > { %1849 = vrot.lane.b32.xlu1 %v1740_v48, %s5679_s28  ;;  %1851 = vrot.lane.b32.xlu0 %v1741_v51, %s5679_s28  ;;  %v232_v48 = vld [vmem:[%s5775_s24 + $0x28] sm:$0xff]  ;;  %v230_v51 = vld [vmem:[%s5775_s24 + $0x18] sm:$0xff] }
 0x754   : > { %1944 = vrot.lane.b32.xlu1 %v1742_v26, %s5679_s28  ;;  %1946 = vrot.lane.b32.xlu0 %v1743_v35, %s5679_s28  ;;  %v234_v35 = vld [vmem:[%s5775_s24 + $0x38] sm:$0xff] }
 0x758   : > { %4134 = vrot.lane.b32.xlu1 %v4132_v29, %s5685_s8  ;;  %2039 = vrot.lane.b32.xlu0 %v1744_v57, %s5679_s28  ;;  %v2675_v57 = vmul.f32 %v6770_v33, %v7962_v19 }
 0x75c   : > { %2041 = vrot.lane.b32.xlu1 %v1745_v60, %s5679_s28  ;;  %3715 = vrot.lane.b32.xlu0 %v6521_v53, %s5686_s9  ;;  %v6920_v53 = vpop.permute.xlu1 %810  ;;  %v2677_v60 = vmul.f32 %v6803_v34, %v7962_v19 }
 0x75d   : > { %7973 = vst [vmem:[#allocation5_spill] sm:$0xff] %v6920_v53 }
 0x760   : > { %3620 = vrot.lane.b32.xlu1 %v6526_v61, %s5686_s9  ;;  %3810 = vrot.lane.b32.xlu0 %v7969_v4, %s5686_s9  ;;  %v6922_v61 = vpop.permute.xlu0 %812  ;;  %v6924_v54 = vpop.permute.xlu1 %905  ;;  %v2674_v4 = vmul.f32 %v6775_v5, %v7962_v19 }
 0x761   : > { %7974 = vst [vmem:[#allocation2_spill] sm:$0xff] %v6922_v61  ;;  %7975 = vst [vmem:[#allocation24_spill] sm:$0xff] %v6924_v54 }
 0x764   : > { %3618 = vrot.lane.b32.xlu1 %v7970_v10, %s5686_s9  ;;  %3808 = vrot.lane.b32.xlu0 %v5657_v28, %s5686_s9  ;;  %v2676_v10 = vmul.f32 %v6810_v39, %v7962_v19 }
 0x768   : > { %3713 = vrot.lane.b32.xlu1 %v7971_v50, %s5686_s9 }
 0x76c   : > { %3905 = vrot.lane.b32.xlu1 %v7972_v23, %s5686_s9 }
 0x770   : > { %3903 = vrot.lane.b32.xlu1 %v6593_v59, %s5686_s9 }
 0x798   : > { %v6928_v25 = vpop.xlane.xlu1 %3457 }
 0x7ab   : > { %v6926_v63 = vpop.xlane.xlu0 %3451 }
 0x7af   : > { %v6930_v30 = vpop.xlane.xlu0 %3460 }
 0x7b0   : > { %v6932_v31 = vpop.xlane.xlu1 %3454 }
 0x7b3   : > { %v6934_v15 = vpop.xlane.xlu0 %3469 }
 0x7b4   : > { %v6936_v24 = vpop.xlane.xlu1 %3463 }
 0x7b7   : > { %v6938_v59 = vpop.xlane.xlu0 %3472 }
 0x7b8   : > { %v6940_v41 = vpop.xlane.xlu1 %3466 }
 0x7bb   : > { %v6942_v43 = vpop.permute.xlu0 %1000 }
 0x7bc   : > { %7976 = vst [vmem:[#allocation23_spill] sm:$0xff] %v6942_v43  ;;  %v6944_v45 = vpop.permute.xlu1 %907 }
 0x7bd   : > { %7977 = vst [vmem:[#allocation21_spill] sm:$0xff] %v6944_v45 }
 0x7bf   : > { %v6946_v52 = vpop.permute.xlu0 %1097 }
 0x7c0   : > { %7978 = vst [vmem:[#allocation22_spill] sm:$0xff] %v6946_v52  ;;  %v6948_v3 = vpop.permute.xlu1 %1002 }
 0x7c1   : > { %7979 = vst [vmem:[#allocation27_spill] sm:$0xff] %v6948_v3  ;;  %v7046_v33 = vpop.f32.mrf.mxu0 }
 0x7c2   : > { %7989 = vst [vmem:[#allocation37_spill] sm:$0xff] %v7046_v33 }
 0x7c3   : > { %v6950_v42 = vpop.permute.xlu0 %1756  ;;  %v7050_v50 = vpop.f32.mrf.mxu0 }
 0x7c4   : > { %7980 = vst [vmem:[#allocation28_spill] sm:$0xff] %v6950_v42  ;;  %v6952_v37 = vpop.permute.xlu1 %1095  ;;  %7991 = vst [vmem:[#allocation39_spill] sm:$0xff] %v7050_v50 }
 0x7c5   : > { %7981 = vst [vmem:[#allocation29_spill] sm:$0xff] %v6952_v37 }
 0x7c7   : > { %v6954_v18 = vpop.permute.xlu0 %1851 }
 0x7c8   : > { %7982 = vst [vmem:[#allocation30_spill] sm:$0xff] %v6954_v18  ;;  %v6956_v13 = vpop.permute.xlu1 %1754 }
 0x7c9   : > { %7983 = vst [vmem:[#allocation31_spill] sm:$0xff] %v6956_v13 }
 0x7cb   : > { %v6958_v14 = vpop.permute.xlu0 %1946 }
 0x7cc   : > { %7984 = vst [vmem:[#allocation32_spill] sm:$0xff] %v6958_v14  ;;  %v6960_v12 = vpop.permute.xlu1 %1849 }
 0x7cd   : > { %7985 = vst [vmem:[#allocation33_spill] sm:$0xff] %v6960_v12  ;;  %v7054_v34 = vpop.f32.mrf.mxu0 }
 0x7ce   : > { %7993 = vst [vmem:[#allocation41_spill] sm:$0xff] %v7054_v34 }
 0x7cf   : > { %v6962_v55 = vpop.permute.xlu0 %2039 }
 0x7d0   : > { %7986 = vst [vmem:[#allocation34_spill] sm:$0xff] %v6962_v55  ;;  %v6964_v49 = vpop.permute.xlu1 %1944 }
 0x7d1   : > { %7987 = vst [vmem:[#allocation35_spill] sm:$0xff] %v6964_v49 }
 0x7d3   : > { %v3716_v27 = vpop.permute.xlu0 %3715 }
 0x7d4   : > { %v4135_v32 = vpop.permute.xlu1 %4134  ;;  %5331 = vmatprep.subr.mxu1 %v3716_v27 }
 0x7d5   : > { %v4141_v38 = vmul.f32 %v4135_v32, %v231_v2  ;;  %v4137_v36 = vmul.f32 %v5656_v40, %v4135_v32  ;;  %5332 = vmatpush3.msra.mxu1 %v3716_v27  ;;  %v6974_v0 = vmul.f32 %v4135_v32, %v235_v58  ;;  %v6987_v47 = vmul.f32 %v4135_v32, %v229_v56  ;;  %v7058_v2 = vpop.f32.mrf.mxu0 }
 0x7d6   : > { %v6989_v46 = vmul.f32 %v4135_v32, %v228_v21  ;;  %v6999_v20 = vmul.f32 %v4135_v32, %v232_v48  ;;  %v7001_v26 = vmul.f32 %v4135_v32, %v230_v51  ;;  %v7010_v16 = vmul.f32 %v4135_v32, %v234_v35  ;;  %7995 = vst [vmem:[#allocation43_spill] sm:$0xff] %v7058_v2 }
 0x7d7   : > { %4163 = vrot.lane.b32.xlu1 %v4141_v38, %s5675_s20  ;;  %4155 = vrot.lane.b32.xlu0 %v4137_v36, %s5675_s20  ;;  %v6980_v6 = vpop.permute.xlu0 %3810  ;;  %v7012_v29 = vmul.f32 %v4135_v32, %v233_v8  ;;  %v7062_v32 = vpop.f32.mrf.mxu0 }
 0x7d8   : > { %v6969_v44 = vpop.permute.xlu1 %2041  ;;  %v7048_v28 = vpop.f32.mrf.mxu1  ;;  %v3477_v58 = vsel %vm657_vm1, %v7062_v32, -inf }
 0x7d9   : > { %7988 = vst [vmem:[#allocation36_spill] sm:$0xff] %v6969_v44  ;;  %7990 = vst [vmem:[#allocation38_spill] sm:$0xff] %v7048_v28 }
 0x7da   : > { %v7052_v23 = vpop.f32.mrf.mxu1 }
 0x7db   : > { %4320 = vrot.lane.b32.xlu1 %v4141_v38, %s5677_s26  ;;  %4312 = vrot.lane.b32.xlu0 %v4137_v36, %s5677_s26  ;;  %7992 = vst [vmem:[#allocation40_spill] sm:$0xff] %v7052_v23 }
 0x7dc   : > { %v3621_v17 = vpop.permute.xlu1 %3620 }
 0x7dd   : > { %5324 = vmatprep.subr.mxu0 %v3621_v17 }
 0x7de   : > { %5325 = vmatpush3.msra.mxu0 %v3621_v17 }
 0x7df   : > { %4328 = vrot.lane.b32.xlu1 %v6974_v0, %s5677_s26  ;;  %4171 = vrot.lane.b32.xlu0 %v6974_v0, %s5675_s20 }
 0x7e0   : > { %v3619_v22 = vpop.permute.xlu1 %3618  ;;  %v7056_v5 = vpop.f32.mrf.mxu1 }
 0x7e1   : > { %5326 = vmatprep.subr.mxu0 %v3619_v22  ;;  %7994 = vst [vmem:[#allocation42_spill] sm:$0xff] %v7056_v5 }
 0x7e2   : > { %5327 = vmatpush3.msra.mxu0 %v3619_v22  ;;  %v7060_v27 = vpop.f32.mrf.mxu1 }
 0x7e3   : > { %4475 = vrot.lane.b32.xlu1 %v4141_v38, %s5680_s29  ;;  %4467 = vrot.lane.b32.xlu0 %v4137_v36, %s5680_s29  ;;  %7996 = vst [vmem:[#allocation44_spill] sm:$0xff] %v7060_v27 }
 0x7e4   : > { %v3714_v11 = vpop.permute.xlu1 %3713  ;;  %5338 = vmatprep.subr.mxu0 %v6980_v6 }
 0x7e5   : > { %5333 = vmatprep.subr.mxu1 %v3714_v11 }
 0x7e6   : > { %5334 = vmatpush3.msra.mxu1 %v3714_v11 }
 0x7e7   : > { %4159 = vrot.lane.b32.xlu1 %v6987_v47, %s5675_s20  ;;  %4157 = vrot.lane.b32.xlu0 %v6989_v46, %s5675_s20 }
 0x7e8   : > { %v6997_v40 = vpop.permute.xlu1 %3905  ;;  %v7064_v39 = vpop.f32.mrf.mxu1 }
 0x7e9   : > { %5345 = vmatprep.subr.mxu1 %v6997_v40 }
 0x7ea   : > { %v7076_v56 = vpop.f32.mrf.mxu1 }
 0x7eb   : > { %4165 = vrot.lane.b32.xlu1 %v6999_v20, %s5675_s20  ;;  %4161 = vrot.lane.b32.xlu0 %v7001_v26, %s5675_s20  ;;  %v3480_v48 = vsel %vm657_vm1, %v7076_v56, -inf }
 0x7ef   : > { %4169 = vrot.lane.b32.xlu1 %v7010_v16, %s5675_s20  ;;  %4167 = vrot.lane.b32.xlu0 %v7012_v29, %s5675_s20 }
 0x7f0   : > { %v7084_v51 = vpop.f32.mrf.mxu1 }
 0x7f1   : > { %v3495_v8 = vsel %vm657_vm1, %v7084_v51, -inf }
 0x7f3   : > { %4316 = vrot.lane.b32.xlu1 %v6987_v47, %s5677_s26  ;;  %4314 = vrot.lane.b32.xlu0 %v6989_v46, %s5677_s26 }
 0x7f7   : > { %4322 = vrot.lane.b32.xlu1 %v6999_v20, %s5677_s26  ;;  %4318 = vrot.lane.b32.xlu0 %v7001_v26, %s5677_s26 }
 0x7fb   : > { %4326 = vrot.lane.b32.xlu1 %v7010_v16, %s5677_s26  ;;  %4324 = vrot.lane.b32.xlu0 %v7012_v29, %s5677_s26 }
 0x7ff   : > { %4622 = vrot.lane.b32.xlu1 %v4137_v36, %s5683_s6  ;;  %4483 = vrot.lane.b32.xlu0 %v6974_v0, %s5680_s29  ;;  %v3483_v36 = vsel %vm657_vm1, %v7064_v39, -inf }
 0x803   : > { %2692 = vrot.lane.b32.xlu1 %v2675_v57, %s5682_s5  ;;  %4630 = vrot.lane.b32.xlu0 %v4141_v38, %s5683_s6  ;;  %v7066_v38 = vpop.f32.mrf.mxu0  ;;  %v7108_v57 = vpop.permute.xlu0 %3808 }
 0x804   : > { %v3474_v22 = vsel %vm657_vm1, %v7066_v38, -inf }
 0x805   : > { %v7072_v17 = vpop.f32.mrf.mxu0 }
 0x806   : > { %v3489_v21 = vsel %vm657_vm1, %v7072_v17, -inf }
 0x807   : > { %2787 = vrot.lane.b32.xlu1 %v2677_v60, %s5682_s5  ;;  %2690 = vrot.lane.b32.xlu0 %v2674_v4, %s5682_s5  ;;  %v7080_v11 = vpop.f32.mrf.mxu0  ;;  %v7112_v4 = vpop.permute.xlu1 %3903 }
 0x808   : > { %v3486_v35 = vsel %vm657_vm1, %v7080_v11, -inf }
 0x80b   : > { %2785 = vrot.lane.b32.xlu0 %v2676_v10, %s5682_s5 }
 0x82a   : > { %3484 = vmax.xlane.f32.xlu0 %v3483_v36 }
 0x82b   : > { %3478 = vmax.xlane.f32.xlu1 %v3477_v58 }
 0x82e   : > { %3475 = vmax.xlane.f32.xlu0 %v3474_v22 }
 0x82f   : > { %3490 = vmax.xlane.f32.xlu1 %v3489_v21 }
 0x832   : > { %3481 = vmax.xlane.f32.xlu0 %v3480_v48 }
 0x833   : > { %3487 = vmax.xlane.f32.xlu1 %v3486_v35 }
 0x836   : > { %3496 = vmax.xlane.f32.xlu0 %v3495_v8 }
 0x844   : > { %4469 = vrot.lane.b32.xlu1 %v6989_v46, %s5680_s29 }
 0x848   : > { %4473 = vrot.lane.b32.xlu1 %v7001_v26, %s5680_s29 }
 0x849   : > { %v7110_v60 = vpop.permute.xlu0 %4155 }
 0x84c   : > { %4479 = vrot.lane.b32.xlu1 %v7012_v29, %s5680_s29  ;;  %4471 = vrot.lane.b32.xlu0 %v6987_v47, %s5680_s29 }
 0x84d   : > { %v7114_v10 = vpop.permute.xlu0 %4312 }
 0x850   : > { %4638 = vrot.lane.b32.xlu1 %v6974_v0, %s5683_s6  ;;  %4477 = vrot.lane.b32.xlu0 %v6999_v20, %s5680_s29  ;;  %v7116_v0 = vpop.permute.xlu1 %4163 }
 0x851   : > { %v7118_v36 = vpop.permute.xlu0 %4171 }
 0x854   : > { %4626 = vrot.lane.b32.xlu1 %v6987_v47, %s5683_s6  ;;  %4481 = vrot.lane.b32.xlu0 %v7010_v16, %s5680_s29  ;;  %v7120_v58 = vpop.permute.xlu1 %4320  ;;  %v7122_v47 = vpop.f32.mrf.mxu1 }
 0x855   : > { %v3492_v22 = vsel %vm657_vm1, %v7122_v47, -inf }
 0x858   : > { %4632 = vrot.lane.b32.xlu1 %v6999_v20, %s5683_s6  ;;  %v7126_v20 = vpop.permute.xlu0 %4467  ;;  %v7128_v21 = vpop.permute.xlu1 %4328 }
 0x85c   : > { %v7130_v48 = vpop.permute.xlu0 %4157  ;;  %v7132_v35 = vpop.permute.xlu1 %4475 }
 0x860   : > { %v7134_v8 = vpop.permute.xlu0 %4161  ;;  %v7136_v37 = vpop.permute.xlu1 %4159 }
 0x864   : > { %v7138_v45 = vpop.permute.xlu0 %4167  ;;  %v7140_v61 = vpop.permute.xlu1 %4165 }
 0x868   : > { %v7144_v52 = vpop.permute.xlu0 %4314 }
 0x86c   : > { %v7150_v43 = vpop.permute.xlu0 %4318 }
 0x870   : > { %v7154_v54 = vpop.permute.xlu0 %4324 }
 0x873   : > { %3493 = vmax.xlane.f32.xlu0 %v3492_v22  ;;  %v7146_v22 = vpop.permute.xlu1 %4169 }
 0x874   : > { %v7158_v5 = vpop.permute.xlu0 %4483 }
 0x877   : > { %v7152_v3 = vpop.permute.xlu1 %4316 }
 0x87b   : > { %v7156_v53 = vpop.permute.xlu1 %4322 }
 0x87f   : > { %v7160_v27 = vpop.permute.xlu1 %4326 }
 0x883   : > { %v7164_v2 = vpop.permute.xlu1 %4622 }
 0x887   : > { %v7168_v28 = vpop.permute.xlu1 %2692 }
 0x888   : > { %7998 = vst [vmem:[#allocation46_spill] sm:$0xff] %v7168_v28 }
 0x889   : > { %4624 = vrot.lane.b32.xlu0 %v6989_v46, %s5683_s6  ;;  %v7162_v46 = vpop.permute.xlu0 %4630 }
 0x88b   : > { %v7172_v33 = vpop.permute.xlu1 %2787 }
 0x88c   : > { %8000 = vst [vmem:[#allocation48_spill] sm:$0xff] %v7172_v33 }
 0x88d   : > { %4628 = vrot.lane.b32.xlu0 %v7001_v26, %s5683_s6  ;;  %v7166_v34 = vpop.permute.xlu0 %2690 }
 0x88e   : > { %7997 = vst [vmem:[#allocation45_spill] sm:$0xff] %v7166_v34 }
 0x891   : > { %v7170_v26 = vpop.permute.xlu0 %2785 }
 0x892   : > { %7999 = vst [vmem:[#allocation47_spill] sm:$0xff] %v7170_v26 }
 0x8b3   : > { %v3485_v44 = vpop.xlane.xlu0 %3484 }
 0x8b4   : > { %v7175_v14 = vmax.f32 %v3485_v44, %v6930_v30  ;;  %v3479_v18 = vpop.xlane.xlu1 %3478 }
 0x8b5   : > { %v7178_v23 = vmax.f32 %v3479_v18, %v6932_v31 }
 0x8b6   : > { %v3509_v42 = vsub.f32 %v7064_v39, %v7175_v14 }
 0x8b7   : > { %v3507_v50 = vsub.f32 %v7062_v32, %v7178_v23  ;;  %v3476_v34 = vpop.xlane.xlu0 %3475 }
 0x8b8   : > { %v7185_v28 = vmax.f32 %v3476_v34, %v6926_v63  ;;  %v3491_v26 = vpop.xlane.xlu1 %3490  ;;  %v3520_v44 = vmul.f32 1.442695, %v3509_v42 }
 0x8b9   : > { %v3516_v33 = vmul.f32 1.442695, %v3507_v50  ;;  %v7188_v55 = vmax.f32 %v3491_v26, %v6940_v41 }
 0x8ba   : > { %v3506_v18 = vsub.f32 %v7066_v38, %v7185_v28 }
 0x8bb   : > { %v3482_v49 = vpop.xlane.xlu0 %3481  ;;  %5520 = vpow2.f32 %v3516_v33  ;;  %v3511_v39 = vsub.f32 %v7072_v17, %v7188_v55 }
 0x8bc   : > { %v7195_v32 = vmax.f32 %v3482_v49, %v6928_v25  ;;  %v3488_v12 = vpop.xlane.xlu1 %3487  ;;  %v3514_v34 = vmul.f32 1.442695, %v3506_v18  ;;  %5522 = vpow2.f32 %v3520_v44 }
 0x8bd   : > { %v7198_v62 = vmax.f32 %v3488_v12, %v6936_v24  ;;  %v3524_v26 = vmul.f32 1.442695, %v3511_v39 }
 0x8be   : > { %v3508_v42 = vsub.f32 %v7076_v56, %v7195_v32  ;;  %5524 = vpow2.f32 %v3514_v34 }
 0x8bf   : > { %v3497_v50 = vpop.xlane.xlu0 %3496  ;;  %v3510_v33 = vsub.f32 %v7080_v11, %v7198_v62 }
 0x8c0   : > { %v3518_v38 = vmul.f32 1.442695, %v3508_v42  ;;  %v7205_v17 = vmax.f32 %v3497_v50, %v6938_v59 }
 0x8c1   : > { %v3522_v12 = vmul.f32 1.442695, %v3510_v33 }
 0x8c2   : > { %5526 = vpow2.f32 %v3518_v38  ;;  %v3513_v49 = vsub.f32 %v7084_v51, %v7205_v17 }
 0x8c3   : > { %5528 = vpow2.f32 %v3524_v26 }
 0x8c4   : > { %v3528_v44 = vmul.f32 1.442695, %v3513_v49 }
 0x8c6   : > { %5530 = vpow2.f32 %v3528_v44 }
 0x8c7   : > { %5532 = vpow2.f32 %v3522_v12 }
 0x8c8   : > { %v7209_v56 = vpop.eup %5520 }
 0x8c9   : > { %v3557_v18 = vsel %vm657_vm1, %v7209_v56, 0.0  ;;  %v7213_v39 = vpop.eup %5522 }
 0x8ca   : > { %3558 = vadd.xlane.f32.xlu0 %v3557_v18  ;;  %v3563_v34 = vsel %vm657_vm1, %v7213_v39, 0.0  ;;  %v4472_v18 = vpop.permute.xlu0 %4471 }
 0x8cb   : > { %v7215_v11 = vpop.eup %5524 }
 0x8cc   : > { %v3554_v26 = vsel %vm657_vm1, %v7215_v11, 0.0 }
 0x8ce   : > { %3564 = vadd.xlane.f32.xlu0 %v3563_v34  ;;  %v4478_v34 = vpop.permute.xlu0 %4477 }
 0x8cf   : > { %v7219_v42 = vpop.eup %5526 }
 0x8d0   : > { %v3560_v51 = vsel %vm657_vm1, %v7219_v42, 0.0  ;;  %v7223_v50 = vpop.eup %5528 }
 0x8d1   : > { %3561 = vadd.xlane.f32.xlu1 %v3560_v51  ;;  %v3569_v33 = vsel %vm657_vm1, %v7223_v50, 0.0 }
 0x8d2   : > { %3555 = vadd.xlane.f32.xlu0 %v3554_v26  ;;  %v4482_v51 = vpop.permute.xlu0 %4481 }
 0x8d3   : > { %v7227_v38 = vpop.eup %5530 }
 0x8d4   : > { %v3575_v49 = vsel %vm657_vm1, %v7227_v38, 0.0  ;;  %v7233_v12 = vpop.eup %5532 }
 0x8d5   : > { %3570 = vadd.xlane.f32.xlu1 %v3569_v33  ;;  %v3566_v44 = vsel %vm657_vm1, %v7233_v12, 0.0  ;;  %v4194_v33 = vsel %vm258_vm0, %v7116_v0, 0.0  ;;  %v4200_v0 = vsel %vm258_vm0, %v7138_v45, 0.0  ;;  %v4661_v45 = vsel %vm258_vm0, %v7162_v46, 0.0 }
 0x8d6   : > { %3576 = vadd.xlane.f32.xlu0 %v3575_v49  ;;  %v3533_v46 = vsub.f32 %v6930_v30, %v7175_v14  ;;  %v3535_v30 = vsub.f32 %v6940_v41, %v7188_v55  ;;  %v4351_v41 = vsel %vm258_vm0, %v7120_v58, 0.0 }
 0x8d9   : > { %3567 = vadd.xlane.f32.xlu1 %v3566_v44  ;;  %v4207_v44 = vsel %vm4206_vm2, %v7118_v36, 0.0  ;;  %v4342_v36 = vsel %vm258_vm0, %v7144_v52, 0.0  ;;  %v7272_v52 = vpop.permute.xlu1 %4469 }
 0x8ea   : > { %4636 = vrot.lane.b32.xlu1 %v7010_v16, %s5683_s6 }
 0x8fc   : > { %v3494_v26 = vpop.xlane.xlu0 %3493 }
 0x8fd   : > { %v7240_v13 = vmax.f32 %v3494_v26, %v6934_v15  ;;  %v7276_v26 = vpop.permute.xlu1 %4473 }
 0x8ff   : > { %v3512_v9 = vsub.f32 %v7122_v47, %v7240_v13  ;;  %v4494_v47 = vsel %vm258_vm0, %v7126_v20, 0.0  ;;  %v4348_v20 = vsel %vm258_vm0, %v7150_v43, 0.0  ;;  %v4509_v43 = vsel %vm258_vm0, %v4478_v34, 0.0 }
 0x901   : > { %v3526_v7 = vmul.f32 1.442695, %v3512_v9  ;;  %v4191_v9 = vsel %vm258_vm0, %v7134_v8, 0.0  ;;  %v4518_v8 = vsel %vm4206_vm2, %v7158_v5, 0.0  ;;  %v4515_v5 = vsel %vm258_vm0, %v4482_v51, 0.0 }
 0x902   : > { %v3530_v51 = vsub.f32 %v6926_v63, %v7185_v28  ;;  %v3534_v63 = vsub.f32 %v6936_v24, %v7198_v62  ;;  %v4506_v62 = vsel %vm258_vm0, %v7132_v35, 0.0  ;;  %v4197_v35 = vsel %vm258_vm0, %v7140_v61, 0.0 }
 0x903   : > { %5534 = vpow2.f32 %v3526_v7  ;;  %v4185_v7 = vsel %vm258_vm0, %v7130_v48, 0.0  ;;  %v4357_v48 = vsel %vm258_vm0, %v7154_v54, 0.0  ;;  %v3531_v54 = vsub.f32 %v6932_v31, %v7178_v23 }
 0x904   : > { %v4182_v31 = vsel %vm258_vm0, %v7110_v60, 0.0  ;;  %v3544_v23 = vmul.f32 1.442695, %v3533_v46  ;;  %v3538_v60 = vmul.f32 1.442695, %v3530_v51 }
 0x905   : > { %v3546_v28 = vmul.f32 1.442695, %v3534_v63 }
 0x90e   : > { %4195 = vadd.xlane.f32.xlu1 %v4194_v33  ;;  %v4625_v33 = vpop.permute.xlu0 %4624 }
 0x90f   : > { %v4652_v34 = vsel %vm258_vm0, %v4625_v33, 0.0 }
 0x910   : > { %v7246_v49 = vpop.eup %5534 }
 0x911   : > { %v3572_v16 = vsel %vm657_vm1, %v7246_v49, 0.0 }
 0x912   : > { %3573 = vadd.xlane.f32.xlu0 %v3572_v16  ;;  %4208 = vadd.xlane.f32.xlu1 %v4207_v44  ;;  %v3540_v16 = vmul.f32 1.442695, %v3531_v54  ;;  %v7283_v44 = vpop.permute.xlu1 %4479 }
 0x914   : > { %5536 = vpow2.f32 %v3540_v16 }
 0x915   : > { %5538 = vpow2.f32 %v3544_v23 }
 0x916   : > { %4495 = vadd.xlane.f32.xlu1 %v4494_v47  ;;  %v4629_v47 = vpop.permute.xlu0 %4628 }
 0x91a   : > { %4186 = vadd.xlane.f32.xlu1 %v4185_v7  ;;  %v4658_v7 = vsel %vm258_vm0, %v4629_v47, 0.0 }
 0x91e   : > { %4192 = vadd.xlane.f32.xlu1 %v4191_v9  ;;  %v3548_v9 = vmul.f32 1.442695, %v3535_v30  ;;  %v4345_v30 = vsel %vm258_vm0, %v7152_v3, 0.0 }
 0x922   : > { %4201 = vadd.xlane.f32.xlu1 %v4200_v0  ;;  %v5537_v0 = vpop.eup %5536 }
 0x923   : > { %v5539_v24 = vpop.eup %5538 }
 0x926   : > { %4343 = vadd.xlane.f32.xlu1 %v4342_v36 }
 0x928   : > { %4634 = vrot.lane.b32.xlu0 %v7012_v29, %s5683_s6  ;;  %v4500_v29 = vsel %vm258_vm0, %v4472_v18, 0.0  ;;  %v3532_v18 = vsub.f32 %v6928_v25, %v7195_v32  ;;  %v7295_v25 = vpop.permute.xlu1 %4638  ;;  %v4339_v32 = vsel %vm258_vm0, %v7114_v10, 0.0  ;;  %v4363_v10 = vsel %vm4206_vm2, %v7128_v21, 0.0 }
 0x929   : > { %v4188_v21 = vsel %vm258_vm0, %v7136_v37, 0.0  ;;  %v4203_v37 = vsel %vm258_vm0, %v7146_v22, 0.0 }
 0x92a   : > { %4349 = vadd.xlane.f32.xlu1 %v4348_v20  ;;  %v3542_v14 = vmul.f32 1.442695, %v3532_v18 }
 0x92c   : > { %5540 = vpow2.f32 %v3542_v14  ;;  %v7303_v55 = vpop.permute.xlu1 %4626 }
 0x92d   : > { %5542 = vpow2.f32 %v3538_v60 }
 0x92e   : > { %4358 = vadd.xlane.f32.xlu1 %v4357_v48  ;;  %5544 = vpow2.f32 %v3548_v9 }
 0x92f   : > { %5546 = vpow2.f32 %v3546_v28 }
 0x930   : > { %v7307_v48 = vpop.permute.xlu1 %4632 }
 0x932   : > { %4519 = vadd.xlane.f32.xlu1 %v4518_v8 }
 0x936   : > { %4662 = vadd.xlane.f32.xlu1 %v4661_v45 }
 0x939   : > { %v5541_v45 = vpop.eup %5540 }
 0x93a   : > { %4501 = vadd.xlane.f32.xlu1 %v4500_v29  ;;  %v5543_v54 = vpop.eup %5542 }
 0x93b   : > { %v5545_v46 = vpop.eup %5544 }
 0x93e   : > { %4510 = vadd.xlane.f32.xlu1 %v4509_v43 }
 0x942   : > { %4516 = vadd.xlane.f32.xlu1 %v4515_v5 }
 0x946   : > { %4653 = vadd.xlane.f32.xlu1 %v4652_v34  ;;  %v5547_v34 = vpop.eup %5546 }
 0x947   : > { %4183 = vadd.xlane.f32.xlu0 %v4182_v31 }
 0x94a   : > { %4659 = vadd.xlane.f32.xlu1 %v4658_v7 }
 0x94b   : > { %4340 = vadd.xlane.f32.xlu0 %v4339_v32  ;;  %v4354_v32 = vsel %vm258_vm0, %v7156_v53, 0.0  ;;  %v4360_v53 = vsel %vm258_vm0, %v7160_v27, 0.0 }
 0x94f   : > { %4352 = vadd.xlane.f32.xlu0 %v4351_v41 }
 0x953   : > { %4364 = vadd.xlane.f32.xlu0 %v4363_v10  ;;  %v3559_v36 = vpop.xlane.xlu0 %3558 }
 0x954   : > { %v3579_v20 = vadd.f32 %v5537_v0, %v3559_v36 }
 0x956   : > { %5548 = vrcp.f32 %v3579_v20 }
 0x957   : > { %4507 = vadd.xlane.f32.xlu0 %v4506_v62  ;;  %v3565_v58 = vpop.xlane.xlu0 %3564 }
 0x958   : > { %v3581_v8 = vadd.f32 %v5539_v24, %v3565_v58 }
 0x95a   : > { %v3562_v29 = vpop.xlane.xlu1 %3561  ;;  %5550 = vrcp.f32 %v3581_v8 }
 0x95b   : > { %v3580_v43 = vadd.f32 %v5541_v45, %v3562_v29  ;;  %4189 = vadd.xlane.f32.xlu0 %v4188_v21  ;;  %v3556_v33 = vpop.xlane.xlu0 %3555 }
 0x95c   : > { %v3578_v5 = vadd.f32 %v5543_v54, %v3556_v33 }
 0x95d   : > { %5552 = vrcp.f32 %v3580_v43 }
 0x95e   : > { %v3571_v16 = vpop.xlane.xlu1 %3570  ;;  %5554 = vrcp.f32 %v3578_v5 }
 0x95f   : > { %v3583_v18 = vadd.f32 %v5545_v46, %v3571_v16  ;;  %4198 = vadd.xlane.f32.xlu0 %v4197_v35  ;;  %v8003_v16 = vld [vmem:[#allocation31_spill] sm:$0xff]  ;;  %v8004_v35 = vld [vmem:[#allocation14_spill] sm:$0xff] }
 0x961   : > { %5556 = vrcp.f32 %v3583_v18  ;;  %v1833_v18 = vadd.f32 %v8004_v35, %v8003_v16 }
 0x962   : > { %v3568_v47 = vpop.xlane.xlu1 %3567 }
 0x963   : > { %v3582_v31 = vadd.f32 %v5547_v34, %v3568_v47  ;;  %4204 = vadd.xlane.f32.xlu0 %v4203_v37  ;;  %v5549_v23 = vpop.eup %5548  ;;  %v8006_v37 = vld [vmem:[#allocation33_spill] sm:$0xff] }
 0x964   : > { %v7317_v51 = vmul.f32 %v5549_v23, %v5537_v0  ;;  %v3595_v10 = vmul.f32 %v5549_v23, %v7209_v56  ;;  %v4655_v0 = vsel %vm258_vm0, %v7303_v55, 0.0 }
 0x965   : > { %5558 = vrcp.f32 %v3582_v31  ;;  %v8007_v31 = vld [vmem:[#allocation18_spill] sm:$0xff] }
 0x966   : > { %v4637_v36 = vpop.permute.xlu1 %4636  ;;  %v1928_v23 = vadd.f32 %v8007_v31, %v8006_v37 }
 0x967   : > { %4346 = vadd.xlane.f32.xlu0 %v4345_v30  ;;  %v5551_v61 = vpop.eup %5550 }
 0x968   : > { %v7321_v14 = vmul.f32 %v5551_v61, %v5539_v24  ;;  %v3597_v63 = vmul.f32 %v5551_v61, %v7213_v39  ;;  %v3611_v61 = vmul.f32 %v7317_v51, %v7962_v19 }
 0x96a   : > { %v5553_v7 = vpop.eup %5552 }
 0x96b   : > { %4355 = vadd.xlane.f32.xlu0 %v4354_v32  ;;  %v3596_v22 = vmul.f32 %v5553_v7, %v7219_v42  ;;  %v7326_v60 = vmul.f32 %v5553_v7, %v5541_v45  ;;  %v5555_v9 = vpop.eup %5554  ;;  %v8008_v7 = vld [vmem:[#allocation35_spill] sm:$0xff]  ;;  %v8009_v32 = vld [vmem:[#allocation16_spill] sm:$0xff] }
 0x96c   : > { %v3594_v3 = vmul.f32 %v5555_v9, %v7215_v11  ;;  %v3602_v41 = vmul.f32 %v5555_v9, %v5543_v54  ;;  %v8001_v54 = vld [vmem:[#allocation3_spill] sm:$0xff] }
 0x96d   : > { %5335 = vmatprep.mubr.msk.f32.mxu1 %vm657_vm1, %v3596_v22  ;;  %v3612_v29 = vmul.f32 %v7326_v60, %v7962_v19  ;;  %v2678_v33 = vmul.f32 %v8001_v54, %v7962_v19  ;;  %v2023_v22 = vadd.f32 %v8009_v32, %v8008_v7  ;;  %v3613_v60 = vmul.f32 %v7321_v14, %v7962_v19 }
 0x96e   : > { %v5557_v28 = vpop.eup %5556  ;;  %5336 = vmatmul.mubr.msk.f32.vlgmr.msra.gmra.mxu1 %vm657_vm1, %v3597_v63  ;;  %5328 = vmatprep.mubr.msk.f32.mxu0 %vm657_vm1, %v3594_v3  ;;  %v3610_v58 = vmul.f32 %v3602_v41, %v7962_v19  ;;  %v8010_v63 = vld [vmem:[#allocation34_spill] sm:$0xff]  ;;  %v8011_v3 = vld [vmem:[#allocation20_spill] sm:$0xff] }
 0x96f   : > { %5346 = vmatpush3.msra.mxu1 %v6997_v40  ;;  %v7337_v42 = vmul.f32 %v5557_v28, %v5545_v46  ;;  %4361 = vadd.xlane.f32.xlu0 %v4360_v53  ;;  %v4649_v40 = vsel %vm258_vm0, %v7164_v2, 0.0  ;;  %v3599_v11 = vmul.f32 %v5557_v28, %v7223_v50  ;;  %v4512_v2 = vsel %vm258_vm0, %v7283_v44, 0.0  ;;  %v8013_v53 = vld [vmem:[#allocation39_spill] sm:$0xff] }
 0x970   : > { %5329 = vmatmul.mubr.msk.f32.vlgmr.msra.gmra.mxu0 %vm657_vm1, %v3595_v10  ;;  %5347 = vmatprep.subr.mxu1 %v7112_v4  ;;  %v4673_v50 = vsel %vm4206_vm2, %v7295_v25, 0.0  ;;  %v4664_v44 = vsel %vm258_vm0, %v7307_v48, 0.0  ;;  %v2679_v48 = vmul.f32 %v6787_v1, %v7962_v19  ;;  %v2118_v41 = vadd.f32 %v8011_v3, %v8010_v63  ;;  %v8012_v10 = vld [vmem:[#allocation45_spill] sm:$0xff] }
 0x971   : > { %5339 = vmatpush3.msra.mxu0 %v6980_v6  ;;  %5348 = vmatpush3.msra.mxu1 %v7112_v4  ;;  %v4497_v6 = vsel %vm258_vm0, %v7272_v52, 0.0  ;;  %v3537_v4 = vsub.f32 %v6938_v59, %v7205_v17  ;;  %v4670_v59 = vsel %vm258_vm0, %v4637_v36, 0.0  ;;  %v3577_v17 = vpop.xlane.xlu0 %3576  ;;  %v3615_v51 = vmul.f32 %v7337_v42, %v7962_v19 }
 0x972   : > { %v5559_v39 = vpop.eup %5558  ;;  %5340 = vmatprep.subr.mxu0 %v7108_v57  ;;  %v2769_v14 = vadd.f32 %v8013_v53, %v8012_v10 }
 0x973   : > { %5341 = vmatpush3.msra.mxu0 %v7108_v57  ;;  %v3598_v27 = vmul.f32 %v5559_v39, %v7233_v12  ;;  %v3606_v56 = vmul.f32 %v5559_v39, %v5547_v34  ;;  %4650 = vadd.xlane.f32.xlu0 %v4649_v40  ;;  %v4503_v57 = vsel %vm258_vm0, %v7276_v26, 0.0  ;;  %v3536_v12 = vsub.f32 %v6934_v15, %v7240_v13  ;;  %v8005_v34 = vld [vmem:[#allocation25_spill] sm:$0xff] }
 0x974   : > { %v3552_v52 = vmul.f32 1.442695, %v3537_v4  ;;  %v2681_v47 = vmul.f32 %v8005_v34, %v7962_v19  ;;  %v8018_v4 = vld [vmem:[#allocation30_spill] sm:$0xff] }
 0x975   : > { %5342 = vmatprep.mubr.msk.f32.mxu0 %vm657_vm1, %v3598_v27  ;;  %v3550_v26 = vmul.f32 1.442695, %v3536_v12  ;;  %v3614_v1 = vmul.f32 %v3606_v56, %v7962_v19  ;;  %v8014_v27 = vld [vmem:[#allocation28_spill] sm:$0xff] }
 0x976   : > { %5343 = vmatmul.mubr.msk.f32.vlgmr.msra.gmra.mxu0 %vm657_vm1, %v3599_v11  ;;  %5560 = vpow2.f32 %v3552_v52  ;;  %v8015_v56 = vld [vmem:[#allocation4_spill] sm:$0xff]  ;;  %v8016_v11 = vld [vmem:[#allocation47_spill] sm:$0xff] }
 0x977   : > { %4498 = vadd.xlane.f32.xlu0 %v4497_v6  ;;  %5562 = vpow2.f32 %v3550_v26  ;;  %v1838_v42 = vadd.f32 %v8015_v56, %v8014_v27  ;;  %v8017_v6 = vld [vmem:[#allocation40_spill] sm:$0xff] }
 0x978   : > { %v8020_v52 = vld [vmem:[#allocation32_spill] sm:$0xff] }
 0x97b   : > { %4504 = vadd.xlane.f32.xlu0 %v4503_v57  ;;  %v2864_v57 = vadd.f32 %v8017_v6, %v8016_v11 }
 0x97f   : > { %4513 = vadd.xlane.f32.xlu0 %v4512_v2 }
 0x983   : > { %4674 = vadd.xlane.f32.xlu0 %v4673_v50  ;;  %v5561_v25 = vpop.eup %5560  ;;  %v8019_v50 = vld [vmem:[#allocation17_spill] sm:$0xff] }
 0x984   : > { %v3585_v20 = vadd.f32 %v5561_v25, %v3577_v17  ;;  %v5563_v15 = vpop.eup %5562  ;;  %v8023_v17 = vld [vmem:[#allocation19_spill] sm:$0xff] }
 0x986   : > { %5564 = vrcp.f32 %v3585_v20 }
 0x987   : > { %4656 = vadd.xlane.f32.xlu0 %v4655_v0  ;;  %v8021_v0 = vld [vmem:[#allocation15_spill] sm:$0xff] }
 0x988   : > { %v2028_v26 = vadd.f32 %v8021_v0, %v8020_v52 }
 0x98b   : > { %4665 = vadd.xlane.f32.xlu0 %v4664_v44 }
 0x98f   : > { %4671 = vadd.xlane.f32.xlu0 %v4670_v59  ;;  %v8022_v59 = vld [vmem:[#allocation36_spill] sm:$0xff] }
 0x993   : > { %v5565_v8 = vpop.eup %5564 }
 0x994   : > { %v3601_v43 = vmul.f32 %v5565_v8, %v7227_v38  ;;  %v8002_v38 = vld [vmem:[#allocation26_spill] sm:$0xff]  ;;  %v3609_v28 = vmul.f32 %v5565_v8, %v5561_v25  ;;  %v2123_v25 = vadd.f32 %v8023_v17, %v8022_v59 }
 0x995   : > { %v2680_v46 = vmul.f32 %v8002_v38, %v7962_v19 }
 0x996   : > { %v3617_v40 = vmul.f32 %v3609_v28, %v7962_v19 }
 0x997   : > { %v7399_v30 = vpop.xlane.xlu1 %4195 }
 0x99b   : > { %v3574_v13 = vpop.xlane.xlu0 %3573  ;;  %v7409_v9 = vpop.xlane.xlu1 %4208 }
 0x99c   : > { %v3584_v62 = vadd.f32 %v5563_v15, %v3574_v13  ;;  %v8024_v13 = vld [vmem:[#allocation46_spill] sm:$0xff] }
 0x99e   : > { %5566 = vrcp.f32 %v3584_v62  ;;  %v8025_v62 = vld [vmem:[#allocation37_spill] sm:$0xff] }
 0x99f   : > { %v4635_v55 = vpop.permute.xlu0 %4634  ;;  %v7421_v39 = vpop.xlane.xlu1 %4495 }
 0x9a0   : > { %v4667_v24 = vsel %vm258_vm0, %v4635_v55, 0.0  ;;  %v2774_v55 = vadd.f32 %v8025_v62, %v8024_v13 }
 0x9a1   : > { %4668 = vadd.xlane.f32.xlu1 %v4667_v24 }
 0x9a3   : > { %v7430_v2 = vpop.xlane.xlu1 %4186 }
 0x9a5   : > { %2882 = vrot.lane.b32.xlu0 %v2679_v48, %s5682_s5  ;;  %v8026_v48 = vld [vmem:[#allocation48_spill] sm:$0xff] }
 0x9a7   : > { %v7439_v44 = vpop.xlane.xlu1 %4192 }
 0x9a9   : > { %3626 = vrot.lane.b32.xlu0 %v3610_v58, %s5686_s9  ;;  %v8027_v58 = vld [vmem:[#allocation38_spill] sm:$0xff] }
 0x9aa   : > { %v2869_v8 = vadd.f32 %v8027_v58, %v8026_v48 }
 0x9ab   : > { %v5567_v45 = vpop.eup %5566 }
 0x9ac   : > { %v3600_v21 = vmul.f32 %v5567_v45, %v7246_v49  ;;  %v3608_v5 = vmul.f32 %v5567_v45, %v5563_v15  ;;  %v7448_v15 = vpop.xlane.xlu1 %4201 }
 0x9ad   : > { %3721 = vrot.lane.b32.xlu0 %v3612_v29, %s5686_s9 }
 0x9ae   : > { %5349 = vmatprep.mubr.msk.f32.mxu1 %vm657_vm1, %v3600_v21  ;;  %v3616_v49 = vmul.f32 %v3608_v5, %v7962_v19  ;;  %v1933_v19 = vadd.f32 %v8019_v50, %v8018_v4  ;;  %v4215_v5 = vsel %vm4214_vm3, %v7409_v9, -inf }
 0x9af   : > { %5350 = vmatmul.mubr.msk.f32.vlgmr.msra.gmra.mxu1 %vm657_vm1, %v3601_v43 }
 0x9b0   : > { %v7458_v45 = vpop.xlane.xlu1 %4343 }
 0x9b1   : > { %3816 = vrot.lane.b32.xlu0 %v3614_v1, %s5686_s9 }
 0x9b2   : > { %2880 = vrot.lane.b32.xlu1 %v2678_v33, %s5682_s5 }
 0x9b4   : > { %v7463_v43 = vpop.xlane.xlu1 %4349 }
 0x9b5   : > { %3911 = vrot.lane.b32.xlu0 %v3616_v49, %s5686_s9 }
 0x9b6   : > { %2975 = vrot.lane.b32.xlu1 %v2680_v46, %s5682_s5 }
 0x9b8   : > { %v7469_v49 = vpop.xlane.xlu1 %4358 }
 0x9b9   : > { %4006 = vrot.lane.b32.xlu0 %v1833_v18, %s5687_s10 }
 0x9ba   : > { %2977 = vrot.lane.b32.xlu1 %v2681_v47, %s5682_s5 }
 0x9bc   : > { %v7478_v31 = vpop.xlane.xlu1 %4519 }
 0x9bd   : > { %4010 = vrot.lane.b32.xlu0 %v1928_v23, %s5687_s10 }
 0x9be   : > { %3628 = vrot.lane.b32.xlu1 %v3611_v61, %s5686_s9 }
 0x9c1   : > { %4014 = vrot.lane.b32.xlu0 %v2023_v22, %s5687_s10  ;;  %v7482_v22 = vpop.xlane.xlu1 %4662 }
 0x9c2   : > { %3723 = vrot.lane.b32.xlu1 %v3613_v60, %s5686_s9 }
 0x9c5   : > { %4018 = vrot.lane.b32.xlu0 %v2118_v41, %s5687_s10 }
 0x9c6   : > { %3818 = vrot.lane.b32.xlu1 %v3615_v51, %s5686_s9 }
 0x9c9   : > { %4038 = vrot.lane.b32.xlu0 %v2769_v14, %s5688_s11 }
 0x9ca   : > { %3913 = vrot.lane.b32.xlu1 %v3617_v40, %s5686_s9 }
 0x9cd   : > { %4042 = vrot.lane.b32.xlu0 %v2864_v57, %s5688_s11 }
 0x9ce   : > { %4008 = vrot.lane.b32.xlu1 %v1838_v42, %s5687_s10  ;;  %v7498_v42 = vpop.xlane.xlu1 %4501 }
 0x9d0   : > { %v4184_v12 = vpop.xlane.xlu0 %4183 }
 0x9d1   : > { %v4210_v54 = vmax.f32 %v4184_v12, %v7399_v30 }
 0x9d2   : > { %4012 = vrot.lane.b32.xlu1 %v1933_v19, %s5687_s10 }
 0x9d3   : > { %v4216_v46 = vmax.f32 %v4210_v54, %v4215_v5 }
 0x9d4   : > { %v7441_v36 = vpop.xlane.xlu0 %4340 }
 0x9d6   : > { %4016 = vrot.lane.b32.xlu1 %v2028_v26, %s5687_s10 }
 0x9d8   : > { %v7446_v20 = vpop.xlane.xlu0 %4352 }
 0x9d9   : > { %v4366_v41 = vmax.f32 %v7441_v36, %v7446_v20 }
 0x9da   : > { %4020 = vrot.lane.b32.xlu1 %v2123_v25, %s5687_s10  ;;  %v7505_v25 = vpop.xlane.xlu1 %4510 }
 0x9dc   : > { %v7453_v24 = vpop.xlane.xlu0 %4364 }
 0x9dd   : > { %v4370_v60 = vsel %vm4214_vm3, %v7453_v24, -inf }
 0x9de   : > { %4040 = vrot.lane.b32.xlu1 %v2774_v55, %s5688_s11  ;;  %v4371_v14 = vmax.f32 %v4366_v41, %v4370_v60 }
 0x9e0   : > { %v7460_v29 = vpop.xlane.xlu0 %4507 }
 0x9e2   : > { %4044 = vrot.lane.b32.xlu1 %v2869_v8, %s5688_s11 }
 0x9e4   : > { %v4190_v21 = vpop.xlane.xlu0 %4189 }
 0x9e5   : > { %v4212_v16 = vmax.f32 %v4190_v21, %v7448_v15 }
 0x9e8   : > { %v4199_v1 = vpop.xlane.xlu0 %4198 }
 0x9e9   : > { %v4211_v33 = vmax.f32 %v7430_v2, %v4199_v1 }
 0x9eb   : > { %v4217_v18 = vmax.f32 %v4216_v46, %v4211_v33  ;;  %v7516_v33 = vpop.xlane.xlu1 %4516 }
 0x9ec   : > { %v7471_v38 = vpop.xlane.xlu0 %4204 }
 0x9ed   : > { %v4213_v35 = vmax.f32 %v7439_v44, %v7471_v38 }
 0x9ef   : > { %v4218_v34 = vmax.f32 %v4212_v16, %v4213_v35  ;;  %v4525_v35 = vsel %vm4214_vm3, %v7478_v31, -inf }
 0x9f0   : > { %v7476_v47 = vpop.xlane.xlu0 %4346 }
 0x9f1   : > { %v4219_v37 = vmax.f32 %v4217_v18, %v4218_v34  ;;  %v4368_v51 = vmax.f32 %v7476_v47, %v7469_v49 }
 0x9f3   : > { %v4220_v23 = vrot.slane %v4219_v37, 4 }
 0x9f4   : > { %v7480_v61 = vpop.xlane.xlu0 %4355 }
 0x9f5   : > { %v4221_v7 = vmax.f32 %v4219_v37, %v4220_v23  ;;  %v4367_v28 = vmax.f32 %v7458_v45, %v7480_v61 }
 0x9f7   : > { %v4222_v32 = vrot.slane %v4221_v7, 2  ;;  %v4372_v11 = vmax.f32 %v4371_v14, %v4367_v28 }
 0x9f8   : > { %v7486_v3 = vpop.xlane.xlu0 %4361 }
 0x9f9   : > { %v4223_v63 = vmax.f32 %v4221_v7, %v4222_v32  ;;  %v4369_v10 = vmax.f32 %v7463_v43, %v7486_v3 }
 0x9fb   : > { %v4224_v53 = vrot.slane %v4223_v63, 1  ;;  %v4373_v40 = vmax.f32 %v4368_v51, %v4369_v10 }
 0x9fc   : > { %v7496_v56 = vpop.xlane.xlu0 %4650 }
 0x9fd   : > { %v4225_v27 = vmax.f32 %v4223_v63, %v4224_v53  ;;  %v4374_v19 = vmax.f32 %v4372_v11, %v4373_v40 }
 0x9ff   : > { %v4226_v6 = vsub.f32 %v4184_v12, %v4225_v27  ;;  %v4227_v57 = vsub.f32 %v7430_v2, %v4225_v27  ;;  %v4228_v4 = vsub.f32 %v4190_v21, %v4225_v27  ;;  %v4229_v50 = vsub.f32 %v7439_v44, %v4225_v27 }
 0xa00   : > { %v7502_v26 = vpop.xlane.xlu0 %4498  ;;  %v4230_v59 = vsub.f32 %v7399_v30, %v4225_v27  ;;  %v4231_v13 = vsub.f32 %v4199_v1, %v4225_v27  ;;  %v4375_v12 = vrot.slane %v4374_v19, 4  ;;  %v4232_v2 = vsub.f32 %v7448_v15, %v4225_v27 }
 0xa01   : > { %v4235_v52 = vmul.f32 1.442695, %v4226_v6  ;;  %v4237_v0 = vmul.f32 1.442695, %v4227_v57  ;;  %v4239_v17 = vmul.f32 1.442695, %v4228_v4  ;;  %v4234_v58 = vsub.f32 %v7409_v9, %v4225_v27 }
 0xa02   : > { %v4241_v62 = vmul.f32 1.442695, %v4229_v50  ;;  %v4243_v44 = vmul.f32 1.442695, %v4230_v59  ;;  %v4376_v48 = vmax.f32 %v4374_v19, %v4375_v12  ;;  %v4233_v8 = vsub.f32 %v7471_v38, %v4225_v27 }
 0xa03   : > { %5568 = vpow2.f32 %v4235_v52  ;;  %v4245_v30 = vmul.f32 1.442695, %v4231_v13  ;;  %v4521_v1 = vmax.f32 %v7421_v39, %v7460_v29  ;;  %v4247_v5 = vmul.f32 1.442695, %v4232_v2 }
 0xa04   : > { %5570 = vpow2.f32 %v4237_v0  ;;  %v7507_v55 = vpop.xlane.xlu0 %4504  ;;  %v4377_v21 = vrot.slane %v4376_v48, 2  ;;  %v4251_v16 = vmul.f32 1.442695, %v4234_v58  ;;  %v4522_v9 = vmax.f32 %v7502_v26, %v7505_v25 }
 0xa05   : > { %5572 = vpow2.f32 %v4239_v17  ;;  %v4524_v38 = vmax.f32 %v7507_v55, %v7516_v33  ;;  %v4249_v18 = vmul.f32 1.442695, %v4233_v8  ;;  %v4526_v37 = vmax.f32 %v4521_v1, %v4525_v35 }
 0xa06   : > { %5574 = vpow2.f32 %v4241_v62  ;;  %v4378_v15 = vmax.f32 %v4376_v48, %v4377_v21 }
 0xa07   : > { %5576 = vpow2.f32 %v4243_v44  ;;  %v4527_v60 = vmax.f32 %v4526_v37, %v4522_v9  ;;  %v7572_v37 = vpop.xlane.xlu1 %4653 }
 0xa08   : > { %v7514_v54 = vpop.xlane.xlu0 %4513  ;;  %5578 = vpow2.f32 %v4245_v30  ;;  %v4379_v34 = vrot.slane %v4378_v15, 1 }
 0xa09   : > { %v4523_v46 = vmax.f32 %v7498_v42, %v7514_v54  ;;  %5580 = vpow2.f32 %v4247_v5 }
 0xa0a   : > { %v4380_v32 = vmax.f32 %v4378_v15, %v4379_v34  ;;  %5582 = vpow2.f32 %v4251_v16 }
 0xa0b   : > { %v4528_v23 = vmax.f32 %v4523_v46, %v4524_v38  ;;  %5584 = vpow2.f32 %v4249_v18  ;;  %v8028_v38 = vld [vmem:[#allocation41_spill] sm:$0xff] }
 0xa0c   : > { %v7526_v7 = vpop.xlane.xlu0 %4674  ;;  %v4381_v41 = vsub.f32 %v7441_v36, %v4380_v32  ;;  %v4382_v51 = vsub.f32 %v7458_v45, %v4380_v32  ;;  %v4383_v28 = vsub.f32 %v7476_v47, %v4380_v32  ;;  %v4384_v53 = vsub.f32 %v7463_v43, %v4380_v32 }
 0xa0d   : > { %v4529_v14 = vmax.f32 %v4527_v60, %v4528_v23  ;;  %v4385_v36 = vsub.f32 %v7446_v20, %v4380_v32  ;;  %v4386_v43 = vsub.f32 %v7480_v61, %v4380_v32  ;;  %v4387_v17 = vsub.f32 %v7469_v49, %v4380_v32 }
 0xa0e   : > { %v4390_v11 = vmul.f32 1.442695, %v4381_v41  ;;  %v4392_v6 = vmul.f32 1.442695, %v4382_v51  ;;  %v4394_v4 = vmul.f32 1.442695, %v4383_v28  ;;  %v4389_v12 = vsub.f32 %v7453_v24, %v4380_v32 }
 0xa0f   : > { %v4396_v50 = vmul.f32 1.442695, %v4384_v53  ;;  %v4530_v19 = vrot.slane %v4529_v14, 4  ;;  %v4398_v20 = vmul.f32 1.442695, %v4385_v36  ;;  %v4388_v61 = vsub.f32 %v7486_v3, %v4380_v32 }
 0xa10   : > { %v7528_v63 = vpop.eup %5568  ;;  %v7536_v40 = vpop.xlane.xlu0 %4656  ;;  %5586 = vpow2.f32 %v4390_v11  ;;  %v4400_v44 = vmul.f32 1.442695, %v4386_v43  ;;  %v4402_v49 = vmul.f32 1.442695, %v4387_v17  ;;  %v4406_v5 = vmul.f32 1.442695, %v4389_v12 }
 0xa11   : > { %v7533_v10 = vpop.eup %5570  ;;  %5588 = vpow2.f32 %v4392_v6  ;;  %v4531_v13 = vmax.f32 %v4529_v14, %v4530_v19  ;;  %v4404_v3 = vmul.f32 1.442695, %v4388_v61  ;;  %v7591_v43 = vpop.xlane.xlu1 %4659  ;;  %v4676_v17 = vmax.f32 %v7496_v56, %v7482_v22 }
 0xa12   : > { %v4253_v27 = vadd.f32 %v7533_v10, %v7528_v63  ;;  %v7540_v57 = vpop.eup %5572  ;;  %5590 = vpow2.f32 %v4394_v4 }
 0xa13   : > { %v7544_v47 = vpop.eup %5574  ;;  %5592 = vpow2.f32 %v4396_v50  ;;  %v4532_v48 = vrot.slane %v4531_v13, 2 }
 0xa14   : > { %v4254_v45 = vadd.f32 %v7540_v57, %v4253_v27  ;;  %v7547_v52 = vpop.xlane.xlu0 %4665  ;;  %v7550_v59 = vpop.eup %5576  ;;  %5594 = vpow2.f32 %v4398_v20 }
 0xa15   : > { %v7555_v2 = vpop.eup %5578  ;;  %v4533_v21 = vmax.f32 %v4531_v13, %v4532_v48  ;;  %5596 = vpow2.f32 %v4400_v44  ;;  %v4677_v44 = vmax.f32 %v7572_v37, %v7547_v52 }
 0xa16   : > { %v4255_v0 = vadd.f32 %v7544_v47, %v4254_v45  ;;  %v7561_v30 = vpop.eup %5580  ;;  %5598 = vpow2.f32 %v4402_v49 }
 0xa17   : > { %v7563_v1 = vpop.eup %5582  ;;  %v4534_v46 = vrot.slane %v4533_v21, 1  ;;  %5600 = vpow2.f32 %v4406_v5 }
 0xa18   : > { %v4256_v62 = vadd.f32 %v7550_v59, %v4255_v0  ;;  %v7558_v58 = vpop.xlane.xlu0 %4671  ;;  %v7566_v15 = vpop.eup %5584  ;;  %v4260_v18 = vsel %vm4214_vm3, %v7563_v1, 0.0  ;;  %5602 = vpow2.f32 %v4404_v3 }
 0xa19   : > { %v4535_v34 = vmax.f32 %v4533_v21, %v4534_v46  ;;  %v4679_v3 = vmax.f32 %v7591_v43, %v7558_v58 }
 0xa1a   : > { %v4257_v8 = vadd.f32 %v7555_v2, %v4256_v62 }
 0xa1b   : > { %v4536_v60 = vsub.f32 %v7421_v39, %v4535_v34  ;;  %v4537_v41 = vsub.f32 %v7502_v26, %v4535_v34  ;;  %v4538_v51 = vsub.f32 %v7498_v42, %v4535_v34  ;;  %v4539_v14 = vsub.f32 %v7507_v55, %v4535_v34 }
 0xa1c   : > { %v4258_v24 = vadd.f32 %v7561_v30, %v4257_v8  ;;  %v2883_v16 = vpop.permute.xlu0 %2882  ;;  %v4540_v4 = vsub.f32 %v7460_v29, %v4535_v34  ;;  %v4541_v55 = vsub.f32 %v7505_v25, %v4535_v34  ;;  %v4680_v29 = vsel %vm4214_vm3, %v7526_v7, -inf }
 0xa1d   : > { %v2964_v35 = vadd.f32 %v8028_v38, %v2883_v16  ;;  %v7575_v32 = vpop.eup %5586  ;;  %v4545_v11 = vmul.f32 1.442695, %v4536_v60  ;;  %v4547_v45 = vmul.f32 1.442695, %v4537_v41  ;;  %v4549_v39 = vmul.f32 1.442695, %v4538_v51 }
 0xa1e   : > { %v4259_v9 = vadd.f32 %v7566_v15, %v4258_v24  ;;  %v7580_v28 = vpop.eup %5588  ;;  %v4551_v19 = vmul.f32 1.442695, %v4539_v14  ;;  %v4542_v62 = vsub.f32 %v7514_v54, %v4535_v34  ;;  %v4553_v12 = vmul.f32 1.442695, %v4540_v4  ;;  %v8029_v14 = vld [vmem:[#allocation43_spill] sm:$0xff] }
 0xa1f   : > { %4048 = vrot.lane.b32.xlu1 %v2964_v35, %s5688_s11  ;;  %v4408_v27 = vadd.f32 %v7580_v28, %v7575_v32  ;;  %v7585_v6 = vpop.eup %5590  ;;  %5604 = vpow2.f32 %v4545_v11  ;;  %v4544_v25 = vsub.f32 %v7478_v31, %v4535_v34  ;;  %v4543_v8 = vsub.f32 %v7516_v33, %v4535_v34 }
 0xa20   : > { %v4261_v23 = vadd.f32 %v4260_v18, %v4259_v9  ;;  %v7589_v42 = vpop.eup %5592  ;;  %5606 = vpow2.f32 %v4547_v45  ;;  %v4555_v49 = vmul.f32 1.442695, %v4541_v55  ;;  %v4681_v21 = vmax.f32 %v4676_v17, %v4680_v29 }
 0xa21   : > { %v4409_v26 = vadd.f32 %v7585_v6, %v4408_v27  ;;  %v7599_v20 = vpop.eup %5594  ;;  %5608 = vpow2.f32 %v4549_v39  ;;  %v4557_v16 = vmul.f32 1.442695, %v4542_v62  ;;  %v4561_v38 = vmul.f32 1.442695, %v4544_v25 }
 0xa22   : > { %v4262_v53 = vrot.slane %v4261_v23, 4  ;;  %v7606_v48 = vpop.eup %5596  ;;  %5610 = vpow2.f32 %v4551_v19  ;;  %v4682_v35 = vmax.f32 %v4681_v21, %v4677_v44  ;;  %v8030_v19 = vld [vmem:[#allocation44_spill] sm:$0xff] }
 0xa23   : > { %v4410_v0 = vadd.f32 %v7589_v42, %v4409_v26  ;;  %v7616_v46 = vpop.eup %5598  ;;  %5612 = vpow2.f32 %v4553_v12 }
 0xa24   : > { %v4263_v36 = vadd.f32 %v4262_v53, %v4261_v23  ;;  %v7618_v9 = vpop.eup %5600  ;;  %5614 = vpow2.f32 %v4555_v49  ;;  %v4559_v23 = vmul.f32 1.442695, %v4543_v8  ;;  %v8031_v49 = vld [vmem:[#allocation42_spill] sm:$0xff] }
 0xa25   : > { %v4411_v61 = vadd.f32 %v7599_v20, %v4410_v0  ;;  %v7621_v34 = vpop.eup %5602  ;;  %v4415_v11 = vsel %vm4214_vm3, %v7618_v9, 0.0  ;;  %5616 = vpow2.f32 %v4557_v16 }
 0xa26   : > { %v4264_v50 = vrot.slane %v4263_v36, 2  ;;  %5618 = vpow2.f32 %v4561_v38 }
 0xa27   : > { %v4412_v54 = vadd.f32 %v7606_v48, %v4411_v61  ;;  %5620 = vpow2.f32 %v4559_v23 }
 0xa28   : > { %v4265_v13 = vadd.f32 %v4264_v50, %v4263_v36 }
 0xa29   : > { %v4413_v33 = vadd.f32 %v7616_v46, %v4412_v54 }
 0xa2a   : > { %v7609_v24 = vpop.xlane.xlu1 %4668  ;;  %v4266_v5 = vrot.slane %v4265_v13, 1 }
 0xa2b   : > { %v4678_v31 = vmax.f32 %v7536_v40, %v7609_v24  ;;  %v4414_v51 = vadd.f32 %v7621_v34, %v4413_v33 }
 0xa2c   : > { %v4267_v41 = vadd.f32 %v4266_v5, %v4265_v13  ;;  %v7628_v45 = vpop.eup %5604 }
 0xa2d   : > { %v4683_v18 = vmax.f32 %v4678_v31, %v4679_v3  ;;  %v4416_v36 = vadd.f32 %v4415_v11, %v4414_v51  ;;  %v7630_v26 = vpop.eup %5606 }
 0xa2e   : > { %v2881_v60 = vpop.permute.xlu1 %2880  ;;  %5622 = vrcp.f32 %v4267_v41  ;;  %v4563_v17 = vadd.f32 %v7630_v26, %v7628_v45  ;;  %v7635_v29 = vpop.eup %5608 }
 0xa2f   : > { %v4684_v53 = vmax.f32 %v4682_v35, %v4683_v18  ;;  %v2959_v27 = vadd.f32 %v8029_v14, %v2881_v60  ;;  %v4417_v50 = vrot.slane %v4416_v36, 4  ;;  %v7639_v25 = vpop.eup %5610 }
 0xa30   : > { %v4564_v12 = vadd.f32 %v7635_v29, %v4563_v17  ;;  %v7643_v54 = vpop.eup %5612 }
 0xa31   : > { %v4685_v4 = vrot.slane %v4684_v53, 4  ;;  %4046 = vrot.lane.b32.xlu0 %v2959_v27, %s5688_s11  ;;  %v4418_v13 = vadd.f32 %v4417_v50, %v4416_v36  ;;  %v7647_v33 = vpop.eup %5614 }
 0xa32   : > { %v2976_v39 = vpop.permute.xlu1 %2975  ;;  %v4565_v5 = vadd.f32 %v7639_v25, %v4564_v12  ;;  %v7650_v23 = vpop.eup %5616 }
 0xa33   : > { %v4686_v55 = vmax.f32 %v4684_v53, %v4685_v4  ;;  %v3054_v0 = vadd.f32 %v8030_v19, %v2976_v39  ;;  %v4419_v44 = vrot.slane %v4418_v13, 2  ;;  %v7655_v14 = vpop.eup %5618 }
 0xa34   : > { %v4566_v16 = vadd.f32 %v7643_v54, %v4565_v5  ;;  %v7658_v11 = vpop.eup %5620  ;;  %v7678_v5 = vld [vmem:[%s5775_s24 + $0x8] sm:$0xff] }
 0xa35   : > { %v4687_v62 = vrot.slane %v4686_v55, 2  ;;  %4050 = vrot.lane.b32.xlu0 %v3054_v0, %s5688_s11  ;;  %v4420_v3 = vadd.f32 %v4419_v44, %v4418_v13 }
 0xa36   : > { %v2978_v61 = vpop.permute.xlu1 %2977  ;;  %v4567_v18 = vadd.f32 %v7647_v33, %v4566_v16 }
 0xa37   : > { %v4688_v8 = vmax.f32 %v4686_v55, %v4687_v62  ;;  %v3059_v21 = vadd.f32 %v8031_v49, %v2978_v61  ;;  %v4421_v38 = vrot.slane %v4420_v3, 1 }
 0xa38   : > { %v4568_v27 = vadd.f32 %v7650_v23, %v4567_v18 }
 0xa39   : > { %v4689_v31 = vrot.slane %v4688_v8, 1  ;;  %4052 = vrot.lane.b32.xlu1 %v3059_v21, %s5688_s11  ;;  %v4422_v60 = vadd.f32 %v4421_v38, %v4420_v3 }
 0xa3a   : > { %v4569_v39 = vadd.f32 %v7658_v11, %v4568_v27 }
 0xa3b   : > { %v4690_v35 = vmax.f32 %v4688_v8, %v4689_v31  ;;  %5624 = vrcp.f32 %v4422_v60  ;;  %v5623_v4 = vpop.eup %5622 }
 0xa3c   : > { %v4270_v13 = vmul.f32 %v5623_v4, %v7533_v10  ;;  %v4271_v44 = vmul.f32 %v5623_v4, %v7540_v57  ;;  %v4272_v21 = vmul.f32 %v5623_v4, %v7544_v47  ;;  %v4273_v57 = vmul.f32 %v5623_v4, %v7550_v59  ;;  %v7684_v47 = vld [vmem:[%s5775_s24 + $0x10] sm:$0xff] }
 0xa3d   : > { %v4691_v41 = vsub.f32 %v7496_v56, %v4690_v35  ;;  %v4692_v51 = vsub.f32 %v7572_v37, %v4690_v35  ;;  %v4693_v53 = vsub.f32 %v7536_v40, %v4690_v35  ;;  %v4694_v36 = vsub.f32 %v7591_v43, %v4690_v35 }
 0xa3e   : > { %v4570_v56 = vsel %vm4214_vm3, %v7655_v14, 0.0  ;;  %v4695_v37 = vsub.f32 %v7482_v22, %v4690_v35  ;;  %v4696_v0 = vsub.f32 %v7547_v52, %v4690_v35  ;;  %v4269_v43 = vmul.f32 %v5623_v4, %v7528_v63  ;;  %v7674_v63 = vld [vmem:[%s5775_s24] sm:$0xff] }
 0xa3f   : > { %v4700_v50 = vmul.f32 1.442695, %v4691_v41  ;;  %v4702_v55 = vmul.f32 1.442695, %v4692_v51  ;;  %v4704_v40 = vmul.f32 1.442695, %v4693_v53  ;;  %v4571_v19 = vadd.f32 %v4570_v56, %v4569_v39 }
 0xa40   : > { %v4706_v17 = vmul.f32 1.442695, %v4694_v36  ;;  %v4697_v12 = vsub.f32 %v7609_v24, %v4690_v35  ;;  %v4698_v61 = vsub.f32 %v7558_v58, %v4690_v35  ;;  %v4708_v22 = vmul.f32 1.442695, %v4695_v37  ;;  %v7690_v41 = vld [vmem:[%s5775_s24 + $0x18] sm:$0xff]  ;;  %v7696_v36 = vld [vmem:[%s5775_s24 + $0x20] sm:$0xff] }
 0xa41   : > { %5626 = vpow2.f32 %v4700_v50  ;;  %v4572_v62 = vrot.slane %v4571_v19, 4  ;;  %v4699_v52 = vsub.f32 %v7526_v7, %v4690_v35  ;;  %v4710_v49 = vmul.f32 1.442695, %v4696_v0  ;;  %v7701_v50 = vld [vmem:[%s5775_s24 + $0x28] sm:$0xff] }
 0xa42   : > { %5628 = vpow2.f32 %v4702_v55  ;;  %v4278_v10 = vmul.f32 %v7674_v63, %v4269_v43  ;;  %v4279_v58 = vmul.f32 %v7678_v5, %v4270_v13  ;;  %v4712_v3 = vmul.f32 1.442695, %v4697_v12 }
 0xa43   : > { %5630 = vpow2.f32 %v4704_v40  ;;  %v4573_v8 = vadd.f32 %v4572_v62, %v4571_v19  ;;  %v4714_v7 = vmul.f32 1.442695, %v4698_v61  ;;  %v4274_v31 = vmul.f32 %v5623_v4, %v7555_v2 }
 0xa44   : > { %5632 = vpow2.f32 %v4706_v17  ;;  %v4280_v16 = vmul.f32 %v7684_v47, %v4271_v44  ;;  %v4276_v38 = vmul.f32 %v5623_v4, %v7566_v15  ;;  %v4716_v18 = vmul.f32 1.442695, %v4699_v52  ;;  %v7709_v17 = vld [vmem:[%s5775_s24 + $0x30] sm:$0xff] }
 0xa45   : > { %v4574_v24 = vrot.slane %v4573_v8, 2  ;;  %5634 = vpow2.f32 %v4708_v22  ;;  %v4275_v60 = vmul.f32 %v5623_v4, %v7561_v30  ;;  %v4281_v59 = vmul.f32 %v7690_v41, %v4272_v21 }
 0xa46   : > { %5636 = vpow2.f32 %v4710_v49  ;;  %v4288_v51 = vsel %vm4287_vm4, %v4278_v10, 0.0  ;;  %v4289_v2 = vsel %vm4287_vm4, %v4279_v58, 0.0  ;;  %v4282_v15 = vmul.f32 %v7696_v36, %v4273_v57 }
 0xa47   : > { %v4575_v35 = vadd.f32 %v4574_v24, %v4573_v8  ;;  %5638 = vpow2.f32 %v4712_v3  ;;  %v4290_v39 = vadd.f32 %v4289_v2, %v4288_v51  ;;  %v4277_v30 = vmul.f32 %v5623_v4, %v7563_v1 }
 0xa48   : > { %v5625_v53 = vpop.eup %5624  ;;  %5640 = vpow2.f32 %v4714_v7  ;;  %v4283_v55 = vmul.f32 %v7701_v50, %v4274_v31  ;;  %v4291_v56 = vsel %vm4287_vm4, %v4280_v16, 0.0  ;;  %v4284_v43 = vmul.f32 %v7709_v17, %v4275_v60 }
 0xa49   : > { %v4576_v27 = vrot.slane %v4575_v35, 1  ;;  %5642 = vpow2.f32 %v4716_v18  ;;  %v4292_v40 = vadd.f32 %v4291_v56, %v4290_v39  ;;  %v4424_v19 = vmul.f32 %v5625_v53, %v7575_v32 }
 0xa4a   : > { %v4293_v1 = vsel %vm4287_vm4, %v4281_v59, 0.0  ;;  %v4425_v4 = vmul.f32 %v5625_v53, %v7580_v28  ;;  %v4426_v13 = vmul.f32 %v5625_v53, %v7585_v6  ;;  %v4295_v61 = vsel %vm4287_vm4, %v4282_v15, 0.0  ;;  %v7727_v6 = vld [vmem:[%s5775_s24 + $0x38] sm:$0xff] }
 0xa4b   : > { %v4577_v37 = vadd.f32 %v4576_v27, %v4575_v35  ;;  %v4294_v12 = vadd.f32 %v4293_v1, %v4292_v40  ;;  %v4428_v32 = vmul.f32 %v5625_v53, %v7599_v20  ;;  %v4427_v44 = vmul.f32 %v5625_v53, %v7589_v42 }
 0xa4c   : > { %v4432_v8 = vmul.f32 %v5625_v53, %v7618_v9  ;;  %v4433_v28 = vmul.f32 %v7674_v63, %v4424_v19  ;;  %v4285_v49 = vmul.f32 %v7727_v6, %v4276_v38  ;;  %v4434_v10 = vmul.f32 %v7678_v5, %v4425_v4  ;;  %v7737_v9 = vld [vmem:[%s5775_s24 + $0x40] sm:$0x1] }
 0xa4d   : > { %5644 = vrcp.f32 %v4577_v37  ;;  %v4296_v21 = vadd.f32 %v4295_v61, %v4294_v12  ;;  %v4297_v58 = vsel %vm4287_vm4, %v4283_v55, 0.0  ;;  %v4435_v42 = vmul.f32 %v7684_v47, %v4426_v13 }
 0xa4e   : > { %v7706_v0 = vpop.eup %5626  ;;  %v4286_v3 = vmul.f32 %v7737_v9, %v4277_v30  ;;  %v4299_v7 = vsel %vm4287_vm4, %v4284_v43, 0.0  ;;  %v4429_v31 = vmul.f32 %v5625_v53, %v7606_v48  ;;  %v4436_v38 = vmul.f32 %v7690_v41, %v4427_v44 }
 0xa4f   : > { %v7715_v62 = vpop.eup %5628  ;;  %v4298_v57 = vadd.f32 %v4297_v58, %v4296_v21  ;;  %v4443_v35 = vsel %vm4442_vm5, %v4433_v28, 0.0  ;;  %v4444_v18 = vsel %vm4442_vm5, %v4434_v10, 0.0  ;;  %v4301_v51 = vsel %vm4287_vm4, %v4285_v49, 0.0 }
 0xa50   : > { %v4718_v22 = vadd.f32 %v7715_v62, %v7706_v0  ;;  %v7724_v52 = vpop.eup %5630  ;;  %v4445_v2 = vadd.f32 %v4444_v18, %v4443_v35  ;;  %v4430_v15 = vmul.f32 %v5625_v53, %v7616_v46  ;;  %v4437_v48 = vmul.f32 %v7696_v36, %v4428_v32 }
 0xa51   : > { %v7734_v24 = vpop.eup %5632  ;;  %v4300_v59 = vadd.f32 %v4299_v7, %v4298_v57  ;;  %v4446_v39 = vsel %vm4442_vm5, %v4435_v42, 0.0  ;;  %v4431_v55 = vmul.f32 %v5625_v53, %v7621_v34  ;;  %v4304_v43 = vsel %vm4303_vm6, %v4286_v3, 0.0 }
 0xa52   : > { %v4719_v20 = vadd.f32 %v7724_v52, %v4718_v22  ;;  %v7746_v60 = vpop.eup %5634  ;;  %v4447_v37 = vadd.f32 %v4446_v39, %v4445_v2  ;;  %v4438_v1 = vmul.f32 %v7701_v50, %v4429_v31  ;;  %v4448_v4 = vsel %vm4442_vm5, %v4436_v38, 0.0 }
 0xa53   : > { %v7753_v30 = vpop.eup %5636  ;;  %v4302_v56 = vadd.f32 %v4301_v51, %v4300_v59  ;;  %v4439_v34 = vmul.f32 %v7709_v17, %v4430_v15  ;;  %v4450_v53 = vsel %vm4442_vm5, %v4437_v48, 0.0  ;;  %v4440_v21 = vmul.f32 %v7727_v6, %v4431_v55 }
 0xa54   : > { %v4720_v16 = vadd.f32 %v7734_v24, %v4719_v20  ;;  %v7756_v40 = vpop.eup %5638  ;;  %v4449_v12 = vadd.f32 %v4448_v4, %v4447_v37  ;;  %v4452_v10 = vsel %vm4442_vm5, %v4438_v1, 0.0  ;;  %v4441_v7 = vmul.f32 %v7737_v9, %v4432_v8 }
 0xa55   : > { %v7761_v46 = vpop.eup %5640  ;;  %v4305_v13 = vadd.f32 %v4304_v43, %v4302_v56  ;;  %v4454_v31 = vsel %vm4442_vm5, %v4439_v34, 0.0  ;;  %v4456_v51 = vsel %vm4442_vm5, %v4440_v21, 0.0 }
 0xa56   : > { %v4721_v27 = vadd.f32 %v7746_v60, %v4720_v16  ;;  %v7763_v61 = vpop.eup %5642  ;;  %v4451_v44 = vadd.f32 %v4450_v53, %v4449_v12  ;;  %v4459_v48 = vsel %vm4458_vm7, %v4441_v7, 0.0 }
 0xa57   : > { %v4306_v22 = vrot.slane %v4305_v13, 4  ;;  %v4725_v20 = vsel %vm4214_vm3, %v7763_v61, 0.0 }
 0xa58   : > { %v4722_v19 = vadd.f32 %v7753_v30, %v4721_v27  ;;  %v4453_v42 = vadd.f32 %v4452_v10, %v4451_v44 }
 0xa59   : > { %v4307_v58 = vadd.f32 %v4306_v22, %v4305_v13 }
 0xa5a   : > { %v4723_v32 = vadd.f32 %v7756_v40, %v4722_v19  ;;  %v5645_v28 = vpop.eup %5644  ;;  %v4455_v35 = vadd.f32 %v4454_v31, %v4453_v42  ;;  %v7798_v31 = vpop.f32.mrf.mxu0 }
 0xa5b   : > { %v4579_v3 = vmul.f32 %v5645_v28, %v7628_v45  ;;  %v4580_v16 = vmul.f32 %v5645_v28, %v7630_v26  ;;  %v4308_v38 = vrot.slane %v4307_v58, 2  ;;  %v4581_v18 = vmul.f32 %v5645_v28, %v7635_v29 }
 0xa5c   : > { %v4724_v49 = vadd.f32 %v7761_v46, %v4723_v32  ;;  %v4457_v27 = vadd.f32 %v4456_v51, %v4455_v35  ;;  %v4582_v45 = vmul.f32 %v5645_v28, %v7639_v25  ;;  %v4583_v56 = vmul.f32 %v5645_v28, %v7643_v54  ;;  %v3627_v51 = vpop.permute.xlu0 %3626 }
 0xa5d   : > { %v4309_v2 = vadd.f32 %v4308_v38, %v4307_v58  ;;  %v4588_v15 = vmul.f32 %v7674_v63, %v4579_v3  ;;  %v4589_v39 = vmul.f32 %v7678_v5, %v4580_v16  ;;  %v4590_v29 = vmul.f32 %v7684_v47, %v4581_v18  ;;  %v7800_v16 = vpop.permute.xlu1 %3628 }
 0xa5e   : > { %v4726_v57 = vadd.f32 %v4725_v20, %v4724_v49  ;;  %v4460_v55 = vadd.f32 %v4459_v48, %v4457_v27  ;;  %v4584_v19 = vmul.f32 %v5645_v28, %v7647_v33  ;;  %v4591_v25 = vmul.f32 %v7690_v41, %v4582_v45  ;;  %v3704_v45 = vpop.f32.mrf.mxu0 }
 0xa5f   : > { %v4310_v26 = vrot.slane %v4309_v2, 1  ;;  %v4598_v43 = vsel %vm4597_vm8, %v4588_v15, 0.0  ;;  %v4599_v13 = vsel %vm4597_vm8, %v4589_v39, 0.0  ;;  %v4585_v34 = vmul.f32 %v5645_v28, %v7650_v23 }
 0xa60   : > { %v4727_v59 = vrot.slane %v4726_v57, 4  ;;  %v4461_v4 = vrot.slane %v4460_v55, 4  ;;  %v4600_v32 = vadd.f32 %v4599_v13, %v4598_v43  ;;  %v4592_v53 = vmul.f32 %v7696_v36, %v4583_v56 }
 0xa61   : > { %v4311_v1 = vadd.f32 %v4310_v26, %v4309_v2  ;;  %v4601_v22 = vsel %vm4597_vm8, %v4590_v29, 0.0  ;;  %v4586_v21 = vmul.f32 %v5645_v28, %v7658_v11  ;;  %v4593_v10 = vmul.f32 %v7701_v50, %v4584_v19  ;;  %v3724_v48 = vpop.permute.xlu1 %3723 }
 0xa62   : > { %v4728_v8 = vadd.f32 %v4727_v59, %v4726_v57  ;;  %v4462_v54 = vadd.f32 %v4461_v4, %v4460_v55  ;;  %v4602_v44 = vadd.f32 %v4601_v22, %v4600_v32  ;;  %v4603_v20 = vsel %vm4597_vm8, %v4591_v25, 0.0 }
 0xa63   : > { %4778 = vrot.lane.b32.xlu1 %v4311_v1, %s5676_s25  ;;  %v4594_v23 = vmul.f32 %v7709_v17, %v4585_v34  ;;  %v4587_v57 = vmul.f32 %v5645_v28, %v7655_v14  ;;  %v4605_v7 = vsel %vm4597_vm8, %v4592_v53, 0.0  ;;  %v4595_v35 = vmul.f32 %v7727_v6, %v4586_v21  ;;  %v7806_v28 = vpop.f32.mrf.mxu1  ;;  %v5344_v1 = vpop.f32.mrf.mxu0 }
 0xa64   : > { %v4729_v37 = vrot.slane %v4728_v8, 2  ;;  %v4463_v49 = vrot.slane %v4462_v54, 2  ;;  %v4604_v42 = vadd.f32 %v4603_v20, %v4602_v44  ;;  %v4607_v18 = vsel %vm4597_vm8, %v4593_v10, 0.0 }
 0xa65   : > { %v4596_v27 = vmul.f32 %v7737_v9, %v4587_v57  ;;  %v4609_v14 = vsel %vm4597_vm8, %v4594_v23, 0.0  ;;  %v3705_v26 = vadd.f32 %v3704_v45, %v3627_v51  ;;  %v3799_v56 = vpop.f32.mrf.mxu1  ;;  %v3819_v4 = vpop.permute.xlu1 %3818 }
 0xa66   : > { %v4730_v12 = vadd.f32 %v4729_v37, %v4728_v8  ;;  %v4464_v3 = vadd.f32 %v4463_v49, %v4462_v54  ;;  %v4606_v38 = vadd.f32 %v4605_v7, %v4604_v42  ;;  %v4611_v8 = vsel %vm4597_vm8, %v4595_v35, 0.0  ;;  %v3722_v37 = vpop.permute.xlu0 %3721  ;;  %v3894_v54 = vpop.f32.mrf.mxu0 }
 0xa67   : > { %v4614_v55 = vsel %vm4613_vm9, %v4596_v27, 0.0  ;;  %v3800_v43 = vadd.f32 %v3799_v56, %v3722_v37  ;;  %v3900_v53 = vadd.f32 %v5344_v1, %v3819_v4  ;;  %v3805_v27 = vadd.f32 %v7806_v28, %v3724_v48 }
 0xa68   : > { %v4731_v33 = vrot.slane %v4730_v12, 1  ;;  %v4465_v11 = vrot.slane %v4464_v3, 1  ;;  %v4608_v59 = vadd.f32 %v4607_v18, %v4606_v38 }
 0xa6a   : > { %v4732_v58 = vadd.f32 %v4731_v33, %v4730_v12  ;;  %v4466_v2 = vadd.f32 %v4465_v11, %v4464_v3  ;;  %v4610_v15 = vadd.f32 %v4609_v14, %v4608_v59  ;;  %v3817_v49 = vpop.permute.xlu0 %3816 }
 0xa6c   : > { %5646 = vrcp.f32 %v4732_v58  ;;  %4782 = vrot.lane.b32.xlu0 %v4466_v2, %s5676_s25  ;;  %v4612_v39 = vadd.f32 %v4611_v8, %v4610_v15 }
 0xa6e   : > { %v4615_v29 = vadd.f32 %v4614_v55, %v4612_v39  ;;  %v3912_v45 = vpop.permute.xlu0 %3911 }
 0xa6f   : > { %v5351_v3 = vpop.f32.mrf.mxu1 }
 0xa70   : > { %4070 = vrot.lane.b32.xlu0 %v3705_v26, %s5689_s12  ;;  %v4616_v19 = vrot.slane %v4615_v29, 4 }
 0xa72   : > { %v4617_v25 = vadd.f32 %v4616_v19, %v4615_v29  ;;  %v4007_v37 = vpop.permute.xlu0 %4006 }
 0xa74   : > { %4074 = vrot.lane.b32.xlu0 %v3800_v43, %s5689_s12  ;;  %v4618_v12 = vrot.slane %v4617_v25, 2 }
 0xa76   : > { %v4619_v44 = vadd.f32 %v4618_v12, %v4617_v25  ;;  %v4011_v19 = vpop.permute.xlu0 %4010 }
 0xa78   : > { %4080 = vrot.lane.b32.xlu0 %v3900_v53, %s5689_s12  ;;  %v4620_v58 = vrot.slane %v4619_v44, 1 }
 0xa79   : > { %v5647_v13 = vpop.eup %5646 }
 0xa7a   : > { %v4734_v32 = vmul.f32 %v5647_v13, %v7706_v0  ;;  %v4735_v34 = vmul.f32 %v5647_v13, %v7715_v62  ;;  %v4736_v22 = vmul.f32 %v5647_v13, %v7724_v52  ;;  %v4737_v33 = vmul.f32 %v5647_v13, %v7734_v24  ;;  %v4015_v43 = vpop.permute.xlu0 %4014 }
 0xa7b   : > { %v4738_v21 = vmul.f32 %v5647_v13, %v7746_v60  ;;  %v3895_v62 = vadd.f32 %v3894_v54, %v3817_v49  ;;  %v4739_v42 = vmul.f32 %v5647_v13, %v7753_v30  ;;  %v4621_v57 = vadd.f32 %v4620_v58, %v4619_v44  ;;  %v8032_v44 = vld [vmem:[#allocation5_spill] sm:$0xff]  ;;  %v8033_v49 = vld [vmem:[#allocation7_spill] sm:$0xff]  ;;  %v8034_v58 = vld [vmem:[#allocation24_spill] sm:$0xff] }
 0xa7c   : > { %v4743_v10 = vmul.f32 %v7674_v63, %v4734_v32  ;;  %v4744_v20 = vmul.f32 %v7678_v5, %v4735_v34  ;;  %v4745_v0 = vmul.f32 %v7684_v47, %v4736_v22  ;;  %v4746_v52 = vmul.f32 %v7690_v41, %v4737_v33  ;;  %v3914_v47 = vpop.permute.xlu1 %3913 }
 0xa7d   : > { %v4740_v60 = vmul.f32 %v5647_v13, %v7756_v40  ;;  %4078 = vrot.lane.b32.xlu0 %v3895_v62, %s5689_s12  ;;  %v4747_v63 = vmul.f32 %v7696_v36, %v4738_v21  ;;  %4786 = vrot.lane.b32.xlu1 %v4621_v57, %s5676_s25  ;;  %v3995_v41 = vadd.f32 %v5351_v3, %v3914_v47 }
 0xa7e   : > { %v4753_v24 = vsel %vm4752_vm10, %v4743_v10, 0.0  ;;  %v4754_v23 = vsel %vm4752_vm10, %v4744_v20, 0.0  ;;  %v4756_v5 = vsel %vm4752_vm10, %v4745_v0, 0.0  ;;  %v4741_v38 = vmul.f32 %v5647_v13, %v7761_v46  ;;  %v4019_v4 = vpop.permute.xlu0 %4018 }
 0xa7f   : > { %v4755_v7 = vadd.f32 %v4754_v23, %v4753_v24  ;;  %v4748_v11 = vmul.f32 %v7701_v50, %v4739_v42  ;;  %v4758_v35 = vsel %vm4752_vm10, %v4746_v52, 0.0  ;;  %v3710_v40 = vadd.f32 %v7798_v31, %v7800_v16  ;;  %v3989_v31 = vpop.f32.mrf.mxu1  ;;  %v8035_v42 = vld [vmem:[#allocation11_spill] sm:$0xff] }
 0xa80   : > { %v4749_v59 = vmul.f32 %v7709_v17, %v4740_v60  ;;  %v4742_v36 = vmul.f32 %v5647_v13, %v7763_v61  ;;  %v4760_v51 = vsel %vm4752_vm10, %v4747_v63, 0.0  ;;  %v4750_v46 = vmul.f32 %v7727_v6, %v4741_v38  ;;  %v4009_v1 = vpop.permute.xlu1 %4008  ;;  %v8036_v60 = vld [vmem:[#allocation27_spill] sm:$0xff]  ;;  %v8037_v63 = vld [vmem:[#allocation8_spill] sm:$0xff] }
 0xa81   : > { %v4757_v30 = vadd.f32 %v4756_v5, %v4755_v7  ;;  %4084 = vrot.lane.b32.xlu0 %v3995_v41, %s5689_s12  ;;  %4072 = vrot.lane.b32.xlu1 %v3710_v40, %s5689_s12  ;;  %v4762_v50 = vsel %vm4752_vm10, %v4748_v11, 0.0  ;;  %v3990_v8 = vadd.f32 %v3989_v31, %v3912_v45  ;;  %v889_v21 = vadd.f32 %v8033_v49, %v8032_v44  ;;  %v8039_v40 = vld [vmem:[#allocation9_spill] sm:$0xff] }
 0xa82   : > { %v4751_v16 = vmul.f32 %v7737_v9, %v4742_v36  ;;  %v4764_v17 = vsel %vm4752_vm10, %v4749_v59, 0.0  ;;  %v4766_v15 = vsel %vm4752_vm10, %v4750_v46, 0.0  ;;  %v4039_v13 = vpop.permute.xlu0 %4038  ;;  %v984_v52 = vadd.f32 %v8035_v42, %v8034_v58 }
 0xa83   : > { %v4759_v18 = vadd.f32 %v4758_v35, %v4757_v30  ;;  %v4094_v20 = vsel %vm258_vm0, %v889_v21, %v4007_v37  ;;  %v1084_v5 = vadd.f32 %v8037_v63, %v8036_v60  ;;  %v8038_v35 = vld [vmem:[#allocation23_spill] sm:$0xff] }
 0xa84   : > { %v4769_v6 = vsel %vm4768_vm11, %v4751_v16, 0.0  ;;  %v4013_v25 = vpop.permute.xlu1 %4012  ;;  %v4102_v0 = vsel %vm657_vm1, %v4094_v20, %v4039_v13  ;;  %v4096_v3 = vsel %vm258_vm0, %v984_v52, %v4011_v19  ;;  %v8047_v13 = vld [vmem:[#allocation13_spill] sm:$0xff] }
 0xa85   : > { %v4761_v2 = vadd.f32 %v4760_v51, %v4759_v18  ;;  %4076 = vrot.lane.b32.xlu1 %v3805_v27, %s5689_s12  ;;  %v1079_v18 = vadd.f32 %v8039_v40, %v8038_v35  ;;  %v8041_v27 = vld [vmem:[#allocation12_spill] sm:$0xff] }
 0xa86   : > { %v4043_v32 = vpop.permute.xlu0 %4042 }
 0xa87   : > { %v4763_v14 = vadd.f32 %v4762_v50, %v4761_v2  ;;  %v4104_v57 = vsel %vm657_vm1, %v4096_v3, %v4043_v32  ;;  %v4098_v51 = vsel %vm258_vm0, %v1079_v18, %v4015_v43  ;;  %v8040_v50 = vld [vmem:[#allocation22_spill] sm:$0xff] }
 0xa88   : > { %v4017_v12 = vpop.permute.xlu1 %4016 }
 0xa89   : > { %v4765_v61 = vadd.f32 %v4764_v17, %v4763_v14  ;;  %4082 = vrot.lane.b32.xlu1 %v3990_v8, %s5689_s12  ;;  %v4099_v41 = vsel %vm258_vm0, %v1084_v5, %v4017_v12  ;;  %v1179_v14 = vadd.f32 %v8041_v27, %v8040_v50  ;;  %v8042_v17 = vld [vmem:[#allocation2_spill] sm:$0xff] }
 0xa8b   : > { %v4767_v39 = vadd.f32 %v4766_v15, %v4765_v61  ;;  %v8043_v61 = vld [vmem:[#allocation6_spill] sm:$0xff] }
 0xa8c   : > { %v4021_v34 = vpop.permute.xlu1 %4020  ;;  %v894_v45 = vadd.f32 %v8043_v61, %v8042_v17 }
 0xa8d   : > { %v4770_v26 = vadd.f32 %v4769_v6, %v4767_v39  ;;  %v4101_v15 = vsel %vm258_vm0, %v1179_v14, %v4021_v34 }
 0xa8e   : > { %v4095_v8 = vsel %vm258_vm0, %v894_v45, %v4009_v1  ;;  %v8046_v1 = vld [vmem:[#allocation29_spill] sm:$0xff] }
 0xa8f   : > { %v4771_v28 = vrot.slane %v4770_v26, 4  ;;  %v1174_v12 = vadd.f32 %v8047_v13, %v8046_v1 }
 0xa90   : > { %v4041_v53 = vpop.permute.xlu1 %4040 }
 0xa91   : > { %v4772_v48 = vadd.f32 %v4771_v28, %v4770_v26  ;;  %v4103_v26 = vsel %vm657_vm1, %v4095_v8, %v4041_v53  ;;  %v4100_v34 = vsel %vm258_vm0, %v1174_v12, %v4019_v4 }
 0xa93   : > { %v4773_v55 = vrot.slane %v4772_v48, 2 }
 0xa94   : > { %v4045_v10 = vpop.permute.xlu1 %4044 }
 0xa95   : > { %v4774_v56 = vadd.f32 %v4773_v55, %v4772_v48  ;;  %v8044_v55 = vld [vmem:[#allocation21_spill] sm:$0xff] }
 0xa97   : > { %v4775_v9 = vrot.slane %v4774_v56, 1 }
 0xa98   : > { %v4049_v24 = vpop.permute.xlu1 %4048 }
 0xa99   : > { %v4776_v29 = vadd.f32 %v4775_v9, %v4774_v56  ;;  %v4107_v38 = vsel %vm657_vm1, %v4099_v41, %v4049_v24  ;;  %v8045_v56 = vld [vmem:[#allocation10_spill] sm:$0xff] }
 0xa9a   : > { %v989_v9 = vadd.f32 %v8045_v56, %v8044_v55 }
 0xa9b   : > { %4790 = vrot.lane.b32.xlu1 %v4776_v29, %s5676_s25 }
 0xa9c   : > { %v4097_v37 = vsel %vm258_vm0, %v989_v9, %v4013_v25 }
 0xa9d   : > { %v4105_v19 = vsel %vm657_vm1, %v4097_v37, %v4045_v10 }
 0xaa3   : > { %v4047_v54 = vpop.permute.xlu0 %4046 }
 0xaa4   : > { %v4106_v2 = vsel %vm657_vm1, %v4098_v51, %v4047_v54 }
 0xaa7   : > { %v4051_v22 = vpop.permute.xlu0 %4050 }
 0xaa8   : > { %v4108_v54 = vsel %vm657_vm1, %v4100_v34, %v4051_v22 }
 0xaab   : > { %v4053_v47 = vpop.permute.xlu1 %4052 }
 0xaac   : > { %v4109_v39 = vsel %vm657_vm1, %v4101_v15, %v4053_v47 }
 0xad5   : > { %v4779_v59 = vpop.permute.xlu1 %4778 }
 0xade   : > { %v4783_v33 = vpop.permute.xlu0 %4782 }
 0xadf   : > { %v4793_v25 = vsel %vm258_vm0, %v4779_v59, %v4783_v33 }
 0xae2   : > { %v4071_v62 = vpop.permute.xlu0 %4070 }
 0xae3   : > { %v4111_v23 = vsel %vm4110_vm12, %v4102_v0, %v4071_v62 }
 0xae4   : > { %4120 = vst.msk [vmem:[%s7857_s17] sm:$0xff] %vm4119_vm13, %v4111_v23 }
 0xae6   : > { %v4075_v7 = vpop.permute.xlu0 %4074 }
 0xae7   : > { %v4113_v30 = vsel %vm4110_vm12, %v4104_v57, %v4075_v7 }
 0xae8   : > { %4122 = vst.msk [vmem:[%s7857_s17 + $0x10] sm:$0xff] %vm4119_vm13, %v4113_v30 }
 0xaea   : > { %v4081_v11 = vpop.permute.xlu0 %4080 }
 0xaeb   : > { %v4116_v36 = vsel %vm4110_vm12, %v4107_v38, %v4081_v11 }
 0xaec   : > { %4125 = vst.msk [vmem:[%s7857_s17 + $0x28] sm:$0xff] %vm4119_vm13, %v4116_v36 }
 0xaef   : > { %v4079_v46 = vpop.permute.xlu0 %4078  ;;  %v4787_v16 = vpop.permute.xlu1 %4786 }
 0xaf0   : > { %v4115_v31 = vsel %vm4110_vm12, %v4106_v2, %v4079_v46  ;;  %v4794_v49 = vsel %vm657_vm1, %v4793_v25, %v4787_v16 }
 0xaf1   : > { %4124 = vst.msk [vmem:[%s7857_s17 + $0x20] sm:$0xff] %vm4119_vm13, %v4115_v31 }
 0xaf3   : > { %v4085_v6 = vpop.permute.xlu0 %4084  ;;  %v4073_v48 = vpop.permute.xlu1 %4072 }
 0xaf4   : > { %v4118_v28 = vsel %vm4110_vm12, %v4109_v39, %v4085_v6  ;;  %v4112_v29 = vsel %vm4110_vm12, %v4103_v26, %v4073_v48 }
 0xaf5   : > { %4127 = vst.msk [vmem:[%s7857_s17 + $0x38] sm:$0xff] %vm4119_vm13, %v4118_v28  ;;  %4121 = vst.msk [vmem:[%s7857_s17 + $0x8] sm:$0xff] %vm4119_vm13, %v4112_v29 }
 0xaf7   : > { %v4077_v43 = vpop.permute.xlu1 %4076 }
 0xaf8   : > { %v4114_v32 = vsel %vm4110_vm12, %v4105_v19, %v4077_v43 }
 0xaf9   : > { %4123 = vst.msk [vmem:[%s7857_s17 + $0x18] sm:$0xff] %vm4119_vm13, %v4114_v32 }
 0xafb   : > { %v4083_v53 = vpop.permute.xlu1 %4082 }
 0xafc   : > { %v4117_v44 = vsel %vm4110_vm12, %v4108_v54, %v4083_v53 }
 0xafd   : > { %4126 = vst.msk [vmem:[%s7857_s17 + $0x30] sm:$0xff] %vm4119_vm13, %v4117_v44 }
 0xb0d   : > { %v4791_v21 = vpop.permute.xlu1 %4790 }
 0xb0e   : > { %v4795_v10 = vsel %vm4110_vm12, %v4794_v49, %v4791_v21 }
 0xb0f   : > { %4797 = vst.msk [vmem:[%s226_s19] sm:$0x1] %vm4796_vm14, %v4795_v10 }
 0xb10 PF: > { %s15_s15 = sadd.s32 1, %s5673_s15  }
 0xb11   : > { %p12_p4 = scmp.ge.s32.totalorder %s15_s15, 4  }
 0xb13   :  { %14 = sbr.rel (!%p12_p4) target bundleno = 1 (0x1), region = 77 }

</bundles_post_ra>
